<compile_context>
chip_gen: v6e
topology: v6e:2x2x1
jax: 0.10.0
libtpu: 0.0.40
codegen_flags: <defaults>
</compile_context>

<pallas_src>
import numpy as np
import jax
import jax.numpy as jnp
from jax.experimental import pallas as pl
from jax.experimental.pallas import tpu as pltpu


def _round_up(x, m):
    return ((x + m - 1) // m) * m


def _pad_to(a, shape, dtype):
    pads = [(0, t - s) for s, t in zip(a.shape, shape)]
    return jnp.pad(a, pads).astype(dtype)


def regressor_kernel(adj_ref, xw1_ref, b1_ref, w2_ref, b2_ref,
                     pool_ref, wl_ref, bl_ref, out_ref, h1_ref, pooled_ref):
    layer = pl.program_id(0)          # 0: GCN layer-1 sweep, 1: GCN layer-2 + pooling sweep
    tile = pl.program_id(1)           # adjacency row-slab index
    n_tiles = pl.num_programs(1)
    tn = adj_ref.shape[0]             # rows per slab (static)

    @pl.when((layer == 0) & (tile == 0))
    def _init():
        pooled_ref[...] = jnp.zeros_like(pooled_ref)

    @pl.when(layer == 0)
    def _layer1():
        # h1[rows] = relu(Â_rows @ (X W1) + b1)   -- single lane-dense bf16 MXU dot
        ax = jnp.dot(adj_ref[...], xw1_ref[...], preferred_element_type=jnp.float32)
        h1 = jnp.maximum(ax + b1_ref[...], 0.0)
        start = pl.multiple_of(tile * tn, tn)
        h1_ref[pl.ds(start, tn), :] = h1.astype(h1_ref.dtype)

    @pl.when(layer == 1)
    def _layer2_and_pool():
        # h2[rows] = relu((Â_rows @ H1) @ W2 + b2); fold mean-pool for these rows.
        ah = jnp.dot(adj_ref[...], h1_ref[...], preferred_element_type=jnp.float32)
        h2 = jnp.maximum(
            jnp.dot(ah.astype(jnp.bfloat16), w2_ref[...],
                    preferred_element_type=jnp.float32) + b2_ref[...],
            0.0)
        pooled_ref[...] += jnp.dot(pool_ref[...], h2.astype(jnp.bfloat16),
                                   preferred_element_type=jnp.float32)

    @pl.when((layer == 1) & (tile == n_tiles - 1))
    def _finalize():
        out_ref[...] = (jnp.dot(pooled_ref[...].astype(jnp.bfloat16), wl_ref[...],
                                preferred_element_type=jnp.float32) + bl_ref[...])


def _vmem_budget_bytes():
    try:
        cap = int(pltpu.get_tpu_info().vmem_capacity_bytes)
    except Exception:
        cap = 64 << 20            # v7x-safe fallback
    return int(cap * 0.70)        # leave headroom for compiler scratch / spills


def _pick_row_tile(n_pad, h_pad, g_pad, o_pad, budget):
    """Largest row slab whose double-buffered working set fits the VMEM budget."""
    fixed = (2 * n_pad * h_pad * 2                      # XW1 (resident, 2 bufs)
             + 2 * (h_pad * h_pad + h_pad * o_pad) * 2  # W2, Wl (bf16)
             + 2 * (2 * h_pad + o_pad) * 4              # biases (f32)
             + 2 * g_pad * o_pad * 4                    # out block
             + n_pad * h_pad * 2                        # h1 scratch (bf16)
             + g_pad * h_pad * 4)                       # pooled scratch (f32)
    candidates = [n_pad] + [t for t in (4096, 2048, 1024, 512, 256, 128)
                            if t < n_pad and n_pad % t == 0]
    for t in candidates:
        per_tile = 2 * t * n_pad * 2 + 2 * g_pad * t * 2    # adj slab + pool slab, bf16
        if fixed + per_tile <= budget:
            return t
    return 128


def regressor_forward(adj, x, w1, b1, w2, b2, pool, wl, bl, *, row_tile=None):
    n, f_in = x.shape
    num_graphs = pool.shape[0]
    hidden = w1.shape[1]
    out_dim = wl.shape[1]

    h_pad = max(_round_up(hidden, 128), 128)      # lane-dense hidden
    o_pad = max(_round_up(out_dim, 128), 128)     # lane-dense final output
    g_pad = _round_up(num_graphs, 8)              # sublane-aligned graph dim
    n_pad = _round_up(n, 128)

    budget = _vmem_budget_bytes()
    if row_tile is None:
        row_tile = _pick_row_tile(n_pad, h_pad, g_pad, o_pad, budget)
    n_pad = _round_up(n_pad, row_tile)            # keep a clean grid
    n_tiles = n_pad // row_tile

    # Precompute XW1 = X @ W1 in f32 (tiny), then pad + cast for the kernel.
    xw1 = jnp.asarray(x, jnp.float32) @ jnp.asarray(w1, jnp.float32)

    # Zero padding keeps the math exact: padded adj/pool columns are zero, so padded node
    # rows (which end up at h = relu(b1)) never pollute real rows or the pooled means;
    # padded hidden/output columns of W2/Wl and biases are zero, so padded features stay
    # zero through both ReLUs.
    adj_p = _pad_to(adj, (n_pad, n_pad), jnp.bfloat16)
    xw1_p = _pad_to(xw1, (n_pad, h_pad), jnp.bfloat16)
    b1_p = _pad_to(b1.reshape(1, -1), (1, h_pad), jnp.float32)
    w2_p = _pad_to(w2, (h_pad, h_pad), jnp.bfloat16)
    b2_p = _pad_to(b2.reshape(1, -1), (1, h_pad), jnp.float32)
    pool_p = _pad_to(pool, (g_pad, n_pad), jnp.bfloat16)
    wl_p = _pad_to(wl, (h_pad, o_pad), jnp.bfloat16)
    bl_p = _pad_to(bl.reshape(1, -1), (1, o_pad), jnp.float32)

    grid = (2, n_tiles)   # (layer sweep, adj row slab); row-major: all layer-0 slabs first

    in_specs = [
        pl.BlockSpec((row_tile, n_pad), lambda l, i: (i, 0)),      # adj row slab (streamed;
                                                                   #  resident when n_tiles==1)
        pl.BlockSpec((n_pad, h_pad),    lambda l, i: (0, 0)),      # XW1 (resident)
        pl.BlockSpec((1, h_pad),        lambda l, i: (0, 0)),      # b1
        pl.BlockSpec((h_pad, h_pad),    lambda l, i: (0, 0)),      # W2
        pl.BlockSpec((1, h_pad),        lambda l, i: (0, 0)),      # b2
        pl.BlockSpec((g_pad, row_tile), lambda l, i: (0, l * i)),  # pool slab (only moves on
                                                                   #  the layer-1 sweep)
        pl.BlockSpec((h_pad, o_pad),    lambda l, i: (0, 0)),      # Wl
        pl.BlockSpec((1, o_pad),        lambda l, i: (0, 0)),      # bl
    ]
    out_spec = pl.BlockSpec((g_pad, o_pad), lambda l, i: (0, 0))

    # VMEM accounting (double-buffered blocks + scratch), capped by chip capacity.
    vmem_bytes = (
        2 * row_tile * n_pad * 2                                    # adj slab x2 buffers
        + 2 * n_pad * h_pad * 2                                     # XW1
        + 2 * (h_pad * h_pad + h_pad * o_pad) * 2                   # W2, Wl
        + 2 * (2 * h_pad + o_pad) * 4                               # biases
        + 2 * g_pad * row_tile * 2                                  # pool slab
        + 2 * g_pad * o_pad * 4                                     # out
        + n_pad * h_pad * 2                                         # h1 scratch
        + g_pad * h_pad * 4                                         # pooled scratch
    )
    vmem_limit = int(min(int(vmem_bytes * 1.5) + (2 << 20), max(budget, vmem_bytes + (2 << 20))))

    adj_reads = 1 if n_tiles == 1 else 2
    flops = 2 * (2 * n_pad * n_pad * h_pad            # both Â sweeps
                 + n_pad * h_pad * h_pad              # H1' @ W2
                 + g_pad * n_pad * h_pad              # pooled accumulate
                 + g_pad * h_pad * o_pad)             # final Linear
    bytes_accessed = (adj_reads * n_pad * n_pad * 2
                      + n_pad * h_pad * 2
                      + (h_pad * h_pad + h_pad * o_pad) * 2
                      + (2 * h_pad + o_pad) * 4
                      + g_pad * n_pad * 2
                      + g_pad * o_pad * 4)
    cost = pl.CostEstimate(flops=int(flops), transcendentals=0,
                           bytes_accessed=int(bytes_accessed))

    out_p = pl.pallas_call(
        regressor_kernel,
        out_shape=jax.ShapeDtypeStruct((g_pad, o_pad), jnp.float32),
        grid_spec=pltpu.PrefetchScalarGridSpec(
            num_scalar_prefetch=0,
            grid=grid,
            in_specs=in_specs,
            out_specs=out_spec,
            scratch_shapes=[
                pltpu.VMEM((n_pad, h_pad), jnp.bfloat16),   # h1 for all nodes
                pltpu.VMEM((g_pad, h_pad), jnp.float32),    # pooled accumulator
            ]),
        compiler_params=pltpu.CompilerParams(
            dimension_semantics=("arbitrary", "arbitrary"),
            vmem_limit_bytes=vmem_limit),
        cost_estimate=cost,
    )(adj_p, xw1_p, b1_p, w2_p, b2_p, pool_p, wl_p, bl_p)

    return out_p[:num_graphs, :out_dim]


def build_normalized_adj(edge_index, num_nodes):
    """Dense  D^-1/2 (A + I) D^-1/2  as used by GCNConv (add_self_loops=True)."""
    a = np.zeros((num_nodes, num_nodes), dtype=np.float32)
    src, dst = edge_index
    a[dst, src] = 1.0                                   # message j -> i: row i, col j
    a = a + np.eye(num_nodes, dtype=np.float32)         # self loops
    deg = a.sum(axis=1)
    dinv = 1.0 / np.sqrt(np.maximum(deg, 1e-12))
    return (dinv[:, None] * a) * dinv[None, :]


def build_pool_matrix(batch, num_graphs):
    """Dense mean-pooling matrix [G, N]."""
    n = batch.shape[0]
    p = np.zeros((num_graphs, n), dtype=np.float32)
    for g in range(num_graphs):
        idx = np.where(batch == g)[0]
        p[g, idx] = 1.0 / max(len(idx), 1)
    return p


if __name__ == "__main__":
    # 8 graphs x 64 nodes (N=512), 4 input features, hidden=64 (module default), out=2.
    F_IN, HIDDEN, OUT = 4, 64, 2
    NODES_PER_GRAPH, NUM_GRAPHS = 64, 8
    N = NODES_PER_GRAPH * NUM_GRAPHS

    # deterministic graphs: a ring per graph, undirected (both directions)
    edges = []
    for g in range(NUM_GRAPHS):
        off = g * NODES_PER_GRAPH
        for i in range(NODES_PER_GRAPH):
            a_, b_ = off + i, off + (i + 1) % NODES_PER_GRAPH
            edges.append((a_, b_))
            edges.append((b_, a_))
    edge_index = np.array(edges, dtype=np.int32).T                   # [2, E]
    batch = np.repeat(np.arange(NUM_GRAPHS, dtype=np.int32), NODES_PER_GRAPH)

    adj = jnp.asarray(build_normalized_adj(edge_index, N))           # [N, N]
    pool = jnp.asarray(build_pool_matrix(batch, NUM_GRAPHS))         # [G, N]

    # deterministic parameters (synthetic init, Glorot-ish scale)
    key = jax.random.PRNGKey(0)
    k = jax.random.split(key, 8)
    x = jax.random.normal(k[0], (N, F_IN), dtype=jnp.float32)
    w1 = jax.random.normal(k[1], (F_IN, HIDDEN), dtype=jnp.float32) * (1.0 / np.sqrt(F_IN))
    b1 = jax.random.normal(k[2], (HIDDEN,), dtype=jnp.float32) * 0.1
    w2 = jax.random.normal(k[3], (HIDDEN, HIDDEN), dtype=jnp.float32) * (1.0 / np.sqrt(HIDDEN))
    b2 = jax.random.normal(k[4], (HIDDEN,), dtype=jnp.float32) * 0.1
    wl = jax.random.normal(k[5], (HIDDEN, OUT), dtype=jnp.float32) * (1.0 / np.sqrt(HIDDEN))
    bl = jax.random.normal(k[6], (OUT,), dtype=jnp.float32) * 0.1

    out = regressor_forward(adj, x, w1, b1, w2, b2, pool, wl, bl)
    out = jax.block_until_ready(out)

    # pure-JAX f32 reference (exact module semantics). The kernel streams adj/h1 and the
    # weight operands in bfloat16 (f32 accumulation), so compare at bf16 tolerance.
    h1 = jnp.maximum(adj @ (x @ w1) + b1[None, :], 0.0)
    h2 = jnp.maximum(adj @ (h1 @ w2) + b2[None, :], 0.0)
    ref = (pool @ h2) @ wl + bl[None, :]

    assert out.shape == (NUM_GRAPHS, OUT)
    np.testing.assert_allclose(np.asarray(out), np.asarray(ref), rtol=5e-2, atol=5e-2)

    print("KERNEL_OK")
</pallas_src>

<mosaic_0001>
module attributes {stable_mosaic.version = 11 : i64} {
  func.func @regressor_kernel(%arg0: i32, %arg1: i32, %arg2: memref<512x512xbf16, #tpu.memory_space<vmem>>, %arg3: memref<512x128xbf16, #tpu.memory_space<vmem>>, %arg4: memref<1x128xf32, #tpu.memory_space<vmem>>, %arg5: memref<128x128xbf16, #tpu.memory_space<vmem>>, %arg6: memref<1x128xf32, #tpu.memory_space<vmem>>, %arg7: memref<8x512xbf16, #tpu.memory_space<vmem>>, %arg8: memref<128x128xbf16, #tpu.memory_space<vmem>>, %arg9: memref<1x128xf32, #tpu.memory_space<vmem>>, %arg10: memref<8x128xf32, #tpu.memory_space<vmem>>, %arg11: memref<512x128xbf16, #tpu.memory_space<vmem>>, %arg12: memref<8x128xf32, #tpu.memory_space<vmem>>) attributes {dimension_semantics = [#tpu.dimension_semantics<arbitrary>, #tpu.dimension_semantics<arbitrary>], iteration_bounds = array<i64: 2, 1>, scalar_prefetch = 0 : i64, scratch_operands = 2 : i64, tpu.core_type = #tpu.core_type<tc>, window_params = [{transform_indices = @transform_0, window_bounds = array<i64: 512, 512>}, {pipeline_mode = #tpu.pipeline_mode<synchronous>, transform_indices = @transform_1, window_bounds = array<i64: 512, 128>}, {pipeline_mode = #tpu.pipeline_mode<synchronous>, transform_indices = @transform_2, window_bounds = array<i64: 1, 128>}, {pipeline_mode = #tpu.pipeline_mode<synchronous>, transform_indices = @transform_3, window_bounds = array<i64: 128, 128>}, {pipeline_mode = #tpu.pipeline_mode<synchronous>, transform_indices = @transform_4, window_bounds = array<i64: 1, 128>}, {transform_indices = @transform_5, window_bounds = array<i64: 8, 512>}, {pipeline_mode = #tpu.pipeline_mode<synchronous>, transform_indices = @transform_6, window_bounds = array<i64: 128, 128>}, {pipeline_mode = #tpu.pipeline_mode<synchronous>, transform_indices = @transform_7, window_bounds = array<i64: 1, 128>}, {pipeline_mode = #tpu.pipeline_mode<synchronous>, transform_indices = @transform_8, window_bounds = array<i64: 8, 128>}]} {
    %c0_i32 = arith.constant 0 : i32
    %0 = arith.cmpi eq, %arg0, %c0_i32 : i32
    %c0_i32_0 = arith.constant 0 : i32
    %1 = arith.cmpi eq, %arg1, %c0_i32_0 : i32
    %2 = arith.andi %0, %1 : i1
    %3 = arith.extui %2 : i1 to i32
    %c0_i32_1 = arith.constant 0 : i32
    %4 = arith.cmpi ne, %3, %c0_i32_1 : i32
    scf.if %4 {
      %cst = arith.constant 0.000000e+00 : f32
      %16 = vector.broadcast %cst : f32 to vector<8x128xf32>
      %c0 = arith.constant 0 : index
      %c0_8 = arith.constant 0 : index
      %17 = vector.load %arg12[%c0, %c0_8] : memref<8x128xf32, #tpu.memory_space<vmem>>, vector<8x128xf32>
      tpu.vector_store %arg12[%c0, %c0_8], %16 {strides = array<i32>} : memref<8x128xf32, #tpu.memory_space<vmem>>, vector<8x128xf32>,
    } else {
    }
    %c0_i32_2 = arith.constant 0 : i32
    %5 = arith.cmpi eq, %arg0, %c0_i32_2 : i32
    %6 = arith.extui %5 : i1 to i32
    %c0_i32_3 = arith.constant 0 : i32
    %7 = arith.cmpi ne, %6, %c0_i32_3 : i32
    scf.if %7 {
      %c0 = arith.constant 0 : index
      %c0_8 = arith.constant 0 : index
      %16 = vector.load %arg2[%c0, %c0_8] : memref<512x512xbf16, #tpu.memory_space<vmem>>, vector<512x512xbf16>
      %c0_9 = arith.constant 0 : index
      %c0_10 = arith.constant 0 : index
      %17 = vector.load %arg3[%c0_9, %c0_10] : memref<512x128xbf16, #tpu.memory_space<vmem>>, vector<512x128xbf16>
      %cst = arith.constant dense<0.000000e+00> : vector<512x128xf32>
      %18 = tpu.matmul %16, %17, %cst {dimension_numbers = #tpu.dot_dimension_numbers<[1], [0], [0], [1], [0, 0, 1, 1], [], []>} : vector<512x512xbf16>, vector<512x128xbf16>, vector<512x128xf32> -> vector<512x128xf32>
      %c0_11 = arith.constant 0 : index
      %c0_12 = arith.constant 0 : index
      %19 = vector.load %arg4[%c0_11, %c0_12] : memref<1x128xf32, #tpu.memory_space<vmem>>, vector<1x128xf32>
      %20 = vector.broadcast %19 : vector<1x128xf32> to vector<512x128xf32>
      %21 = arith.addf %18, %20 : vector<512x128xf32>
      %cst_13 = arith.constant 0.000000e+00 : f32
      %22 = vector.broadcast %cst_13 : f32 to vector<512x128xf32>
      %23 = arith.maximumf %21, %22 : vector<512x128xf32>
      %c512_i32 = arith.constant 512 : i32
      %24 = arith.muli %arg1, %c512_i32 : i32
      %25 = tpu.assume_multiple %24, 512 : i32
      %26 = arith.truncf %23 : vector<512x128xf32> to vector<512x128xbf16>
      %27 = arith.index_cast %25 : i32 to index
      %c0_14 = arith.constant 0 : index
      %28 = vector.load %arg11[%27, %c0_14] : memref<512x128xbf16, #tpu.memory_space<vmem>>, vector<512x128xbf16>
      tpu.vector_store %arg11[%27, %c0_14], %26 {strides = array<i32>} : memref<512x128xbf16, #tpu.memory_space<vmem>>, vector<512x128xbf16>,
    } else {
    }
    %c1_i32 = arith.constant 1 : i32
    %8 = arith.cmpi eq, %arg0, %c1_i32 : i32
    %9 = arith.extui %8 : i1 to i32
    %c0_i32_4 = arith.constant 0 : i32
    %10 = arith.cmpi ne, %9, %c0_i32_4 : i32
    scf.if %10 {
      %c0 = arith.constant 0 : index
      %c0_8 = arith.constant 0 : index
      %16 = vector.load %arg2[%c0, %c0_8] : memref<512x512xbf16, #tpu.memory_space<vmem>>, vector<512x512xbf16>
      %c0_9 = arith.constant 0 : index
      %c0_10 = arith.constant 0 : index
      %17 = vector.load %arg11[%c0_9, %c0_10] : memref<512x128xbf16, #tpu.memory_space<vmem>>, vector<512x128xbf16>
      %cst = arith.constant dense<0.000000e+00> : vector<512x128xf32>
      %18 = tpu.matmul %16, %17, %cst {dimension_numbers = #tpu.dot_dimension_numbers<[1], [0], [0], [1], [0, 0, 1, 1], [], []>} : vector<512x512xbf16>, vector<512x128xbf16>, vector<512x128xf32> -> vector<512x128xf32>
      %19 = arith.truncf %18 : vector<512x128xf32> to vector<512x128xbf16>
      %c0_11 = arith.constant 0 : index
      %c0_12 = arith.constant 0 : index
      %20 = vector.load %arg5[%c0_11, %c0_12] : memref<128x128xbf16, #tpu.memory_space<vmem>>, vector<128x128xbf16>
      %cst_13 = arith.constant dense<0.000000e+00> : vector<512x128xf32>
      %21 = tpu.matmul %19, %20, %cst_13 {dimension_numbers = #tpu.dot_dimension_numbers<[1], [0], [0], [1], [0, 0, 1, 1], [], []>} : vector<512x128xbf16>, vector<128x128xbf16>, vector<512x128xf32> -> vector<512x128xf32>
      %c0_14 = arith.constant 0 : index
      %c0_15 = arith.constant 0 : index
      %22 = vector.load %arg6[%c0_14, %c0_15] : memref<1x128xf32, #tpu.memory_space<vmem>>, vector<1x128xf32>
      %23 = vector.broadcast %22 : vector<1x128xf32> to vector<512x128xf32>
      %24 = arith.addf %21, %23 : vector<512x128xf32>
      %cst_16 = arith.constant 0.000000e+00 : f32
      %25 = vector.broadcast %cst_16 : f32 to vector<512x128xf32>
      %26 = arith.maximumf %24, %25 : vector<512x128xf32>
      %c0_17 = arith.constant 0 : index
      %c0_18 = arith.constant 0 : index
      %27 = vector.load %arg12[%c0_17, %c0_18] : memref<8x128xf32, #tpu.memory_space<vmem>>, vector<8x128xf32>
      %c0_19 = arith.constant 0 : index
      %c0_20 = arith.constant 0 : index
      %28 = vector.load %arg7[%c0_19, %c0_20] : memref<8x512xbf16, #tpu.memory_space<vmem>>, vector<8x512xbf16>
      %29 = arith.truncf %26 : vector<512x128xf32> to vector<512x128xbf16>
      %cst_21 = arith.constant dense<0.000000e+00> : vector<8x128xf32>
      %30 = tpu.matmul %28, %29, %cst_21 {dimension_numbers = #tpu.dot_dimension_numbers<[1], [0], [0], [1], [0, 0, 1, 1], [], []>} : vector<8x512xbf16>, vector<512x128xbf16>, vector<8x128xf32> -> vector<8x128xf32>
      %31 = arith.addf %27, %30 : vector<8x128xf32>
      %c0_22 = arith.constant 0 : index
      %c0_23 = arith.constant 0 : index
      %32 = vector.load %arg12[%c0_22, %c0_23] : memref<8x128xf32, #tpu.memory_space<vmem>>, vector<8x128xf32>
      tpu.vector_store %arg12[%c0_22, %c0_23], %31 {strides = array<i32>} : memref<8x128xf32, #tpu.memory_space<vmem>>, vector<8x128xf32>,
    } else {
    }
    %c1_i32_5 = arith.constant 1 : i32
    %11 = arith.cmpi eq, %arg0, %c1_i32_5 : i32
    %c0_i32_6 = arith.constant 0 : i32
    %12 = arith.cmpi eq, %arg1, %c0_i32_6 : i32
    %13 = arith.andi %11, %12 : i1
    %14 = arith.extui %13 : i1 to i32
    %c0_i32_7 = arith.constant 0 : i32
    %15 = arith.cmpi ne, %14, %c0_i32_7 : i32
    scf.if %15 {
      %c0 = arith.constant 0 : index
      %c0_8 = arith.constant 0 : index
      %16 = vector.load %arg12[%c0, %c0_8] : memref<8x128xf32, #tpu.memory_space<vmem>>, vector<8x128xf32>
      %17 = arith.truncf %16 : vector<8x128xf32> to vector<8x128xbf16>
      %c0_9 = arith.constant 0 : index
      %c0_10 = arith.constant 0 : index
      %18 = vector.load %arg8[%c0_9, %c0_10] : memref<128x128xbf16, #tpu.memory_space<vmem>>, vector<128x128xbf16>
      %cst = arith.constant dense<0.000000e+00> : vector<8x128xf32>
      %19 = tpu.matmul %17, %18, %cst {dimension_numbers = #tpu.dot_dimension_numbers<[1], [0], [0], [1], [0, 0, 1, 1], [], []>} : vector<8x128xbf16>, vector<128x128xbf16>, vector<8x128xf32> -> vector<8x128xf32>
      %c0_11 = arith.constant 0 : index
      %c0_12 = arith.constant 0 : index
      %20 = vector.load %arg9[%c0_11, %c0_12] : memref<1x128xf32, #tpu.memory_space<vmem>>, vector<1x128xf32>
      %21 = vector.broadcast %20 : vector<1x128xf32> to vector<8x128xf32>
      %22 = arith.addf %19, %21 : vector<8x128xf32>
      %c0_13 = arith.constant 0 : index
      %c0_14 = arith.constant 0 : index
      %23 = vector.load %arg10[%c0_13, %c0_14] : memref<8x128xf32, #tpu.memory_space<vmem>>, vector<8x128xf32>
      tpu.vector_store %arg10[%c0_13, %c0_14], %22 {strides = array<i32>} : memref<8x128xf32, #tpu.memory_space<vmem>>, vector<8x128xf32>,
    } else {
    }
    return
  }
  func.func @transform_0(%arg0: i32, %arg1: i32) -> (i32, i32) {
    %c0_i32 = arith.constant 0 : i32
    %c0_i32_0 = arith.constant 0 : i32
    return %arg1, %c0_i32 : i32, i32
  }
  func.func @transform_1(%arg0: i32, %arg1: i32) -> (i32, i32) {
    %c0_i32 = arith.constant 0 : i32
    %c0_i32_0 = arith.constant 0 : i32
    %c0_i32_1 = arith.constant 0 : i32
    return %c0_i32, %c0_i32_0 : i32, i32
  }
  func.func @transform_2(%arg0: i32, %arg1: i32) -> (i32, i32) {
    %c0_i32 = arith.constant 0 : i32
    %c0_i32_0 = arith.constant 0 : i32
    %c0_i32_1 = arith.constant 0 : i32
    return %c0_i32, %c0_i32_0 : i32, i32
  }
  func.func @transform_3(%arg0: i32, %arg1: i32) -> (i32, i32) {
    %c0_i32 = arith.constant 0 : i32
    %c0_i32_0 = arith.constant 0 : i32
    %c0_i32_1 = arith.constant 0 : i32
    return %c0_i32, %c0_i32_0 : i32, i32
  }
  func.func @transform_4(%arg0: i32, %arg1: i32) -> (i32, i32) {
    %c0_i32 = arith.constant 0 : i32
    %c0_i32_0 = arith.constant 0 : i32
    %c0_i32_1 = arith.constant 0 : i32
    return %c0_i32, %c0_i32_0 : i32, i32
  }
  func.func @transform_5(%arg0: i32, %arg1: i32) -> (i32, i32) {
    %0 = arith.muli %arg0, %arg1 : i32
    %c0_i32 = arith.constant 0 : i32
    %c0_i32_0 = arith.constant 0 : i32
    return %c0_i32, %0 : i32, i32
  }
  func.func @transform_6(%arg0: i32, %arg1: i32) -> (i32, i32) {
    %c0_i32 = arith.constant 0 : i32
    %c0_i32_0 = arith.constant 0 : i32
    %c0_i32_1 = arith.constant 0 : i32
    return %c0_i32, %c0_i32_0 : i32, i32
  }
  func.func @transform_7(%arg0: i32, %arg1: i32) -> (i32, i32) {
    %c0_i32 = arith.constant 0 : i32
    %c0_i32_0 = arith.constant 0 : i32
    %c0_i32_1 = arith.constant 0 : i32
    return %c0_i32, %c0_i32_0 : i32, i32
  }
  func.func @transform_8(%arg0: i32, %arg1: i32) -> (i32, i32) {
    %c0_i32 = arith.constant 0 : i32
    %c0_i32_0 = arith.constant 0 : i32
    %c0_i32_1 = arith.constant 0 : i32
    return %c0_i32, %c0_i32_0 : i32, i32
  }
}

</mosaic_0001>

<bundles_post_ra>
// kernel: tpu_custom_call.1
= control target key start
LH: loop header
LB: loop body
LE: loop exit
PB: predicated region body
PF: predicated region fallthrough
CT: control target
= control target key end

     0   :  { %13 = vsyncpa [#allocation5], 0  ;;  %s7028_s0 = inlined_call_operand.hbm [shape: bf16[512,512], index: 0, kind: input, shape index: {}]   ;;  %s7029_s1 = inlined_call_operand.hbm [shape: bf16[512,128], index: 1, kind: input, shape index: {}]   ;;  %s7030_s2 = inlined_call_operand.vmem [shape: f32[1,128], index: 2, kind: input, shape index: {}]   ;;  %s7031_s3 = inlined_call_operand.hbm [shape: bf16[128,128], index: 3, kind: input, shape index: {}]   ;;  %s7032_s4 = inlined_call_operand.vmem [shape: f32[1,128], index: 4, kind: input, shape index: {}]   ;;  %s7033_s5 = inlined_call_operand.hbm [shape: bf16[8,512], index: 5, kind: input, shape index: {}]   ;;  %s7034_s6 = inlined_call_operand.hbm [shape: bf16[128,128], index: 6, kind: input, shape index: {}]   ;;  %s7035_s7 = inlined_call_operand.vmem [shape: f32[1,128], index: 7, kind: input, shape index: {}]   ;;  %s7036_s8 = inlined_call_operand.hbm [shape: f32[8,128], index: 8, kind: output, shape index: {}]  }
   0x1   :  { %14 = vsyncpa [#allocation8], 0 }
   0x2   :  { %15 = vsyncpa [#allocation11], 0 }
   0x3   :  { %17 = vsyncpa [#allocation11 + $0x1], 0 }
   0x4   :  { %18 = vsyncpa [#allocation6], 0  ;;  %s6540_s27 = smov 0   ;;  %s6542_s28 = smov 0  }
   0x5   :  { %s6544_s29 = smov 0  }
   0x6 LB: > { %s6480_s30 = smov [#allocation7]   ;;  %s6556_s10 = sadd.s32 4294967295, %s6478_s29   ;;  %s6478_s29 = sphi %s6544_s29, %s24_s29   ;;  %s6474_s28 = sphi %s6542_s28, %s7041_s28   ;;  %s6470_s27 = sphi %s6540_s27, %s7040_s27  }
   0x7   : > { %s271_s9 = sshll.u32 %s6480_s30, 4  ;;  %p4826_p0 = scmp.ge.s32.totalorder %s6478_s29, 1  ;;  %s272_s9 = int_to_ptr.vmem [resolvable:$true] %s271_s9 }
   0x8   : > { %p242_p1 = scmp.lt.s32.totalorder %s6478_s29, 3  ;;  %p5761_p2 = scmp.eq.s32.totalorder %s6556_s10, 0 }
   0x9   : > { %s6481_s13 = smov [#allocation12]   ;;  %s6293_s15 = scalar_lea.vmem %s272_s9, 4096 }
   0xa   : > { %p6561_p3 = pnand %p4826_p0, %p242_p1  ;;  %s303_s14 = sshll.u32 %s6481_s13, 4  ;;  %s304_s14 = int_to_ptr.vmem [resolvable:$true] %s303_s14 }
   0xb   : > { %p6294_p7 = scmp.ne.s32.totalorder %s272_s9, %s6293_s15  ;;  %p6301_p10 = scmp.lt.s32.totalorder %s272_s9, %s272_s9 }
   0xc   : > { %p5744_p4 = pneg %p6561_p3  ;;  %p6302_p11 = scmp.lt.s32.totalorder %s6293_s15, %s6293_s15 }
   0xe   : > { %p6569_p5 = pnand %p5761_p2, %p5744_p4  ;;  %p6303_p12 = por %p6302_p11, %p6301_p10 }
  0x10   : > { %p6284_p6 = pneg %p6569_p5 }
  0x12   : > { %p6296_p8 = pnand %p6294_p7, %p6284_p6 }
  0x14   : > { %p6297_p9 = pneg %p6296_p8 }
  0x16   : > { %p6304_p13 = pnand %p6303_p12, %p6297_p9 }
  0x18   : > { %6307 = shalt.err (!%p6304_p13)
}
  0x19   : > { %s6482_s16 = smov 64   ;;  %s6483_s17 = smov 4  }
  0x1a   : > { %5750 = dma.hbm_to_vmem [thread:$0]  (!%p6569_p5), %s7029_s1, 4096, %s272_s9, [#allocation8], %s6482_s16, %s6482_s16, %s6483_s17  }
  0x1b   : > { %s6319_s20 = scalar_lea.vmem %s304_s14, 1024  ;;  %p6327_p7 = scmp.lt.s32.totalorder %s304_s14, %s304_s14 }
  0x1c   : > { %p6320_p0 = scmp.ne.s32.totalorder %s304_s14, %s6319_s20  ;;  %p6328_p8 = scmp.lt.s32.totalorder %s6319_s20, %s6319_s20 }
  0x1e   : > { %p6322_p1 = pnand %p6320_p0, %p6284_p6  ;;  %p6329_p9 = por %p6328_p8, %p6327_p7 }
  0x20   : > { %p6323_p4 = pneg %p6322_p1 }
  0x22   : > { %p6330_p10 = pnand %p6329_p9, %p6323_p4 }
  0x24   : > { %6333 = shalt.err (!%p6330_p10)
}
  0x25   : > { %5756 = dma.hbm_to_vmem [thread:$0]  (!%p6569_p5), %s7034_s6, 1024, %s304_s14, [#allocation11], %s6482_s16, %s6482_s16, %s6483_s17  }
  0x26   : > { %s36_s23 = sadd.s32 1, %s6474_s28  ;;  %s6484_s24 = smov [#allocation4]  }
  0x27   : > { %p38_p11 = scmp.ge.s32.totalorder %s36_s23, 2  ;;  %s258_s25 = sshll.u32 %s6484_s24, 4  ;;  %s259_s25 = int_to_ptr.vmem [resolvable:$true] %s258_s25 }
  0x28   : > { %s6345_s26 = scalar_lea.vmem %s259_s25, 16384  ;;  %p6353_p1 = scmp.lt.s32.totalorder %s259_s25, %s259_s25 }
  0x29   : > { %s7043_s23 = smov (%p38_p11, %s36_s23), 0  ;;  %p6346_p12 = scmp.ne.s32.totalorder %s259_s25, %s6345_s26 }
  0x2a   : > { %p6354_p4 = scmp.lt.s32.totalorder %s6345_s26, %s6345_s26 }
  0x2b   : > { %p6348_p13 = pnand %p6346_p12, %p6284_p6 }
  0x2c   : > { %p6355_p7 = por %p6354_p4, %p6353_p1 }
  0x2d   : > { %p6349_p0 = pneg %p6348_p13 }
  0x2f   : > { %p6356_p8 = pnand %p6355_p7, %p6349_p0 }
  0x31   : > { %6359 = shalt.err (!%p6356_p8)
}
  0x32   : > { %s6485_s30 = smov 256   ;;  %s6486_s9 = smov 16  }
  0x33   : > { %5747 = dma.hbm_to_vmem [thread:$0]  (!%p6569_p5), %s7028_s0, 16384, %s259_s25, [#allocation5], %s6485_s30, %s6485_s30, %s6486_s9  }
  0x34   : > { %p5765_p9 = scmp.lt.s32.totalorder %s6478_s29, 2  ;;  %s6487_s15 = smov [#allocation9]  }
  0x35   : > { %s287_s18 = sshll.u32 %s6487_s15, 4  ;;  %p5766_p10 = scmp.eq.s32.totalorder %s6478_s29, 0  ;;  %s288_s18 = int_to_ptr.vmem [resolvable:$true] %s287_s18 }
  0x36   : > { %s320_s19 = sand.u32 1, %s6478_s29   ;;  %s6371_s20 = scalar_lea.vmem %s288_s18, 1024 }
  0x37   : > { %p6372_p11 = scmp.ne.s32.totalorder %s288_s18, %s6371_s20  ;;  %p6379_p0 = scmp.lt.s32.totalorder %s288_s18, %s288_s18 }
  0x38   : > { %p6380_p1 = scmp.lt.s32.totalorder %s6371_s20, %s6371_s20 }
  0x39   : > { %p6374_p12 = pnand %p6372_p11, %p6284_p6 }
  0x3a   : > { %p6381_p4 = por %p6380_p1, %p6379_p0 }
  0x3b   : > { %p6375_p13 = pneg %p6374_p12 }
  0x3d   : > { %p6382_p7 = pnand %p6381_p4, %p6375_p13 }
  0x3f   : > { %6385 = shalt.err (!%p6382_p7)
}
  0x40   : > { %5753 = dma.hbm_to_vmem [thread:$0]  (!%p6569_p5), %s7031_s3, 1024, %s288_s18, [#allocation8], %s6482_s16, %s6482_s16, %s6483_s17  }
  0x41   : > { %s6488_s24 = smov [#allocation10]   ;;  %p6626_p6 = pnand %p5766_p10, %p5765_p9 }
  0x42   : > { %s333_s25 = sshll.u32 %s6488_s24, 4  ;;  %s321_s12 = scalar_lea.sflag [#allocation11], %s320_s19  ;;  %s334_s25 = int_to_ptr.vmem [resolvable:$true] %s333_s25 }
  0x43   : > { %p6388_p8 = pneg %p6626_p6  ;;  %s6397_s30 = scalar_lea.vmem %s334_s25, 256 }
  0x44   : > { %p6398_p11 = scmp.ne.s32.totalorder %s334_s25, %s6397_s30  ;;  %s6404_s9 = scalar_lea.vmem %s334_s25, 512 }
  0x45   : > { %p6405_p0 = scmp.lt.s32.totalorder %s334_s25, %s334_s25  ;;  %p6406_p5 = scmp.lt.s32.totalorder %s6404_s9, %s6397_s30 }
  0x46   : > { %p6400_p12 = pnand %p6398_p11, %p6388_p8 }
  0x47   : > { %p6407_p1 = por %p6406_p5, %p6405_p0 }
  0x48   : > { %p6401_p13 = pneg %p6400_p12 }
  0x4a   : > { %p6408_p4 = pnand %p6407_p1, %p6401_p13 }
  0x4c   : > { %6411 = shalt.err (!%p6408_p4)
}
  0x4d   : > { %5760 = dma.hbm_to_vmem [thread:$0]  (!%p6626_p6), %s7033_s5, 256, %s334_s25, %s321_s12  }
  0x4e   : > { %342 = sbr.rel (%p6561_p3) target bundleno = 1829 (0x725), region = 52 }
  0x53   : > { %6449 = dma.done.wait (%p5761_p2), [#allocation5], 16384  }
  0x54   : > { %6451 = vsyncadd (%p5761_p2), [#allocation5], 4294950912 }
  0x55   : > { %6453 = dma.done.wait (%p5761_p2), [#allocation8], 5120  }
  0x56   : > { %6455 = vsyncadd (%p5761_p2), [#allocation8], 4294962176  ;;  %s356_s13 = sand.u32 1, %s6556_s10  }
  0x57   : > { %s357_s14 = scalar_lea.sflag [#allocation11], %s356_s13 }
  0x58   : > { %6457 = dma.done.wait (%p5761_p2), %s357_s14, 256  }
  0x59   : > { %6459 = vsyncadd (%p5761_p2), %s357_s14, 4294967040 }
  0x5a   : > { %6461 = dma.done.wait (%p5761_p2), [#allocation11], 1024  }
  0x5b   : > { %6463 = vsyncadd (%p5761_p2), [#allocation11], 4294966272  ;;  %p396_p3 = scmp.eq.s32.totalorder %s6470_s27, 0 }
  0x5c   : > { %v6489_v0 = vmov (%p396_p3), 0.0  }
  0x5d   : > { %401 = sbr.rel (!%p396_p3) target bundleno = 98 (0x62), region = 76  ;;  %402 = vst [vmem:[#allocation3] sm:$0xff] (%p396_p3), %v6489_v0 }
  0x62 PF: > { %p4840_p9 = scmp.ne.s32.totalorder %s6470_s27, 0 }
  0x64   : > { %405 = sbr.rel (%p4840_p9) target bundleno = 624 (0x270), region = 80 }
  0x69   : > { %v5813_v1 = vld [vmem:[#allocation7 + $0x38] sm:$0xff]   ;;  %v6490_v2 = vmov 0   ;;  %v5815_v4 = vld [vmem:[#allocation7 + $0x30] sm:$0xff]   ;;  %v5817_v6 = vld [vmem:[#allocation7 + $0x28] sm:$0xff]  }
  0x6a   : > { %1437 = vmatprep.subr.bf16.mxu0 %v6490_v2  ;;  %1726 = vmatprep.subr.bf16.mxu1 %v6490_v2  ;;  %v5814_v3 = vld [vmem:[#allocation7 + $0xb8] sm:$0xff]   ;;  %v5816_v5 = vld [vmem:[#allocation7 + $0xb0] sm:$0xff]   ;;  %v5818_v7 = vld [vmem:[#allocation7 + $0xa8] sm:$0xff]  }
  0x6b   : > { %1438 = vmatpush1.bf16.msra.mxu0 %v5813_v1  ;;  %1727 = vmatpush1.bf16.msra.mxu1 %v5814_v3  ;;  %v5819_v8 = vld [vmem:[#allocation7 + $0x20] sm:$0xff]   ;;  %v5821_v10 = vld [vmem:[#allocation7 + $0x18] sm:$0xff]   ;;  %v5823_v12 = vld [vmem:[#allocation7 + $0x10] sm:$0xff]  }
  0x6c   : > { %1439 = vmatprep.subr.bf16.mxu0 %v6490_v2  ;;  %1728 = vmatprep.subr.bf16.mxu1 %v6490_v2  ;;  %v5820_v9 = vld [vmem:[#allocation7 + $0xa0] sm:$0xff]   ;;  %v5822_v11 = vld [vmem:[#allocation7 + $0x98] sm:$0xff]   ;;  %v5824_v13 = vld [vmem:[#allocation7 + $0x90] sm:$0xff]  }
  0x6d   : > { %v5825_v14 = vld [vmem:[#allocation7 + $0x8] sm:$0xff]   ;;  %v5827_v16 = vld [vmem:[#allocation7] sm:$0xff]   ;;  %v5829_v18 = vld [vmem:[#allocation7 + $0x78] sm:$0xff]  }
  0x6e   : > { %v5826_v15 = vld [vmem:[#allocation7 + $0x88] sm:$0xff]   ;;  %v5828_v17 = vld [vmem:[#allocation7 + $0x80] sm:$0xff]   ;;  %v5830_v19 = vld [vmem:[#allocation7 + $0xf8] sm:$0xff]  }
  0x6f   : > { %1440 = vmatpush1.bf16.msra.mxu0 %v5815_v4  ;;  %1729 = vmatpush1.bf16.msra.mxu1 %v5816_v5  ;;  %v5847_v20 = vld [vmem:[#allocation4 + $0x4] ss:$16 sps:$4 sm:$0xff]   ;;  %v5850_v22 = vld [vmem:[#allocation4 + $0xc] ss:$16 sps:$4 sm:$0xff]   ;;  %v5845_v36 = vld [vmem:[#allocation4] ss:$16 sps:$4 sm:$0xff]  }
  0x70   : > { %1441 = vmatprep.subr.bf16.mxu0 %v6490_v2  ;;  %1730 = vmatprep.subr.bf16.mxu1 %v6490_v2  ;;  %v5831_v21 = vld [vmem:[#allocation7 + $0x70] sm:$0xff]   ;;  %v5833_v24 = vld [vmem:[#allocation7 + $0x68] sm:$0xff]   ;;  %v5835_v26 = vld [vmem:[#allocation7 + $0x60] sm:$0xff]  }
  0x71   : > { %v5832_v23 = vld [vmem:[#allocation7 + $0xf0] sm:$0xff]   ;;  %1469 = vmatprep.mubr.bf16.mxu0 %v5847_v20  ;;  %1758 = vmatprep.mubr.bf16.mxu1 %v5850_v22  ;;  %v5834_v25 = vld [vmem:[#allocation7 + $0xe8] sm:$0xff]   ;;  %v5836_v27 = vld [vmem:[#allocation7 + $0xe0] sm:$0xff]  }
  0x72   : > { %v5837_v28 = vld [vmem:[#allocation7 + $0x58] sm:$0xff]   ;;  %v5839_v30 = vld [vmem:[#allocation7 + $0x50] sm:$0xff]   ;;  %v5841_v32 = vld [vmem:[#allocation7 + $0x48] sm:$0xff]  }
  0x73   : > { %1442 = vmatpush1.bf16.msra.mxu0 %v5817_v6  ;;  %1731 = vmatpush1.bf16.msra.mxu1 %v5818_v7  ;;  %v5838_v29 = vld [vmem:[#allocation7 + $0xd8] sm:$0xff]   ;;  %v5840_v31 = vld [vmem:[#allocation7 + $0xd0] sm:$0xff]   ;;  %v5842_v33 = vld [vmem:[#allocation7 + $0xc8] sm:$0xff]  }
  0x74   : > { %1443 = vmatprep.subr.bf16.mxu0 %v6490_v2  ;;  %1732 = vmatprep.subr.bf16.mxu1 %v6490_v2  ;;  %v5843_v34 = vld [vmem:[#allocation7 + $0x40] sm:$0xff]   ;;  %v5848_v37 = vld [vmem:[#allocation4 + $0x8] ss:$16 sps:$4 sm:$0xff]   ;;  %v5853_v39 = vld [vmem:[#allocation4 + $0x2c] ss:$16 sps:$4 sm:$0xff]  }
  0x75   : > { %v5844_v35 = vld [vmem:[#allocation7 + $0xc0] sm:$0xff]   ;;  %v5856_v41 = vld [vmem:[#allocation4 + $0x28] ss:$16 sps:$4 sm:$0xff]   ;;  %v5859_v43 = vld [vmem:[#allocation4 + $0x4c] ss:$16 sps:$4 sm:$0xff]  }
  0x76   : > { %v5851_v38 = vld [vmem:[#allocation4 + $0x24] ss:$16 sps:$4 sm:$0xff]   ;;  %v5855_v40 = vld [vmem:[#allocation4 + $0x20] ss:$16 sps:$4 sm:$0xff]   ;;  %v5862_v45 = vld [vmem:[#allocation4 + $0x48] ss:$16 sps:$4 sm:$0xff]  }
  0x77   : > { %1444 = vmatpush1.bf16.msra.mxu0 %v5819_v8  ;;  %1733 = vmatpush1.bf16.msra.mxu1 %v5820_v9  ;;  %v5857_v42 = vld [vmem:[#allocation4 + $0x44] ss:$16 sps:$4 sm:$0xff]   ;;  %v5861_v44 = vld [vmem:[#allocation4 + $0x40] ss:$16 sps:$4 sm:$0xff]   ;;  %v5865_v47 = vld [vmem:[#allocation4 + $0x6c] ss:$16 sps:$4 sm:$0xff]  }
  0x78   : > { %1445 = vmatprep.subr.bf16.mxu0 %v6490_v2  ;;  %1734 = vmatprep.subr.bf16.mxu1 %v6490_v2  ;;  %v5863_v46 = vld [vmem:[#allocation4 + $0x64] ss:$16 sps:$4 sm:$0xff]   ;;  %v5867_v48 = vld [vmem:[#allocation4 + $0x60] ss:$16 sps:$4 sm:$0xff]   ;;  %v5868_v49 = vld [vmem:[#allocation4 + $0x68] ss:$16 sps:$4 sm:$0xff]  }
  0x79   : > { %v5869_v50 = vld [vmem:[#allocation4 + $0x84] ss:$16 sps:$4 sm:$0xff]   ;;  %v5871_v51 = vld [vmem:[#allocation4 + $0x8c] ss:$16 sps:$4 sm:$0xff]   ;;  %v5873_v52 = vld [vmem:[#allocation4 + $0x80] ss:$16 sps:$4 sm:$0xff]  }
  0x7a   : > { %v5874_v53 = vld [vmem:[#allocation4 + $0x88] ss:$16 sps:$4 sm:$0xff]   ;;  %v5875_v54 = vld [vmem:[#allocation4 + $0xa4] ss:$16 sps:$4 sm:$0xff]   ;;  %v5877_v55 = vld [vmem:[#allocation4 + $0xac] ss:$16 sps:$4 sm:$0xff]  }
  0x7b   : > { %1446 = vmatpush1.bf16.msra.mxu0 %v5821_v10  ;;  %1735 = vmatpush1.bf16.msra.mxu1 %v5822_v11  ;;  %v5879_v56 = vld [vmem:[#allocation4 + $0xa0] ss:$16 sps:$4 sm:$0xff]   ;;  %v5880_v57 = vld [vmem:[#allocation4 + $0xa8] ss:$16 sps:$4 sm:$0xff]   ;;  %v5881_v58 = vld [vmem:[#allocation4 + $0xc4] ss:$16 sps:$4 sm:$0xff]  }
  0x7c   : > { %1447 = vmatprep.subr.bf16.mxu0 %v6490_v2  ;;  %1736 = vmatprep.subr.bf16.mxu1 %v6490_v2  ;;  %v5883_v59 = vld [vmem:[#allocation4 + $0xcc] ss:$16 sps:$4 sm:$0xff]   ;;  %v5885_v60 = vld [vmem:[#allocation4 + $0xc0] ss:$16 sps:$4 sm:$0xff]   ;;  %v5886_v61 = vld [vmem:[#allocation4 + $0xc8] ss:$16 sps:$4 sm:$0xff]  }
  0x7d   : > { %v5887_v62 = vld [vmem:[#allocation4 + $0xe4] ss:$16 sps:$4 sm:$0xff]   ;;  %v5889_v63 = vld [vmem:[#allocation4 + $0xec] ss:$16 sps:$4 sm:$0xff]   ;;  %v5891_v0 = vld [vmem:[#allocation4 + $0xe0] ss:$16 sps:$4 sm:$0xff]  }
  0x7e   : > { %v5892_v1 = vld [vmem:[#allocation4 + $0xe8] ss:$16 sps:$4 sm:$0xff]   ;;  %v5895_v3 = vld [vmem:[#allocation4 + $0x10c] ss:$16 sps:$4 sm:$0xff]   ;;  %v5897_v4 = vld [vmem:[#allocation4 + $0x100] ss:$16 sps:$4 sm:$0xff]  }
  0x7f   : > { %1448 = vmatpush1.bf16.msra.mxu0 %v5823_v12  ;;  %1737 = vmatpush1.bf16.msra.mxu1 %v5824_v13  ;;  %v5898_v5 = vld [vmem:[#allocation4 + $0x108] ss:$16 sps:$4 sm:$0xff]   ;;  %v5899_v6 = vld [vmem:[#allocation4 + $0x124] ss:$16 sps:$4 sm:$0xff]   ;;  %v5901_v7 = vld [vmem:[#allocation4 + $0x12c] ss:$16 sps:$4 sm:$0xff]  }
  0x80   : > { %1449 = vmatprep.subr.bf16.mxu0 %v6490_v2  ;;  %1738 = vmatprep.subr.bf16.mxu1 %v6490_v2  ;;  %v5903_v8 = vld [vmem:[#allocation4 + $0x120] ss:$16 sps:$4 sm:$0xff]   ;;  %v5904_v9 = vld [vmem:[#allocation4 + $0x128] ss:$16 sps:$4 sm:$0xff]   ;;  %v5905_v10 = vld [vmem:[#allocation4 + $0x144] ss:$16 sps:$4 sm:$0xff]  }
  0x81   : > { %v5907_v11 = vld [vmem:[#allocation4 + $0x14c] ss:$16 sps:$4 sm:$0xff]   ;;  %v5909_v12 = vld [vmem:[#allocation4 + $0x140] ss:$16 sps:$4 sm:$0xff]   ;;  %v5910_v13 = vld [vmem:[#allocation4 + $0x148] ss:$16 sps:$4 sm:$0xff]  }
  0x82   : > { %v5921_v20 = vld [vmem:[#allocation4 + $0x180] ss:$16 sps:$4 sm:$0xff]   ;;  %v5923_v22 = vld [vmem:[#allocation4 + $0x1a4] ss:$16 sps:$4 sm:$0xff]  }
  0x83   : > { %1450 = vmatpush1.bf16.msra.mxu0 %v5825_v14  ;;  %1739 = vmatpush1.bf16.msra.mxu1 %v5826_v15  ;;  %v5911_v14 = vld [vmem:[#allocation4 + $0x164] ss:$16 sps:$4 sm:$0xff]   ;;  %v5913_v15 = vld [vmem:[#allocation4 + $0x16c] ss:$16 sps:$4 sm:$0xff]  }
  0x84   : > { %1451 = vmatprep.subr.bf16.mxu0 %v6490_v2  ;;  %1740 = vmatprep.subr.bf16.mxu1 %v6490_v2 }
  0x87   : > { %1452 = vmatpush1.bf16.msra.mxu0 %v5827_v16  ;;  %1741 = vmatpush1.bf16.msra.mxu1 %v5828_v17  ;;  %v5915_v16 = vld [vmem:[#allocation4 + $0x160] ss:$16 sps:$4 sm:$0xff]   ;;  %v5916_v17 = vld [vmem:[#allocation4 + $0x168] ss:$16 sps:$4 sm:$0xff]  }
  0x88   : > { %1453 = vmatprep.subr.bf16.mxu0 %v6490_v2  ;;  %1742 = vmatprep.subr.bf16.mxu1 %v6490_v2 }
  0x8b   : > { %1454 = vmatpush2.bf16.msra.mxu0 %v5829_v18  ;;  %1743 = vmatpush2.bf16.msra.mxu1 %v5830_v19  ;;  %v5917_v18 = vld [vmem:[#allocation4 + $0x184] ss:$16 sps:$4 sm:$0xff]   ;;  %v5919_v19 = vld [vmem:[#allocation4 + $0x18c] ss:$16 sps:$4 sm:$0xff]  }
  0x8c   : > { %1455 = vmatprep.subr.bf16.mxu0 %v6490_v2  ;;  %1744 = vmatprep.subr.bf16.mxu1 %v6490_v2 }
  0x8f   : > { %1456 = vmatpush2.bf16.msra.mxu0 %v5831_v21  ;;  %1745 = vmatpush2.bf16.msra.mxu1 %v5832_v23  ;;  %v5922_v21 = vld [vmem:[#allocation4 + $0x188] ss:$16 sps:$4 sm:$0xff]   ;;  %v5925_v23 = vld [vmem:[#allocation4 + $0x1ac] ss:$16 sps:$4 sm:$0xff]  }
  0x90   : > { %1457 = vmatprep.subr.bf16.mxu0 %v6490_v2  ;;  %1746 = vmatprep.subr.bf16.mxu1 %v6490_v2 }
  0x93   : > { %1458 = vmatpush2.bf16.msra.mxu0 %v5833_v24  ;;  %1747 = vmatpush2.bf16.msra.mxu1 %v5834_v25  ;;  %v5927_v24 = vld [vmem:[#allocation4 + $0x1a0] ss:$16 sps:$4 sm:$0xff]   ;;  %v5928_v25 = vld [vmem:[#allocation4 + $0x1a8] ss:$16 sps:$4 sm:$0xff]  }
  0x94   : > { %1459 = vmatprep.subr.bf16.mxu0 %v6490_v2  ;;  %1748 = vmatprep.subr.bf16.mxu1 %v6490_v2 }
  0x97   : > { %1460 = vmatpush2.bf16.msra.mxu0 %v5835_v26  ;;  %1749 = vmatpush2.bf16.msra.mxu1 %v5836_v27  ;;  %v5929_v26 = vld [vmem:[#allocation4 + $0x1c4] ss:$16 sps:$4 sm:$0xff]   ;;  %v5931_v27 = vld [vmem:[#allocation4 + $0x1cc] ss:$16 sps:$4 sm:$0xff]  }
  0x98   : > { %1461 = vmatprep.subr.bf16.mxu0 %v6490_v2  ;;  %1750 = vmatprep.subr.bf16.mxu1 %v6490_v2 }
  0x9b   : > { %1462 = vmatpush2.bf16.msra.mxu0 %v5837_v28  ;;  %1751 = vmatpush2.bf16.msra.mxu1 %v5838_v29  ;;  %v5933_v28 = vld [vmem:[#allocation4 + $0x1c0] ss:$16 sps:$4 sm:$0xff]   ;;  %v5934_v29 = vld [vmem:[#allocation4 + $0x1c8] ss:$16 sps:$4 sm:$0xff]  }
  0x9c   : > { %1463 = vmatprep.subr.bf16.mxu0 %v6490_v2  ;;  %1752 = vmatprep.subr.bf16.mxu1 %v6490_v2 }
  0x9f   : > { %1464 = vmatpush2.bf16.msra.mxu0 %v5839_v30  ;;  %1753 = vmatpush2.bf16.msra.mxu1 %v5840_v31  ;;  %v5935_v30 = vld [vmem:[#allocation4 + $0x1e4] ss:$16 sps:$4 sm:$0xff]   ;;  %v5937_v31 = vld [vmem:[#allocation4 + $0x1ec] ss:$16 sps:$4 sm:$0xff]  }
  0xa0   : > { %1465 = vmatprep.subr.bf16.mxu0 %v6490_v2  ;;  %1754 = vmatprep.subr.bf16.mxu1 %v6490_v2 }
  0xa3   : > { %1466 = vmatpush2.bf16.msra.mxu0 %v5841_v32  ;;  %1755 = vmatpush2.bf16.msra.mxu1 %v5842_v33  ;;  %v5939_v32 = vld [vmem:[#allocation4 + $0x1e0] ss:$16 sps:$4 sm:$0xff]   ;;  %v5940_v33 = vld [vmem:[#allocation4 + $0x1e8] ss:$16 sps:$4 sm:$0xff]  }
  0xa4   : > { %1467 = vmatprep.subr.bf16.mxu0 %v6490_v2  ;;  %1756 = vmatprep.subr.bf16.mxu1 %v6490_v2  ;;  %v5893_v2 = vld [vmem:[#allocation4 + $0x104] ss:$16 sps:$4 sm:$0xff]  }
  0xa7   : > { %1468 = vmatpush2.bf16.msra.mxu0 %v5843_v34  ;;  %1757 = vmatpush2.bf16.msra.mxu1 %v5844_v35  ;;  %v5941_v34 = vld [vmem:[#allocation4 + $0x204] ss:$16 sps:$4 sm:$0xff]   ;;  %v5943_v35 = vld [vmem:[#allocation4 + $0x20c] ss:$16 sps:$4 sm:$0xff]  }
  0xaa   : > { %1470 = vmatmul.mubr.bf16.vlgmr.msra.gmra.mxu0 %v5845_v36  ;;  %1759 = vmatmul.mubr.bf16.vlgmr.msra.gmra.mxu1 %v5848_v37  ;;  %v5945_v36 = vld [vmem:[#allocation4 + $0x200] ss:$16 sps:$4 sm:$0xff]   ;;  %v5946_v37 = vld [vmem:[#allocation4 + $0x208] ss:$16 sps:$4 sm:$0xff]  }
  0xab   : > { %1477 = vmatprep.mubr.bf16.mxu0 %v5851_v38  ;;  %1766 = vmatprep.mubr.bf16.mxu1 %v5853_v39  ;;  %v5947_v38 = vld [vmem:[#allocation4 + $0x224] ss:$16 sps:$4 sm:$0xff]   ;;  %v5949_v39 = vld [vmem:[#allocation4 + $0x22c] ss:$16 sps:$4 sm:$0xff]  }
  0xb2   : > { %1478 = vmatmul.mubr.bf16.gmra.mxu0 %v5855_v40  ;;  %1767 = vmatmul.mubr.bf16.gmra.mxu1 %v5856_v41  ;;  %v5951_v40 = vld [vmem:[#allocation4 + $0x220] ss:$16 sps:$4 sm:$0xff]   ;;  %v5952_v41 = vld [vmem:[#allocation4 + $0x228] ss:$16 sps:$4 sm:$0xff]  }
  0xb3   : > { %1485 = vmatprep.mubr.bf16.mxu0 %v5857_v42  ;;  %1774 = vmatprep.mubr.bf16.mxu1 %v5859_v43  ;;  %v5953_v42 = vld [vmem:[#allocation4 + $0x244] ss:$16 sps:$4 sm:$0xff]   ;;  %v5955_v43 = vld [vmem:[#allocation4 + $0x24c] ss:$16 sps:$4 sm:$0xff]  }
  0xba   : > { %1486 = vmatmul.mubr.bf16.gmra.mxu0 %v5861_v44  ;;  %1775 = vmatmul.mubr.bf16.gmra.mxu1 %v5862_v45  ;;  %v5957_v44 = vld [vmem:[#allocation4 + $0x240] ss:$16 sps:$4 sm:$0xff]   ;;  %v5958_v45 = vld [vmem:[#allocation4 + $0x248] ss:$16 sps:$4 sm:$0xff]  }
  0xbb   : > { %1493 = vmatprep.mubr.bf16.mxu0 %v5863_v46  ;;  %1782 = vmatprep.mubr.bf16.mxu1 %v5865_v47  ;;  %v5959_v46 = vld [vmem:[#allocation4 + $0x264] ss:$16 sps:$4 sm:$0xff]   ;;  %v5961_v47 = vld [vmem:[#allocation4 + $0x26c] ss:$16 sps:$4 sm:$0xff]  }
  0xc2   : > { %1494 = vmatmul.mubr.bf16.gmra.mxu0 %v5867_v48  ;;  %1783 = vmatmul.mubr.bf16.gmra.mxu1 %v5868_v49  ;;  %v5963_v48 = vld [vmem:[#allocation4 + $0x260] ss:$16 sps:$4 sm:$0xff]   ;;  %v5964_v49 = vld [vmem:[#allocation4 + $0x268] ss:$16 sps:$4 sm:$0xff]  }
  0xc3   : > { %1501 = vmatprep.mubr.bf16.mxu0 %v5869_v50  ;;  %1790 = vmatprep.mubr.bf16.mxu1 %v5871_v51  ;;  %v5965_v50 = vld [vmem:[#allocation4 + $0x284] ss:$16 sps:$4 sm:$0xff]   ;;  %v5967_v51 = vld [vmem:[#allocation4 + $0x28c] ss:$16 sps:$4 sm:$0xff]  }
  0xca   : > { %1502 = vmatmul.mubr.bf16.gmra.mxu0 %v5873_v52  ;;  %1791 = vmatmul.mubr.bf16.gmra.mxu1 %v5874_v53  ;;  %v5969_v52 = vld [vmem:[#allocation4 + $0x280] ss:$16 sps:$4 sm:$0xff]   ;;  %v5970_v53 = vld [vmem:[#allocation4 + $0x288] ss:$16 sps:$4 sm:$0xff]  }
  0xcb   : > { %1509 = vmatprep.mubr.bf16.mxu0 %v5875_v54  ;;  %1798 = vmatprep.mubr.bf16.mxu1 %v5877_v55  ;;  %v5971_v54 = vld [vmem:[#allocation4 + $0x2a4] ss:$16 sps:$4 sm:$0xff]   ;;  %v5973_v55 = vld [vmem:[#allocation4 + $0x2ac] ss:$16 sps:$4 sm:$0xff]  }
  0xd2   : > { %1510 = vmatmul.mubr.bf16.gmra.mxu0 %v5879_v56  ;;  %1799 = vmatmul.mubr.bf16.gmra.mxu1 %v5880_v57  ;;  %v5975_v56 = vld [vmem:[#allocation4 + $0x2a0] ss:$16 sps:$4 sm:$0xff]   ;;  %v5976_v57 = vld [vmem:[#allocation4 + $0x2a8] ss:$16 sps:$4 sm:$0xff]  }
  0xd3   : > { %1517 = vmatprep.mubr.bf16.mxu0 %v5881_v58  ;;  %1806 = vmatprep.mubr.bf16.mxu1 %v5883_v59  ;;  %v5977_v58 = vld [vmem:[#allocation4 + $0x2c4] ss:$16 sps:$4 sm:$0xff]   ;;  %v5979_v59 = vld [vmem:[#allocation4 + $0x2cc] ss:$16 sps:$4 sm:$0xff]  }
  0xda   : > { %1518 = vmatmul.mubr.bf16.gmra.mxu0 %v5885_v60  ;;  %1807 = vmatmul.mubr.bf16.gmra.mxu1 %v5886_v61  ;;  %v5981_v60 = vld [vmem:[#allocation4 + $0x2c0] ss:$16 sps:$4 sm:$0xff]   ;;  %v5982_v61 = vld [vmem:[#allocation4 + $0x2c8] ss:$16 sps:$4 sm:$0xff]  }
  0xdb   : > { %1525 = vmatprep.mubr.bf16.mxu0 %v5887_v62  ;;  %1814 = vmatprep.mubr.bf16.mxu1 %v5889_v63  ;;  %v5983_v62 = vld [vmem:[#allocation4 + $0x2e4] ss:$16 sps:$4 sm:$0xff]   ;;  %v5985_v63 = vld [vmem:[#allocation4 + $0x2ec] ss:$16 sps:$4 sm:$0xff]  }
  0xe2   : > { %1526 = vmatmul.mubr.bf16.gmra.mxu0 %v5891_v0  ;;  %1815 = vmatmul.mubr.bf16.gmra.mxu1 %v5892_v1  ;;  %v5987_v0 = vld [vmem:[#allocation4 + $0x2e0] ss:$16 sps:$4 sm:$0xff]   ;;  %v5988_v1 = vld [vmem:[#allocation4 + $0x2e8] ss:$16 sps:$4 sm:$0xff]  }
  0xe3   : > { %1533 = vmatprep.mubr.bf16.mxu0 %v5893_v2  ;;  %1822 = vmatprep.mubr.bf16.mxu1 %v5895_v3  ;;  %v5989_v2 = vld [vmem:[#allocation4 + $0x304] ss:$16 sps:$4 sm:$0xff]   ;;  %v5991_v3 = vld [vmem:[#allocation4 + $0x30c] ss:$16 sps:$4 sm:$0xff]  }
  0xea   : > { %1534 = vmatmul.mubr.bf16.gmra.mxu0 %v5897_v4  ;;  %1823 = vmatmul.mubr.bf16.gmra.mxu1 %v5898_v5  ;;  %v5993_v4 = vld [vmem:[#allocation4 + $0x300] ss:$16 sps:$4 sm:$0xff]   ;;  %v5994_v5 = vld [vmem:[#allocation4 + $0x308] ss:$16 sps:$4 sm:$0xff]  }
  0xeb   : > { %1541 = vmatprep.mubr.bf16.mxu0 %v5899_v6  ;;  %1830 = vmatprep.mubr.bf16.mxu1 %v5901_v7  ;;  %v5995_v6 = vld [vmem:[#allocation4 + $0x324] ss:$16 sps:$4 sm:$0xff]   ;;  %v6693_v7 = vld [vmem:[%s7030_s2] ss:$0 sm:$0xff] }
  0xf2   : > { %1542 = vmatmul.mubr.bf16.gmra.mxu0 %v5903_v8  ;;  %1831 = vmatmul.mubr.bf16.gmra.mxu1 %v5904_v9  ;;  %v5997_v8 = vld [vmem:[#allocation4 + $0x32c] ss:$16 sps:$4 sm:$0xff]  }
  0xf3   : > { %1549 = vmatprep.mubr.bf16.mxu0 %v5905_v10  ;;  %1838 = vmatprep.mubr.bf16.mxu1 %v5907_v11 }
  0xfa   : > { %1550 = vmatmul.mubr.bf16.gmra.mxu0 %v5909_v12  ;;  %1839 = vmatmul.mubr.bf16.gmra.mxu1 %v5910_v13 }
  0xfb   : > { %1557 = vmatprep.mubr.bf16.mxu0 %v5911_v14  ;;  %1846 = vmatprep.mubr.bf16.mxu1 %v5913_v15  ;;  %v5999_v15 = vld [vmem:[#allocation4 + $0x320] ss:$16 sps:$4 sm:$0xff]  }
 0x102   : > { %1558 = vmatmul.mubr.bf16.gmra.mxu0 %v5915_v16  ;;  %1847 = vmatmul.mubr.bf16.gmra.mxu1 %v5916_v17 }
 0x103   : > { %1565 = vmatprep.mubr.bf16.mxu0 %v5917_v18  ;;  %1854 = vmatprep.mubr.bf16.mxu1 %v5919_v19  ;;  %v6000_v19 = vld [vmem:[#allocation4 + $0x328] ss:$16 sps:$4 sm:$0xff]  }
 0x10a   : > { %1566 = vmatmul.mubr.bf16.gmra.mxu0 %v5921_v20  ;;  %1855 = vmatmul.mubr.bf16.gmra.mxu1 %v5922_v21  ;;  %v6001_v20 = vld [vmem:[#allocation4 + $0x344] ss:$16 sps:$4 sm:$0xff]  }
 0x10b   : > { %1573 = vmatprep.mubr.bf16.mxu0 %v5923_v22  ;;  %1862 = vmatprep.mubr.bf16.mxu1 %v5925_v23  ;;  %v6003_v22 = vld [vmem:[#allocation4 + $0x34c] ss:$16 sps:$4 sm:$0xff]  }
 0x112   : > { %1574 = vmatmul.mubr.bf16.gmra.mxu0 %v5927_v24  ;;  %1863 = vmatmul.mubr.bf16.gmra.mxu1 %v5928_v25 }
 0x113   : > { %1581 = vmatprep.mubr.bf16.mxu0 %v5929_v26  ;;  %1870 = vmatprep.mubr.bf16.mxu1 %v5931_v27 }
 0x11a   : > { %1582 = vmatmul.mubr.bf16.gmra.mxu0 %v5933_v28  ;;  %1871 = vmatmul.mubr.bf16.gmra.mxu1 %v5934_v29 }
 0x11b   : > { %1589 = vmatprep.mubr.bf16.mxu0 %v5935_v30  ;;  %1878 = vmatprep.mubr.bf16.mxu1 %v5937_v31 }
 0x122   : > { %1590 = vmatmul.mubr.bf16.gmra.mxu0 %v5939_v32  ;;  %1879 = vmatmul.mubr.bf16.gmra.mxu1 %v5940_v33 }
 0x123   : > { %1597 = vmatprep.mubr.bf16.mxu0 %v5941_v34  ;;  %1886 = vmatprep.mubr.bf16.mxu1 %v5943_v35  ;;  %v6005_v34 = vld [vmem:[#allocation4 + $0x340] ss:$16 sps:$4 sm:$0xff]  }
 0x12a   : > { %1598 = vmatmul.mubr.bf16.gmra.mxu0 %v5945_v36  ;;  %1887 = vmatmul.mubr.bf16.gmra.mxu1 %v5946_v37 }
 0x12b   : > { %1605 = vmatprep.mubr.bf16.mxu0 %v5947_v38  ;;  %1894 = vmatprep.mubr.bf16.mxu1 %v5949_v39  ;;  %v6006_v38 = vld [vmem:[#allocation4 + $0x348] ss:$16 sps:$4 sm:$0xff]   ;;  %v6007_v39 = vld [vmem:[#allocation4 + $0x364] ss:$16 sps:$4 sm:$0xff]  }
 0x132   : > { %1606 = vmatmul.mubr.bf16.gmra.mxu0 %v5951_v40  ;;  %1895 = vmatmul.mubr.bf16.gmra.mxu1 %v5952_v41  ;;  %v6009_v41 = vld [vmem:[#allocation4 + $0x36c] ss:$16 sps:$4 sm:$0xff]  }
 0x133   : > { %1613 = vmatprep.mubr.bf16.mxu0 %v5953_v42  ;;  %1902 = vmatprep.mubr.bf16.mxu1 %v5955_v43 }
 0x13a   : > { %1614 = vmatmul.mubr.bf16.gmra.mxu0 %v5957_v44  ;;  %1903 = vmatmul.mubr.bf16.gmra.mxu1 %v5958_v45 }
 0x13b   : > { %1621 = vmatprep.mubr.bf16.mxu0 %v5959_v46  ;;  %1910 = vmatprep.mubr.bf16.mxu1 %v5961_v47 }
 0x142   : > { %1622 = vmatmul.mubr.bf16.gmra.mxu0 %v5963_v48  ;;  %1911 = vmatmul.mubr.bf16.gmra.mxu1 %v5964_v49 }
 0x143   : > { %1629 = vmatprep.mubr.bf16.mxu0 %v5965_v50  ;;  %1918 = vmatprep.mubr.bf16.mxu1 %v5967_v51 }
 0x14a   : > { %1630 = vmatmul.mubr.bf16.gmra.mxu0 %v5969_v52  ;;  %1919 = vmatmul.mubr.bf16.gmra.mxu1 %v5970_v53  ;;  %v6011_v53 = vld [vmem:[#allocation4 + $0x360] ss:$16 sps:$4 sm:$0xff]  }
 0x14b   : > { %1637 = vmatprep.mubr.bf16.mxu0 %v5971_v54  ;;  %1926 = vmatprep.mubr.bf16.mxu1 %v5973_v55 }
 0x152   : > { %1638 = vmatmul.mubr.bf16.gmra.mxu0 %v5975_v56  ;;  %1927 = vmatmul.mubr.bf16.gmra.mxu1 %v5976_v57  ;;  %v6012_v57 = vld [vmem:[#allocation4 + $0x368] ss:$16 sps:$4 sm:$0xff]  }
 0x153   : > { %1645 = vmatprep.mubr.bf16.mxu0 %v5977_v58  ;;  %1934 = vmatprep.mubr.bf16.mxu1 %v5979_v59  ;;  %v6015_v58 = vld [vmem:[#allocation4 + $0x384] ss:$16 sps:$4 sm:$0xff]  }
 0x15a   : > { %1646 = vmatmul.mubr.bf16.gmra.mxu0 %v5981_v60  ;;  %1935 = vmatmul.mubr.bf16.gmra.mxu1 %v5982_v61  ;;  %v6018_v60 = vld [vmem:[#allocation4 + $0x38c] ss:$16 sps:$4 sm:$0xff]  }
 0x15b   : > { %1653 = vmatprep.mubr.bf16.mxu0 %v5983_v62  ;;  %1942 = vmatprep.mubr.bf16.mxu1 %v5985_v63 }
 0x162   : > { %1654 = vmatmul.mubr.bf16.gmra.mxu0 %v5987_v0  ;;  %1943 = vmatmul.mubr.bf16.gmra.mxu1 %v5988_v1 }
 0x163   : > { %1661 = vmatprep.mubr.bf16.mxu0 %v5989_v2  ;;  %1950 = vmatprep.mubr.bf16.mxu1 %v5991_v3 }
 0x16a   : > { %v1471_v9 = vpop.f32.mrf.mxu0  ;;  %1662 = vmatmul.mubr.bf16.gmra.mxu0 %v5993_v4  ;;  %v1760_v11 = vpop.f32.mrf.mxu1  ;;  %1951 = vmatmul.mubr.bf16.gmra.mxu1 %v5994_v5 }
 0x16b   : > { %v1472_v10 = vadd.f32 %v6693_v7, %v1471_v9  ;;  %1669 = vmatprep.mubr.bf16.mxu0 %v5995_v6  ;;  %1958 = vmatprep.mubr.bf16.mxu1 %v5997_v8  ;;  %v6013_v9 = vld [vmem:[#allocation4 + $0x380] ss:$16 sps:$4 sm:$0xff]  }
 0x16c   : > { %v1473_v12 = vpop.f32.mrf.mxu0  ;;  %v1762_v13 = vpop.f32.mrf.mxu1 }
 0x16d   : > { %v1761_v16 = vadd.f32 %v1760_v11, %v1472_v10  ;;  %v6016_v13 = vld [vmem:[#allocation4 + $0x388] ss:$16 sps:$4 sm:$0xff]  }
 0x16e   : > { %v1474_v14 = vpop.f32.mrf.mxu0  ;;  %v1763_v18 = vpop.f32.mrf.mxu1 }
 0x16f   : > { %v1475_v17 = vadd.f32 %v6693_v7, %v1474_v14  ;;  %v2015_v26 = vmax.f32 %v1761_v16, 0.0  ;;  %v6021_v14 = vld [vmem:[#allocation4 + $0x3a4] ss:$16 sps:$4 sm:$0xff]   ;;  %v6024_v16 = vld [vmem:[#allocation4 + $0x3ac] ss:$16 sps:$4 sm:$0xff]  }
 0x170   : > { %v1476_v21 = vpop.f32.mrf.mxu0  ;;  %v1765_v24 = vpop.f32.mrf.mxu1 }
 0x171   : > { %v1764_v23 = vadd.f32 %v1763_v18, %v1475_v17 }
 0x172   : > { %v1479_v25 = vpop.f32.mrf.mxu0  ;;  %1670 = vmatmul.mubr.bf16.gmra.mxu0 %v5999_v15  ;;  %v1768_v29 = vpop.f32.mrf.mxu1  ;;  %1959 = vmatmul.mubr.bf16.gmra.mxu1 %v6000_v19 }
 0x173   : > { %v2016_v27 = vmax.f32 %v1764_v23, 0.0  ;;  %v1480_v28 = vadd.f32 %v6693_v7, %v1479_v25  ;;  %1677 = vmatprep.mubr.bf16.mxu0 %v6001_v20  ;;  %1966 = vmatprep.mubr.bf16.mxu1 %v6003_v22 }
 0x174   : > { %v1481_v30 = vpop.f32.mrf.mxu0  ;;  %v1770_v32 = vpop.f32.mrf.mxu1 }
 0x175   : > { %v5323_v31 = vpack.c.bf16 %v2016_v27, %v2015_v26  ;;  %v1769_v35 = vadd.f32 %v1768_v29, %v1480_v28  ;;  %v6019_v28 = vld [vmem:[#allocation4 + $0x3a0] ss:$16 sps:$4 sm:$0xff]   ;;  %v6022_v32 = vld [vmem:[#allocation4 + $0x3a8] ss:$16 sps:$4 sm:$0xff]  }
 0x176   : > { %v1482_v33 = vpop.f32.mrf.mxu0  ;;  %v1771_v37 = vpop.f32.mrf.mxu1 }
 0x177   : > { %5324 = vst [vmem:[#allocation2] sm:$0xff] %v5323_v31   ;;  %v1483_v36 = vadd.f32 %v6693_v7, %v1482_v33  ;;  %v2017_v45 = vmax.f32 %v1769_v35, 0.0  ;;  %v6027_v33 = vld [vmem:[#allocation4 + $0x3c4] ss:$16 sps:$4 sm:$0xff]   ;;  %v6030_v35 = vld [vmem:[#allocation4 + $0x3cc] ss:$16 sps:$4 sm:$0xff]  }
 0x178   : > { %v1484_v40 = vpop.f32.mrf.mxu0  ;;  %v1773_v43 = vpop.f32.mrf.mxu1 }
 0x179   : > { %v1772_v42 = vadd.f32 %v1771_v37, %v1483_v36 }
 0x17a   : > { %v1487_v44 = vpop.f32.mrf.mxu0  ;;  %1678 = vmatmul.mubr.bf16.gmra.mxu0 %v6005_v34  ;;  %v1776_v48 = vpop.f32.mrf.mxu1  ;;  %1967 = vmatmul.mubr.bf16.gmra.mxu1 %v6006_v38 }
 0x17b   : > { %v2018_v46 = vmax.f32 %v1772_v42, 0.0  ;;  %v1488_v47 = vadd.f32 %v6693_v7, %v1487_v44  ;;  %1685 = vmatprep.mubr.bf16.mxu0 %v6007_v39  ;;  %1974 = vmatprep.mubr.bf16.mxu1 %v6009_v41 }
 0x17c   : > { %v1489_v49 = vpop.f32.mrf.mxu0  ;;  %v1778_v51 = vpop.f32.mrf.mxu1 }
 0x17d   : > { %v5328_v50 = vpack.c.bf16 %v2018_v46, %v2017_v45  ;;  %v1777_v54 = vadd.f32 %v1776_v48, %v1488_v47  ;;  %v6025_v47 = vld [vmem:[#allocation4 + $0x3c0] ss:$16 sps:$4 sm:$0xff]   ;;  %v6028_v51 = vld [vmem:[#allocation4 + $0x3c8] ss:$16 sps:$4 sm:$0xff]  }
 0x17e   : > { %v1490_v52 = vpop.f32.mrf.mxu0  ;;  %v1779_v56 = vpop.f32.mrf.mxu1 }
 0x17f   : > { %5480 = vst [vmem:[#allocation2 + $0x8] sm:$0xff] %v5328_v50   ;;  %v1491_v55 = vadd.f32 %v6693_v7, %v1490_v52  ;;  %v2019_v0 = vmax.f32 %v1777_v54, 0.0  ;;  %v6033_v52 = vld [vmem:[#allocation4 + $0x3e4] ss:$16 sps:$4 sm:$0xff]   ;;  %v6036_v54 = vld [vmem:[#allocation4 + $0x3ec] ss:$16 sps:$4 sm:$0xff]  }
 0x180   : > { %v1492_v59 = vpop.f32.mrf.mxu0  ;;  %v1781_v62 = vpop.f32.mrf.mxu1 }
 0x181   : > { %v1780_v61 = vadd.f32 %v1779_v56, %v1491_v55 }
 0x182   : > { %v1495_v63 = vpop.f32.mrf.mxu0  ;;  %1686 = vmatmul.mubr.bf16.gmra.mxu0 %v6011_v53  ;;  %v1784_v3 = vpop.f32.mrf.mxu1  ;;  %1975 = vmatmul.mubr.bf16.gmra.mxu1 %v6012_v57 }
 0x183   : > { %v2020_v1 = vmax.f32 %v1780_v61, 0.0  ;;  %v1496_v2 = vadd.f32 %v6693_v7, %v1495_v63  ;;  %1693 = vmatprep.mubr.bf16.mxu0 %v6015_v58  ;;  %1982 = vmatprep.mubr.bf16.mxu1 %v6018_v60 }
 0x184   : > { %v1497_v4 = vpop.f32.mrf.mxu0  ;;  %v1786_v6 = vpop.f32.mrf.mxu1 }
 0x185   : > { %v5333_v5 = vpack.c.bf16 %v2020_v1, %v2019_v0  ;;  %v1785_v10 = vadd.f32 %v1784_v3, %v1496_v2  ;;  %v6031_v2 = vld [vmem:[#allocation4 + $0x3e0] ss:$16 sps:$4 sm:$0xff]   ;;  %v6034_v6 = vld [vmem:[#allocation4 + $0x3e8] ss:$16 sps:$4 sm:$0xff]  }
 0x186   : > { %v1498_v8 = vpop.f32.mrf.mxu0  ;;  %v1787_v12 = vpop.f32.mrf.mxu1 }
 0x187   : > { %5481 = vst [vmem:[#allocation2 + $0x10] sm:$0xff] %v5333_v5   ;;  %v1499_v11 = vadd.f32 %v6693_v7, %v1498_v8  ;;  %v2021_v20 = vmax.f32 %v1785_v10, 0.0 }
 0x188   : > { %v1500_v15 = vpop.f32.mrf.mxu0  ;;  %v1789_v18 = vpop.f32.mrf.mxu1 }
 0x189   : > { %v1788_v17 = vadd.f32 %v1787_v12, %v1499_v11 }
 0x18a   : > { %v1503_v19 = vpop.f32.mrf.mxu0  ;;  %1694 = vmatmul.mubr.bf16.gmra.mxu0 %v6013_v9  ;;  %v1792_v23 = vpop.f32.mrf.mxu1  ;;  %1983 = vmatmul.mubr.bf16.gmra.mxu1 %v6016_v13 }
 0x18b   : > { %v2022_v21 = vmax.f32 %v1788_v17, 0.0  ;;  %v1504_v22 = vadd.f32 %v6693_v7, %v1503_v19  ;;  %1701 = vmatprep.mubr.bf16.mxu0 %v6021_v14  ;;  %1990 = vmatprep.mubr.bf16.mxu1 %v6024_v16 }
 0x18c   : > { %v1505_v24 = vpop.f32.mrf.mxu0  ;;  %v1794_v26 = vpop.f32.mrf.mxu1 }
 0x18d   : > { %v5338_v25 = vpack.c.bf16 %v2022_v21, %v2021_v20  ;;  %v1793_v29 = vadd.f32 %v1792_v23, %v1504_v22 }
 0x18e   : > { %v1506_v27 = vpop.f32.mrf.mxu0  ;;  %v1795_v31 = vpop.f32.mrf.mxu1 }
 0x18f   : > { %5482 = vst [vmem:[#allocation2 + $0x18] sm:$0xff] %v5338_v25   ;;  %v1507_v30 = vadd.f32 %v6693_v7, %v1506_v27  ;;  %v2023_v39 = vmax.f32 %v1793_v29, 0.0 }
 0x190   : > { %v1508_v34 = vpop.f32.mrf.mxu0  ;;  %v1797_v37 = vpop.f32.mrf.mxu1 }
 0x191   : > { %v1796_v36 = vadd.f32 %v1795_v31, %v1507_v30 }
 0x192   : > { %v1511_v38 = vpop.f32.mrf.mxu0  ;;  %1702 = vmatmul.mubr.bf16.gmra.mxu0 %v6019_v28  ;;  %v1800_v42 = vpop.f32.mrf.mxu1  ;;  %1991 = vmatmul.mubr.bf16.gmra.mxu1 %v6022_v32 }
 0x193   : > { %v2024_v40 = vmax.f32 %v1796_v36, 0.0  ;;  %v1512_v41 = vadd.f32 %v6693_v7, %v1511_v38  ;;  %1709 = vmatprep.mubr.bf16.mxu0 %v6027_v33  ;;  %1998 = vmatprep.mubr.bf16.mxu1 %v6030_v35 }
 0x194   : > { %v1513_v43 = vpop.f32.mrf.mxu0  ;;  %v1802_v45 = vpop.f32.mrf.mxu1 }
 0x195   : > { %v5343_v44 = vpack.c.bf16 %v2024_v40, %v2023_v39  ;;  %v1801_v48 = vadd.f32 %v1800_v42, %v1512_v41 }
 0x196   : > { %v1514_v46 = vpop.f32.mrf.mxu0  ;;  %v1803_v50 = vpop.f32.mrf.mxu1 }
 0x197   : > { %5483 = vst [vmem:[#allocation2 + $0x20] sm:$0xff] %v5343_v44   ;;  %v1515_v49 = vadd.f32 %v6693_v7, %v1514_v46  ;;  %v2025_v58 = vmax.f32 %v1801_v48, 0.0 }
 0x198   : > { %v1516_v53 = vpop.f32.mrf.mxu0  ;;  %v1805_v56 = vpop.f32.mrf.mxu1 }
 0x199   : > { %v1804_v55 = vadd.f32 %v1803_v50, %v1515_v49 }
 0x19a   : > { %v1519_v57 = vpop.f32.mrf.mxu0  ;;  %1710 = vmatmul.mubr.bf16.gmra.mxu0 %v6025_v47  ;;  %v1808_v61 = vpop.f32.mrf.mxu1  ;;  %1999 = vmatmul.mubr.bf16.gmra.mxu1 %v6028_v51 }
 0x19b   : > { %v2026_v59 = vmax.f32 %v1804_v55, 0.0  ;;  %v1520_v60 = vadd.f32 %v6693_v7, %v1519_v57  ;;  %1717 = vmatprep.mubr.bf16.mxu0 %v6033_v52  ;;  %2006 = vmatprep.mubr.bf16.mxu1 %v6036_v54 }
 0x19c   : > { %v1521_v62 = vpop.f32.mrf.mxu0  ;;  %v1810_v0 = vpop.f32.mrf.mxu1 }
 0x19d   : > { %v5348_v63 = vpack.c.bf16 %v2026_v59, %v2025_v58  ;;  %v1809_v3 = vadd.f32 %v1808_v61, %v1520_v60 }
 0x19e   : > { %v1522_v1 = vpop.f32.mrf.mxu0  ;;  %v1811_v5 = vpop.f32.mrf.mxu1 }
 0x19f   : > { %5484 = vst [vmem:[#allocation2 + $0x28] sm:$0xff] %v5348_v63   ;;  %v1523_v4 = vadd.f32 %v6693_v7, %v1522_v1  ;;  %v2027_v12 = vmax.f32 %v1809_v3, 0.0 }
 0x1a0   : > { %v1524_v8 = vpop.f32.mrf.mxu0  ;;  %v1813_v10 = vpop.f32.mrf.mxu1 }
 0x1a1   : > { %v1812_v9 = vadd.f32 %v1811_v5, %v1523_v4 }
 0x1a2   : > { %v1527_v11 = vpop.f32.mrf.mxu0  ;;  %1718 = vmatmul.mubr.bf16.gmra.mxu0 %v6031_v2  ;;  %v1816_v15 = vpop.f32.mrf.mxu1  ;;  %2007 = vmatmul.mubr.bf16.gmra.mxu1 %v6034_v6 }
 0x1a3   : > { %v2028_v13 = vmax.f32 %v1812_v9, 0.0  ;;  %v1528_v14 = vadd.f32 %v6693_v7, %v1527_v11 }
 0x1a4   : > { %v1529_v16 = vpop.f32.mrf.mxu0  ;;  %v1818_v18 = vpop.f32.mrf.mxu1 }
 0x1a5   : > { %v5353_v17 = vpack.c.bf16 %v2028_v13, %v2027_v12  ;;  %v1817_v20 = vadd.f32 %v1816_v15, %v1528_v14 }
 0x1a6   : > { %v1530_v19 = vpop.f32.mrf.mxu0  ;;  %v1819_v22 = vpop.f32.mrf.mxu1 }
 0x1a7   : > { %5485 = vst [vmem:[#allocation2 + $0x30] sm:$0xff] %v5353_v17   ;;  %v1531_v21 = vadd.f32 %v6693_v7, %v1530_v19  ;;  %v2029_v27 = vmax.f32 %v1817_v20, 0.0 }
 0x1a8   : > { %v1532_v23 = vpop.f32.mrf.mxu0  ;;  %v1821_v25 = vpop.f32.mrf.mxu1 }
 0x1a9   : > { %v1820_v24 = vadd.f32 %v1819_v22, %v1531_v21 }
 0x1aa   : > { %v1535_v26 = vpop.f32.mrf.mxu0  ;;  %v1824_v30 = vpop.f32.mrf.mxu1 }
 0x1ab   : > { %v2030_v28 = vmax.f32 %v1820_v24, 0.0  ;;  %v1536_v29 = vadd.f32 %v6693_v7, %v1535_v26 }
 0x1ac   : > { %v1537_v31 = vpop.f32.mrf.mxu0  ;;  %v1826_v33 = vpop.f32.mrf.mxu1 }
 0x1ad   : > { %v5358_v32 = vpack.c.bf16 %v2030_v28, %v2029_v27  ;;  %v1825_v35 = vadd.f32 %v1824_v30, %v1536_v29 }
 0x1ae   : > { %v1538_v34 = vpop.f32.mrf.mxu0  ;;  %v1827_v37 = vpop.f32.mrf.mxu1 }
 0x1af   : > { %5486 = vst [vmem:[#allocation2 + $0x38] sm:$0xff] %v5358_v32   ;;  %v1539_v36 = vadd.f32 %v6693_v7, %v1538_v34  ;;  %v2031_v42 = vmax.f32 %v1825_v35, 0.0 }
 0x1b0   : > { %v1540_v38 = vpop.f32.mrf.mxu0  ;;  %v1829_v40 = vpop.f32.mrf.mxu1 }
 0x1b1   : > { %v1828_v39 = vadd.f32 %v1827_v37, %v1539_v36 }
 0x1b2   : > { %v1543_v41 = vpop.f32.mrf.mxu0  ;;  %v1832_v45 = vpop.f32.mrf.mxu1 }
 0x1b3   : > { %v2032_v43 = vmax.f32 %v1828_v39, 0.0  ;;  %v1544_v44 = vadd.f32 %v6693_v7, %v1543_v41 }
 0x1b4   : > { %v1545_v46 = vpop.f32.mrf.mxu0  ;;  %v1834_v48 = vpop.f32.mrf.mxu1 }
 0x1b5   : > { %v5363_v47 = vpack.c.bf16 %v2032_v43, %v2031_v42  ;;  %v1833_v50 = vadd.f32 %v1832_v45, %v1544_v44 }
 0x1b6   : > { %v1546_v49 = vpop.f32.mrf.mxu0  ;;  %v1835_v52 = vpop.f32.mrf.mxu1 }
 0x1b7   : > { %5487 = vst [vmem:[#allocation2 + $0x40] sm:$0xff] %v5363_v47   ;;  %v1547_v51 = vadd.f32 %v6693_v7, %v1546_v49  ;;  %v2033_v57 = vmax.f32 %v1833_v50, 0.0 }
 0x1b8   : > { %v1548_v53 = vpop.f32.mrf.mxu0  ;;  %v1837_v55 = vpop.f32.mrf.mxu1 }
 0x1b9   : > { %v1836_v54 = vadd.f32 %v1835_v52, %v1547_v51 }
 0x1ba   : > { %v1551_v56 = vpop.f32.mrf.mxu0  ;;  %v1840_v60 = vpop.f32.mrf.mxu1 }
 0x1bb   : > { %v2034_v58 = vmax.f32 %v1836_v54, 0.0  ;;  %v1552_v59 = vadd.f32 %v6693_v7, %v1551_v56 }
 0x1bc   : > { %v1553_v61 = vpop.f32.mrf.mxu0  ;;  %v1842_v63 = vpop.f32.mrf.mxu1 }
 0x1bd   : > { %v5368_v62 = vpack.c.bf16 %v2034_v58, %v2033_v57  ;;  %v1841_v1 = vadd.f32 %v1840_v60, %v1552_v59 }
 0x1be   : > { %v1554_v0 = vpop.f32.mrf.mxu0  ;;  %v1843_v3 = vpop.f32.mrf.mxu1 }
 0x1bf   : > { %5488 = vst [vmem:[#allocation2 + $0x48] sm:$0xff] %v5368_v62   ;;  %v1555_v2 = vadd.f32 %v6693_v7, %v1554_v0  ;;  %v2035_v9 = vmax.f32 %v1841_v1, 0.0 }
 0x1c0   : > { %v1556_v4 = vpop.f32.mrf.mxu0  ;;  %v1845_v6 = vpop.f32.mrf.mxu1 }
 0x1c1   : > { %v1844_v5 = vadd.f32 %v1843_v3, %v1555_v2 }
 0x1c2   : > { %v1559_v8 = vpop.f32.mrf.mxu0  ;;  %v1848_v12 = vpop.f32.mrf.mxu1 }
 0x1c3   : > { %v2036_v10 = vmax.f32 %v1844_v5, 0.0  ;;  %v1560_v11 = vadd.f32 %v6693_v7, %v1559_v8 }
 0x1c4   : > { %v1561_v13 = vpop.f32.mrf.mxu0  ;;  %v1850_v15 = vpop.f32.mrf.mxu1 }
 0x1c5   : > { %v5373_v14 = vpack.c.bf16 %v2036_v10, %v2035_v9  ;;  %v1849_v17 = vadd.f32 %v1848_v12, %v1560_v11 }
 0x1c6   : > { %v1562_v16 = vpop.f32.mrf.mxu0  ;;  %v1851_v19 = vpop.f32.mrf.mxu1 }
 0x1c7   : > { %5489 = vst [vmem:[#allocation2 + $0x50] sm:$0xff] %v5373_v14   ;;  %v1563_v18 = vadd.f32 %v6693_v7, %v1562_v16  ;;  %v2037_v24 = vmax.f32 %v1849_v17, 0.0 }
 0x1c8   : > { %v1564_v20 = vpop.f32.mrf.mxu0  ;;  %v1853_v22 = vpop.f32.mrf.mxu1 }
 0x1c9   : > { %v1852_v21 = vadd.f32 %v1851_v19, %v1563_v18 }
 0x1ca   : > { %v1567_v23 = vpop.f32.mrf.mxu0  ;;  %v1856_v27 = vpop.f32.mrf.mxu1 }
 0x1cb   : > { %v2038_v25 = vmax.f32 %v1852_v21, 0.0  ;;  %v1568_v26 = vadd.f32 %v6693_v7, %v1567_v23 }
 0x1cc   : > { %v1569_v28 = vpop.f32.mrf.mxu0  ;;  %v1858_v30 = vpop.f32.mrf.mxu1 }
 0x1cd   : > { %v5378_v29 = vpack.c.bf16 %v2038_v25, %v2037_v24  ;;  %v1857_v32 = vadd.f32 %v1856_v27, %v1568_v26 }
 0x1ce   : > { %v1570_v31 = vpop.f32.mrf.mxu0  ;;  %v1859_v34 = vpop.f32.mrf.mxu1 }
 0x1cf   : > { %5490 = vst [vmem:[#allocation2 + $0x58] sm:$0xff] %v5378_v29   ;;  %v1571_v33 = vadd.f32 %v6693_v7, %v1570_v31  ;;  %v2039_v39 = vmax.f32 %v1857_v32, 0.0 }
 0x1d0   : > { %v1572_v35 = vpop.f32.mrf.mxu0  ;;  %v1861_v37 = vpop.f32.mrf.mxu1 }
 0x1d1   : > { %v1860_v36 = vadd.f32 %v1859_v34, %v1571_v33 }
 0x1d2   : > { %v1575_v38 = vpop.f32.mrf.mxu0  ;;  %v1864_v42 = vpop.f32.mrf.mxu1 }
 0x1d3   : > { %v2040_v40 = vmax.f32 %v1860_v36, 0.0  ;;  %v1576_v41 = vadd.f32 %v6693_v7, %v1575_v38 }
 0x1d4   : > { %v1577_v43 = vpop.f32.mrf.mxu0  ;;  %v1866_v45 = vpop.f32.mrf.mxu1 }
 0x1d5   : > { %v5383_v44 = vpack.c.bf16 %v2040_v40, %v2039_v39  ;;  %v1865_v47 = vadd.f32 %v1864_v42, %v1576_v41 }
 0x1d6   : > { %v1578_v46 = vpop.f32.mrf.mxu0  ;;  %v1867_v49 = vpop.f32.mrf.mxu1 }
 0x1d7   : > { %5491 = vst [vmem:[#allocation2 + $0x60] sm:$0xff] %v5383_v44   ;;  %v1579_v48 = vadd.f32 %v6693_v7, %v1578_v46  ;;  %v2041_v54 = vmax.f32 %v1865_v47, 0.0 }
 0x1d8   : > { %v1580_v50 = vpop.f32.mrf.mxu0  ;;  %v1869_v52 = vpop.f32.mrf.mxu1 }
 0x1d9   : > { %v1868_v51 = vadd.f32 %v1867_v49, %v1579_v48 }
 0x1da   : > { %v1583_v53 = vpop.f32.mrf.mxu0  ;;  %v1872_v57 = vpop.f32.mrf.mxu1 }
 0x1db   : > { %v2042_v55 = vmax.f32 %v1868_v51, 0.0  ;;  %v1584_v56 = vadd.f32 %v6693_v7, %v1583_v53 }
 0x1dc   : > { %v1585_v58 = vpop.f32.mrf.mxu0  ;;  %v1874_v60 = vpop.f32.mrf.mxu1 }
 0x1dd   : > { %v5388_v59 = vpack.c.bf16 %v2042_v55, %v2041_v54  ;;  %v1873_v62 = vadd.f32 %v1872_v57, %v1584_v56 }
 0x1de   : > { %v1586_v61 = vpop.f32.mrf.mxu0  ;;  %v1875_v0 = vpop.f32.mrf.mxu1 }
 0x1df   : > { %5492 = vst [vmem:[#allocation2 + $0x68] sm:$0xff] %v5388_v59   ;;  %v1587_v63 = vadd.f32 %v6693_v7, %v1586_v61  ;;  %v2043_v5 = vmax.f32 %v1873_v62, 0.0 }
 0x1e0   : > { %v1588_v1 = vpop.f32.mrf.mxu0  ;;  %v1877_v3 = vpop.f32.mrf.mxu1 }
 0x1e1   : > { %v1876_v2 = vadd.f32 %v1875_v0, %v1587_v63 }
 0x1e2   : > { %v1591_v4 = vpop.f32.mrf.mxu0  ;;  %v1880_v9 = vpop.f32.mrf.mxu1 }
 0x1e3   : > { %v2044_v6 = vmax.f32 %v1876_v2, 0.0  ;;  %v1592_v8 = vadd.f32 %v6693_v7, %v1591_v4 }
 0x1e4   : > { %v1593_v10 = vpop.f32.mrf.mxu0  ;;  %v1882_v12 = vpop.f32.mrf.mxu1 }
 0x1e5   : > { %v5393_v11 = vpack.c.bf16 %v2044_v6, %v2043_v5  ;;  %v1881_v14 = vadd.f32 %v1880_v9, %v1592_v8 }
 0x1e6   : > { %v1594_v13 = vpop.f32.mrf.mxu0  ;;  %v1883_v16 = vpop.f32.mrf.mxu1 }
 0x1e7   : > { %5493 = vst [vmem:[#allocation2 + $0x70] sm:$0xff] %v5393_v11   ;;  %v1595_v15 = vadd.f32 %v6693_v7, %v1594_v13  ;;  %v2045_v21 = vmax.f32 %v1881_v14, 0.0 }
 0x1e8   : > { %v1596_v17 = vpop.f32.mrf.mxu0  ;;  %v1885_v19 = vpop.f32.mrf.mxu1 }
 0x1e9   : > { %v1884_v18 = vadd.f32 %v1883_v16, %v1595_v15 }
 0x1ea   : > { %v1599_v20 = vpop.f32.mrf.mxu0  ;;  %v1888_v24 = vpop.f32.mrf.mxu1 }
 0x1eb   : > { %v2046_v22 = vmax.f32 %v1884_v18, 0.0  ;;  %v1600_v23 = vadd.f32 %v6693_v7, %v1599_v20 }
 0x1ec   : > { %v1601_v25 = vpop.f32.mrf.mxu0  ;;  %v1890_v27 = vpop.f32.mrf.mxu1 }
 0x1ed   : > { %v5398_v26 = vpack.c.bf16 %v2046_v22, %v2045_v21  ;;  %v1889_v29 = vadd.f32 %v1888_v24, %v1600_v23 }
 0x1ee   : > { %v1602_v28 = vpop.f32.mrf.mxu0  ;;  %v1891_v31 = vpop.f32.mrf.mxu1 }
 0x1ef   : > { %5494 = vst [vmem:[#allocation2 + $0x78] sm:$0xff] %v5398_v26   ;;  %v1603_v30 = vadd.f32 %v6693_v7, %v1602_v28  ;;  %v2047_v36 = vmax.f32 %v1889_v29, 0.0 }
 0x1f0   : > { %v1604_v32 = vpop.f32.mrf.mxu0  ;;  %v1893_v34 = vpop.f32.mrf.mxu1 }
 0x1f1   : > { %v1892_v33 = vadd.f32 %v1891_v31, %v1603_v30 }
 0x1f2   : > { %v1607_v35 = vpop.f32.mrf.mxu0  ;;  %v1896_v39 = vpop.f32.mrf.mxu1 }
 0x1f3   : > { %v2048_v37 = vmax.f32 %v1892_v33, 0.0  ;;  %v1608_v38 = vadd.f32 %v6693_v7, %v1607_v35 }
 0x1f4   : > { %v1609_v40 = vpop.f32.mrf.mxu0  ;;  %v1898_v42 = vpop.f32.mrf.mxu1 }
 0x1f5   : > { %v5403_v41 = vpack.c.bf16 %v2048_v37, %v2047_v36  ;;  %v1897_v44 = vadd.f32 %v1896_v39, %v1608_v38 }
 0x1f6   : > { %v1610_v43 = vpop.f32.mrf.mxu0  ;;  %v1899_v46 = vpop.f32.mrf.mxu1 }
 0x1f7   : > { %5495 = vst [vmem:[#allocation2 + $0x80] sm:$0xff] %v5403_v41   ;;  %v1611_v45 = vadd.f32 %v6693_v7, %v1610_v43  ;;  %v2049_v51 = vmax.f32 %v1897_v44, 0.0 }
 0x1f8   : > { %v1612_v47 = vpop.f32.mrf.mxu0  ;;  %v1901_v49 = vpop.f32.mrf.mxu1 }
 0x1f9   : > { %v1900_v48 = vadd.f32 %v1899_v46, %v1611_v45 }
 0x1fa   : > { %v1615_v50 = vpop.f32.mrf.mxu0  ;;  %v1904_v54 = vpop.f32.mrf.mxu1 }
 0x1fb   : > { %v2050_v52 = vmax.f32 %v1900_v48, 0.0  ;;  %v1616_v53 = vadd.f32 %v6693_v7, %v1615_v50 }
 0x1fc   : > { %v1617_v55 = vpop.f32.mrf.mxu0  ;;  %v1906_v57 = vpop.f32.mrf.mxu1 }
 0x1fd   : > { %v5408_v56 = vpack.c.bf16 %v2050_v52, %v2049_v51  ;;  %v1905_v59 = vadd.f32 %v1904_v54, %v1616_v53 }
 0x1fe   : > { %v1618_v58 = vpop.f32.mrf.mxu0  ;;  %v1907_v61 = vpop.f32.mrf.mxu1 }
 0x1ff   : > { %5496 = vst [vmem:[#allocation2 + $0x88] sm:$0xff] %v5408_v56   ;;  %v1619_v60 = vadd.f32 %v6693_v7, %v1618_v58  ;;  %v2051_v2 = vmax.f32 %v1905_v59, 0.0 }
 0x200   : > { %v1620_v62 = vpop.f32.mrf.mxu0  ;;  %v1909_v0 = vpop.f32.mrf.mxu1 }
 0x201   : > { %v1908_v63 = vadd.f32 %v1907_v61, %v1619_v60 }
 0x202   : > { %v1623_v1 = vpop.f32.mrf.mxu0  ;;  %v1912_v5 = vpop.f32.mrf.mxu1 }
 0x203   : > { %v2052_v3 = vmax.f32 %v1908_v63, 0.0  ;;  %v1624_v4 = vadd.f32 %v6693_v7, %v1623_v1 }
 0x204   : > { %v1625_v6 = vpop.f32.mrf.mxu0  ;;  %v1914_v9 = vpop.f32.mrf.mxu1 }
 0x205   : > { %v5413_v8 = vpack.c.bf16 %v2052_v3, %v2051_v2  ;;  %v1913_v11 = vadd.f32 %v1912_v5, %v1624_v4 }
 0x206   : > { %v1626_v10 = vpop.f32.mrf.mxu0  ;;  %v1915_v13 = vpop.f32.mrf.mxu1 }
 0x207   : > { %5497 = vst [vmem:[#allocation2 + $0x90] sm:$0xff] %v5413_v8   ;;  %v1627_v12 = vadd.f32 %v6693_v7, %v1626_v10  ;;  %v2053_v18 = vmax.f32 %v1913_v11, 0.0 }
 0x208   : > { %v1628_v14 = vpop.f32.mrf.mxu0  ;;  %v1917_v16 = vpop.f32.mrf.mxu1 }
 0x209   : > { %v1916_v15 = vadd.f32 %v1915_v13, %v1627_v12 }
 0x20a   : > { %v1631_v17 = vpop.f32.mrf.mxu0  ;;  %v1920_v21 = vpop.f32.mrf.mxu1 }
 0x20b   : > { %v2054_v19 = vmax.f32 %v1916_v15, 0.0  ;;  %v1632_v20 = vadd.f32 %v6693_v7, %v1631_v17 }
 0x20c   : > { %v1633_v22 = vpop.f32.mrf.mxu0  ;;  %v1922_v24 = vpop.f32.mrf.mxu1 }
 0x20d   : > { %v5418_v23 = vpack.c.bf16 %v2054_v19, %v2053_v18  ;;  %v1921_v26 = vadd.f32 %v1920_v21, %v1632_v20 }
 0x20e   : > { %v1634_v25 = vpop.f32.mrf.mxu0  ;;  %v1923_v28 = vpop.f32.mrf.mxu1 }
 0x20f   : > { %5498 = vst [vmem:[#allocation2 + $0x98] sm:$0xff] %v5418_v23   ;;  %v1635_v27 = vadd.f32 %v6693_v7, %v1634_v25  ;;  %v2055_v33 = vmax.f32 %v1921_v26, 0.0 }
 0x210   : > { %v1636_v29 = vpop.f32.mrf.mxu0  ;;  %v1925_v31 = vpop.f32.mrf.mxu1 }
 0x211   : > { %v1924_v30 = vadd.f32 %v1923_v28, %v1635_v27 }
 0x212   : > { %v1639_v32 = vpop.f32.mrf.mxu0  ;;  %v1928_v36 = vpop.f32.mrf.mxu1 }
 0x213   : > { %v2056_v34 = vmax.f32 %v1924_v30, 0.0  ;;  %v1640_v35 = vadd.f32 %v6693_v7, %v1639_v32 }
 0x214   : > { %v1641_v37 = vpop.f32.mrf.mxu0  ;;  %v1930_v39 = vpop.f32.mrf.mxu1 }
 0x215   : > { %v5423_v38 = vpack.c.bf16 %v2056_v34, %v2055_v33  ;;  %v1929_v41 = vadd.f32 %v1928_v36, %v1640_v35 }
 0x216   : > { %v1642_v40 = vpop.f32.mrf.mxu0  ;;  %v1931_v43 = vpop.f32.mrf.mxu1 }
 0x217   : > { %5499 = vst [vmem:[#allocation2 + $0xa0] sm:$0xff] %v5423_v38   ;;  %v1643_v42 = vadd.f32 %v6693_v7, %v1642_v40  ;;  %v2057_v48 = vmax.f32 %v1929_v41, 0.0 }
 0x218   : > { %v1644_v44 = vpop.f32.mrf.mxu0  ;;  %v1933_v46 = vpop.f32.mrf.mxu1 }
 0x219   : > { %v1932_v45 = vadd.f32 %v1931_v43, %v1643_v42 }
 0x21a   : > { %v1647_v47 = vpop.f32.mrf.mxu0  ;;  %v1936_v51 = vpop.f32.mrf.mxu1 }
 0x21b   : > { %v2058_v49 = vmax.f32 %v1932_v45, 0.0  ;;  %v1648_v50 = vadd.f32 %v6693_v7, %v1647_v47 }
 0x21c   : > { %v1649_v52 = vpop.f32.mrf.mxu0  ;;  %v1938_v54 = vpop.f32.mrf.mxu1 }
 0x21d   : > { %v5428_v53 = vpack.c.bf16 %v2058_v49, %v2057_v48  ;;  %v1937_v56 = vadd.f32 %v1936_v51, %v1648_v50 }
 0x21e   : > { %v1650_v55 = vpop.f32.mrf.mxu0  ;;  %v1939_v58 = vpop.f32.mrf.mxu1 }
 0x21f   : > { %5500 = vst [vmem:[#allocation2 + $0xa8] sm:$0xff] %v5428_v53   ;;  %v1651_v57 = vadd.f32 %v6693_v7, %v1650_v55  ;;  %v2059_v63 = vmax.f32 %v1937_v56, 0.0 }
 0x220   : > { %v1652_v59 = vpop.f32.mrf.mxu0  ;;  %v1941_v61 = vpop.f32.mrf.mxu1 }
 0x221   : > { %v1940_v60 = vadd.f32 %v1939_v58, %v1651_v57 }
 0x222   : > { %v1655_v62 = vpop.f32.mrf.mxu0  ;;  %v1944_v2 = vpop.f32.mrf.mxu1 }
 0x223   : > { %v2060_v0 = vmax.f32 %v1940_v60, 0.0  ;;  %v1656_v1 = vadd.f32 %v6693_v7, %v1655_v62 }
 0x224   : > { %v1657_v3 = vpop.f32.mrf.mxu0  ;;  %v1946_v5 = vpop.f32.mrf.mxu1 }
 0x225   : > { %v5433_v4 = vpack.c.bf16 %v2060_v0, %v2059_v63  ;;  %v1945_v8 = vadd.f32 %v1944_v2, %v1656_v1 }
 0x226   : > { %v1658_v6 = vpop.f32.mrf.mxu0  ;;  %v1947_v10 = vpop.f32.mrf.mxu1 }
 0x227   : > { %5501 = vst [vmem:[#allocation2 + $0xb0] sm:$0xff] %v5433_v4   ;;  %v1659_v9 = vadd.f32 %v6693_v7, %v1658_v6  ;;  %v2061_v15 = vmax.f32 %v1945_v8, 0.0 }
 0x228   : > { %v1660_v11 = vpop.f32.mrf.mxu0  ;;  %v1949_v13 = vpop.f32.mrf.mxu1 }
 0x229   : > { %v1948_v12 = vadd.f32 %v1947_v10, %v1659_v9 }
 0x22a   : > { %v1663_v14 = vpop.f32.mrf.mxu0  ;;  %v1952_v18 = vpop.f32.mrf.mxu1 }
 0x22b   : > { %v2062_v16 = vmax.f32 %v1948_v12, 0.0  ;;  %v1664_v17 = vadd.f32 %v6693_v7, %v1663_v14 }
 0x22c   : > { %v1665_v19 = vpop.f32.mrf.mxu0  ;;  %v1954_v21 = vpop.f32.mrf.mxu1 }
 0x22d   : > { %v5438_v20 = vpack.c.bf16 %v2062_v16, %v2061_v15  ;;  %v1953_v23 = vadd.f32 %v1952_v18, %v1664_v17  ;;  %v6037_v21 = vld [vmem:[%s7030_s2] ss:$0 sm:$0xff] }
 0x22e   : > { %v1666_v22 = vpop.f32.mrf.mxu0  ;;  %v1955_v25 = vpop.f32.mrf.mxu1 }
 0x22f   : > { %5502 = vst [vmem:[#allocation2 + $0xb8] sm:$0xff] %v5438_v20   ;;  %v1667_v24 = vadd.f32 %v6693_v7, %v1666_v22  ;;  %v2063_v30 = vmax.f32 %v1953_v23, 0.0 }
 0x230   : > { %v1668_v26 = vpop.f32.mrf.mxu0  ;;  %v1957_v28 = vpop.f32.mrf.mxu1 }
 0x231   : > { %v1956_v27 = vadd.f32 %v1955_v25, %v1667_v24 }
 0x232   : > { %v1671_v29 = vpop.f32.mrf.mxu0  ;;  %v1960_v33 = vpop.f32.mrf.mxu1 }
 0x233   : > { %v2064_v31 = vmax.f32 %v1956_v27, 0.0  ;;  %v1672_v32 = vadd.f32 %v6693_v7, %v1671_v29 }
 0x234   : > { %v1673_v34 = vpop.f32.mrf.mxu0  ;;  %v1962_v36 = vpop.f32.mrf.mxu1 }
 0x235   : > { %v5443_v35 = vpack.c.bf16 %v2064_v31, %v2063_v30  ;;  %v1961_v38 = vadd.f32 %v1960_v33, %v1672_v32 }
 0x236   : > { %v1674_v37 = vpop.f32.mrf.mxu0  ;;  %v1963_v40 = vpop.f32.mrf.mxu1 }
 0x237   : > { %5503 = vst [vmem:[#allocation2 + $0xc0] sm:$0xff] %v5443_v35   ;;  %v1675_v39 = vadd.f32 %v6693_v7, %v1674_v37  ;;  %v2065_v45 = vmax.f32 %v1961_v38, 0.0 }
 0x238   : > { %v1676_v41 = vpop.f32.mrf.mxu0  ;;  %v1965_v43 = vpop.f32.mrf.mxu1 }
 0x239   : > { %v1964_v42 = vadd.f32 %v1963_v40, %v1675_v39 }
 0x23a   : > { %v1679_v44 = vpop.f32.mrf.mxu0  ;;  %v1968_v48 = vpop.f32.mrf.mxu1 }
 0x23b   : > { %v2066_v46 = vmax.f32 %v1964_v42, 0.0  ;;  %v1680_v47 = vadd.f32 %v6693_v7, %v1679_v44 }
 0x23c   : > { %v1681_v49 = vpop.f32.mrf.mxu0  ;;  %v1970_v51 = vpop.f32.mrf.mxu1 }
 0x23d   : > { %v5448_v50 = vpack.c.bf16 %v2066_v46, %v2065_v45  ;;  %v1969_v53 = vadd.f32 %v1968_v48, %v1680_v47 }
 0x23e   : > { %v1682_v52 = vpop.f32.mrf.mxu0  ;;  %v1971_v55 = vpop.f32.mrf.mxu1 }
 0x23f   : > { %5504 = vst [vmem:[#allocation2 + $0xc8] sm:$0xff] %v5448_v50   ;;  %v1683_v54 = vadd.f32 %v6693_v7, %v1682_v52  ;;  %v2067_v60 = vmax.f32 %v1969_v53, 0.0 }
 0x240   : > { %v1684_v56 = vpop.f32.mrf.mxu0  ;;  %v1973_v58 = vpop.f32.mrf.mxu1 }
 0x241   : > { %v1972_v57 = vadd.f32 %v1971_v55, %v1683_v54 }
 0x242   : > { %v1687_v59 = vpop.f32.mrf.mxu0  ;;  %v1976_v63 = vpop.f32.mrf.mxu1 }
 0x243   : > { %v2068_v61 = vmax.f32 %v1972_v57, 0.0  ;;  %v1688_v62 = vadd.f32 %v6693_v7, %v1687_v59 }
 0x244   : > { %v1689_v0 = vpop.f32.mrf.mxu0  ;;  %v1978_v2 = vpop.f32.mrf.mxu1 }
 0x245   : > { %v5453_v1 = vpack.c.bf16 %v2068_v61, %v2067_v60  ;;  %v1977_v4 = vadd.f32 %v1976_v63, %v1688_v62 }
 0x246   : > { %v1690_v3 = vpop.f32.mrf.mxu0  ;;  %v1979_v6 = vpop.f32.mrf.mxu1 }
 0x247   : > { %5505 = vst [vmem:[#allocation2 + $0xd0] sm:$0xff] %v5453_v1   ;;  %v1691_v5 = vadd.f32 %v6693_v7, %v1690_v3  ;;  %v2069_v12 = vmax.f32 %v1977_v4, 0.0 }
 0x248   : > { %v1692_v8 = vpop.f32.mrf.mxu0  ;;  %v1981_v10 = vpop.f32.mrf.mxu1 }
 0x249   : > { %v1980_v9 = vadd.f32 %v1979_v6, %v1691_v5 }
 0x24a   : > { %v1695_v11 = vpop.f32.mrf.mxu0  ;;  %v1984_v15 = vpop.f32.mrf.mxu1 }
 0x24b   : > { %v2070_v13 = vmax.f32 %v1980_v9, 0.0  ;;  %v1696_v14 = vadd.f32 %v6693_v7, %v1695_v11 }
 0x24c   : > { %v1697_v16 = vpop.f32.mrf.mxu0  ;;  %v1986_v18 = vpop.f32.mrf.mxu1 }
 0x24d   : > { %v5458_v17 = vpack.c.bf16 %v2070_v13, %v2069_v12  ;;  %v1985_v20 = vadd.f32 %v1984_v15, %v1696_v14 }
 0x24e   : > { %v1698_v19 = vpop.f32.mrf.mxu0  ;;  %v1987_v23 = vpop.f32.mrf.mxu1 }
 0x24f   : > { %5506 = vst [vmem:[#allocation2 + $0xd8] sm:$0xff] %v5458_v17   ;;  %v1699_v22 = vadd.f32 %v6037_v21, %v1698_v19  ;;  %v2071_v28 = vmax.f32 %v1985_v20, 0.0 }
 0x250   : > { %v1700_v24 = vpop.f32.mrf.mxu0  ;;  %v1989_v26 = vpop.f32.mrf.mxu1 }
 0x251   : > { %v1988_v25 = vadd.f32 %v1987_v23, %v1699_v22 }
 0x252   : > { %v1703_v27 = vpop.f32.mrf.mxu0  ;;  %v1992_v30 = vpop.f32.mrf.mxu1 }
 0x253   : > { %v2072_v29 = vmax.f32 %v1988_v25, 0.0  ;;  %v1704_v7 = vadd.f32 %v6037_v21, %v1703_v27 }
 0x254   : > { %v1705_v31 = vpop.f32.mrf.mxu0  ;;  %v1994_v33 = vpop.f32.mrf.mxu1 }
 0x255   : > { %v5463_v32 = vpack.c.bf16 %v2072_v29, %v2071_v28  ;;  %v1993_v35 = vadd.f32 %v1992_v30, %v1704_v7 }
 0x256   : > { %v1706_v34 = vpop.f32.mrf.mxu0  ;;  %v1995_v37 = vpop.f32.mrf.mxu1 }
 0x257   : > { %5507 = vst [vmem:[#allocation2 + $0xe0] sm:$0xff] %v5463_v32   ;;  %v1707_v36 = vadd.f32 %v6037_v21, %v1706_v34  ;;  %v2073_v42 = vmax.f32 %v1993_v35, 0.0 }
 0x258   : > { %v1708_v38 = vpop.f32.mrf.mxu0  ;;  %v1997_v40 = vpop.f32.mrf.mxu1 }
 0x259   : > { %v1996_v39 = vadd.f32 %v1995_v37, %v1707_v36 }
 0x25a   : > { %v1711_v41 = vpop.f32.mrf.mxu0  ;;  %v2000_v45 = vpop.f32.mrf.mxu1 }
 0x25b   : > { %v2074_v43 = vmax.f32 %v1996_v39, 0.0  ;;  %v1712_v44 = vadd.f32 %v6037_v21, %v1711_v41 }
 0x25c   : > { %v1713_v46 = vpop.f32.mrf.mxu0  ;;  %v2002_v48 = vpop.f32.mrf.mxu1 }
 0x25d   : > { %v5468_v47 = vpack.c.bf16 %v2074_v43, %v2073_v42  ;;  %v2001_v50 = vadd.f32 %v2000_v45, %v1712_v44 }
 0x25e   : > { %v1714_v49 = vpop.f32.mrf.mxu0  ;;  %v2003_v52 = vpop.f32.mrf.mxu1 }
 0x25f   : > { %5508 = vst [vmem:[#allocation2 + $0xe8] sm:$0xff] %v5468_v47   ;;  %v1715_v51 = vadd.f32 %v6037_v21, %v1714_v49  ;;  %v2075_v57 = vmax.f32 %v2001_v50, 0.0 }
 0x260   : > { %v1716_v53 = vpop.f32.mrf.mxu0  ;;  %v2005_v55 = vpop.f32.mrf.mxu1 }
 0x261   : > { %v2004_v54 = vadd.f32 %v2003_v52, %v1715_v51 }
 0x262   : > { %v1719_v56 = vpop.f32.mrf.mxu0  ;;  %v2008_v60 = vpop.f32.mrf.mxu1 }
 0x263   : > { %v2076_v58 = vmax.f32 %v2004_v54, 0.0  ;;  %v1720_v59 = vadd.f32 %v6037_v21, %v1719_v56 }
 0x264   : > { %v1721_v61 = vpop.f32.mrf.mxu0  ;;  %v2010_v63 = vpop.f32.mrf.mxu1 }
 0x265   : > { %v5473_v62 = vpack.c.bf16 %v2076_v58, %v2075_v57  ;;  %v2009_v1 = vadd.f32 %v2008_v60, %v1720_v59 }
 0x266   : > { %v1722_v0 = vpop.f32.mrf.mxu0  ;;  %v2011_v3 = vpop.f32.mrf.mxu1 }
 0x267   : > { %5509 = vst [vmem:[#allocation2 + $0xf0] sm:$0xff] %v5473_v62   ;;  %v1723_v2 = vadd.f32 %v6037_v21, %v1722_v0  ;;  %v2077_v8 = vmax.f32 %v2009_v1, 0.0 }
 0x268   : > { %v1724_v4 = vpop.f32.mrf.mxu0  ;;  %v2013_v6 = vpop.f32.mrf.mxu1 }
 0x269   : > { %v2012_v5 = vadd.f32 %v2011_v3, %v1723_v2 }
 0x26b   : > { %v2078_v9 = vmax.f32 %v2012_v5, 0.0 }
 0x26d   : > { %v5478_v10 = vpack.c.bf16 %v2078_v9, %v2077_v8 }
 0x26f   : > { %5510 = vst [vmem:[#allocation2 + $0xf8] sm:$0xff] %v5478_v10  }
 0x270 PF: > { %p2404_p2 = scmp.eq.s32.totalorder %s6470_s27, 1  ;;  %p5066_p10 = scmp.ne.s32.totalorder %s6470_s27, 1 }
 0x272   : > { %2407 = sbr.rel (%p5066_p10) target bundleno = 1582 (0x62e), region = 84 }
 0x277   : > { %v6038_v11 = vld [vmem:[#allocation2 + $0x38] sm:$0xff]   ;;  %v6491_v12 = vmov 0   ;;  %v6040_v14 = vld [vmem:[#allocation2 + $0x30] sm:$0xff]   ;;  %v6042_v16 = vld [vmem:[#allocation2 + $0x28] sm:$0xff]  }
 0x278   : > { %3432 = vmatprep.subr.bf16.mxu0 %v6491_v12  ;;  %3721 = vmatprep.subr.bf16.mxu1 %v6491_v12  ;;  %v6039_v13 = vld [vmem:[#allocation2 + $0xb8] sm:$0xff]   ;;  %v6041_v15 = vld [vmem:[#allocation2 + $0xb0] sm:$0xff]   ;;  %v6043_v17 = vld [vmem:[#allocation2 + $0xa8] sm:$0xff]  }
 0x279   : > { %3433 = vmatpush1.bf16.msra.mxu0 %v6038_v11  ;;  %3722 = vmatpush1.bf16.msra.mxu1 %v6039_v13  ;;  %v6044_v18 = vld [vmem:[#allocation2 + $0x20] sm:$0xff]   ;;  %v6046_v20 = vld [vmem:[#allocation2 + $0x18] sm:$0xff]   ;;  %v6048_v22 = vld [vmem:[#allocation2 + $0x10] sm:$0xff]  }
 0x27a   : > { %3434 = vmatprep.subr.bf16.mxu0 %v6491_v12  ;;  %3723 = vmatprep.subr.bf16.mxu1 %v6491_v12  ;;  %v6045_v19 = vld [vmem:[#allocation2 + $0xa0] sm:$0xff]   ;;  %v6047_v21 = vld [vmem:[#allocation2 + $0x98] sm:$0xff]   ;;  %v6049_v23 = vld [vmem:[#allocation2 + $0x90] sm:$0xff]  }
 0x27b   : > { %v6050_v24 = vld [vmem:[#allocation2 + $0x8] sm:$0xff]   ;;  %v6052_v26 = vld [vmem:[#allocation2] sm:$0xff]   ;;  %v6054_v28 = vld [vmem:[#allocation2 + $0x78] sm:$0xff]  }
 0x27c   : > { %v6051_v25 = vld [vmem:[#allocation2 + $0x88] sm:$0xff]   ;;  %v6053_v27 = vld [vmem:[#allocation2 + $0x80] sm:$0xff]   ;;  %v6055_v29 = vld [vmem:[#allocation2 + $0xf8] sm:$0xff]  }
 0x27d   : > { %3435 = vmatpush1.bf16.msra.mxu0 %v6040_v14  ;;  %3724 = vmatpush1.bf16.msra.mxu1 %v6041_v15  ;;  %v6072_v7 = vld [vmem:[#allocation4 + $0x4] ss:$16 sps:$4 sm:$0xff]   ;;  %v6056_v30 = vld [vmem:[#allocation2 + $0x70] sm:$0xff]   ;;  %v6060_v35 = vld [vmem:[#allocation2 + $0x60] sm:$0xff]  }
 0x27e   : > { %3436 = vmatprep.subr.bf16.mxu0 %v6491_v12  ;;  %3725 = vmatprep.subr.bf16.mxu1 %v6491_v12  ;;  %v6075_v31 = vld [vmem:[#allocation4 + $0xc] ss:$16 sps:$4 sm:$0xff]   ;;  %v6058_v33 = vld [vmem:[#allocation2 + $0x68] sm:$0xff]   ;;  %v6062_v37 = vld [vmem:[#allocation2 + $0x58] sm:$0xff]  }
 0x27f   : > { %v6057_v32 = vld [vmem:[#allocation2 + $0xf0] sm:$0xff]   ;;  %3464 = vmatprep.mubr.bf16.mxu0 %v6072_v7  ;;  %3753 = vmatprep.mubr.bf16.mxu1 %v6075_v31  ;;  %v6059_v34 = vld [vmem:[#allocation2 + $0xe8] sm:$0xff]   ;;  %v6061_v36 = vld [vmem:[#allocation2 + $0xe0] sm:$0xff]  }
 0x280   : > { %v6063_v38 = vld [vmem:[#allocation2 + $0xd8] sm:$0xff]   ;;  %v6064_v39 = vld [vmem:[#allocation2 + $0x50] sm:$0xff]   ;;  %v6066_v41 = vld [vmem:[#allocation2 + $0x48] sm:$0xff]  }
 0x281   : > { %3437 = vmatpush1.bf16.msra.mxu0 %v6042_v16  ;;  %3726 = vmatpush1.bf16.msra.mxu1 %v6043_v17  ;;  %v6065_v40 = vld [vmem:[#allocation2 + $0xd0] sm:$0xff]   ;;  %v6067_v42 = vld [vmem:[#allocation2 + $0xc8] sm:$0xff]   ;;  %v6068_v43 = vld [vmem:[#allocation2 + $0x40] sm:$0xff]  }
 0x282   : > { %3438 = vmatprep.subr.bf16.mxu0 %v6491_v12  ;;  %3727 = vmatprep.subr.bf16.mxu1 %v6491_v12  ;;  %v6069_v44 = vld [vmem:[#allocation2 + $0xc0] sm:$0xff]   ;;  %v6070_v45 = vld [vmem:[#allocation4] ss:$16 sps:$4 sm:$0xff]   ;;  %v6076_v47 = vld [vmem:[#allocation4 + $0x24] ss:$16 sps:$4 sm:$0xff]  }
 0x283   : > { %v6073_v46 = vld [vmem:[#allocation4 + $0x8] ss:$16 sps:$4 sm:$0xff]   ;;  %v6078_v48 = vld [vmem:[#allocation4 + $0x2c] ss:$16 sps:$4 sm:$0xff]   ;;  %v6080_v49 = vld [vmem:[#allocation4 + $0x20] ss:$16 sps:$4 sm:$0xff]  }
 0x284   : > { %v6081_v50 = vld [vmem:[#allocation4 + $0x28] ss:$16 sps:$4 sm:$0xff]   ;;  %v6082_v51 = vld [vmem:[#allocation4 + $0x44] ss:$16 sps:$4 sm:$0xff]   ;;  %v6084_v53 = vld [vmem:[#allocation4 + $0x4c] ss:$16 sps:$4 sm:$0xff]  }
 0x285   : > { %3439 = vmatpush1.bf16.msra.mxu0 %v6044_v18  ;;  %3728 = vmatpush1.bf16.msra.mxu1 %v6045_v19  ;;  %v6154_v52 = vld [vmem:[#allocation9 + $0x38] sm:$0xff]   ;;  %v6086_v54 = vld [vmem:[#allocation4 + $0x40] ss:$16 sps:$4 sm:$0xff]   ;;  %v6088_v56 = vld [vmem:[#allocation4 + $0x64] ss:$16 sps:$4 sm:$0xff]  }
 0x286   : > { %3440 = vmatprep.subr.bf16.mxu0 %v6491_v12  ;;  %3729 = vmatprep.subr.bf16.mxu1 %v6491_v12  ;;  %v6087_v55 = vld [vmem:[#allocation4 + $0x48] ss:$16 sps:$4 sm:$0xff]   ;;  %v6090_v57 = vld [vmem:[#allocation4 + $0x6c] ss:$16 sps:$4 sm:$0xff]   ;;  %v6179_v58 = vld [vmem:[#allocation9 + $0x30] sm:$0xff]  }
 0x287   : > { %v6092_v59 = vld [vmem:[#allocation4 + $0x60] ss:$16 sps:$4 sm:$0xff]   ;;  %v6093_v60 = vld [vmem:[#allocation4 + $0x68] ss:$16 sps:$4 sm:$0xff]   ;;  %v6094_v61 = vld [vmem:[#allocation4 + $0x84] ss:$16 sps:$4 sm:$0xff]  }
 0x288   : > { %v6096_v62 = vld [vmem:[#allocation4 + $0x8c] ss:$16 sps:$4 sm:$0xff]   ;;  %v6098_v63 = vld [vmem:[#allocation4 + $0x80] ss:$16 sps:$4 sm:$0xff]   ;;  %v6099_v0 = vld [vmem:[#allocation4 + $0x88] ss:$16 sps:$4 sm:$0xff]  }
 0x289   : > { %3441 = vmatpush1.bf16.msra.mxu0 %v6046_v20  ;;  %3730 = vmatpush1.bf16.msra.mxu1 %v6047_v21  ;;  %v6100_v1 = vld [vmem:[#allocation4 + $0xa4] ss:$16 sps:$4 sm:$0xff]   ;;  %v6102_v2 = vld [vmem:[#allocation4 + $0xac] ss:$16 sps:$4 sm:$0xff]   ;;  %v6104_v3 = vld [vmem:[#allocation4 + $0xa0] ss:$16 sps:$4 sm:$0xff]  }
 0x28a   : > { %3442 = vmatprep.subr.bf16.mxu0 %v6491_v12  ;;  %3731 = vmatprep.subr.bf16.mxu1 %v6491_v12  ;;  %v6105_v4 = vld [vmem:[#allocation4 + $0xa8] ss:$16 sps:$4 sm:$0xff]   ;;  %v6106_v5 = vld [vmem:[#allocation4 + $0xc4] ss:$16 sps:$4 sm:$0xff]   ;;  %v6108_v6 = vld [vmem:[#allocation4 + $0xcc] ss:$16 sps:$4 sm:$0xff]  }
 0x28b   : > { %v6204_v8 = vld [vmem:[#allocation9 + $0x28] sm:$0xff]   ;;  %v6110_v9 = vld [vmem:[#allocation4 + $0xc0] ss:$16 sps:$4 sm:$0xff]   ;;  %v6112_v11 = vld [vmem:[#allocation4 + $0xe4] ss:$16 sps:$4 sm:$0xff]  }
 0x28c   : > { %v6111_v10 = vld [vmem:[#allocation4 + $0xc8] ss:$16 sps:$4 sm:$0xff]   ;;  %v6116_v13 = vld [vmem:[#allocation4 + $0xe0] ss:$16 sps:$4 sm:$0xff]   ;;  %v6118_v15 = vld [vmem:[#allocation4 + $0x104] ss:$16 sps:$4 sm:$0xff]  }
 0x28d   : > { %3443 = vmatpush1.bf16.msra.mxu0 %v6048_v22  ;;  %3732 = vmatpush1.bf16.msra.mxu1 %v6049_v23  ;;  %v6117_v14 = vld [vmem:[#allocation4 + $0xe8] ss:$16 sps:$4 sm:$0xff]   ;;  %v6120_v16 = vld [vmem:[#allocation4 + $0x10c] ss:$16 sps:$4 sm:$0xff]   ;;  %v6122_v17 = vld [vmem:[#allocation4 + $0x100] ss:$16 sps:$4 sm:$0xff]  }
 0x28e   : > { %3444 = vmatprep.subr.bf16.mxu0 %v6491_v12  ;;  %3733 = vmatprep.subr.bf16.mxu1 %v6491_v12  ;;  %v6123_v18 = vld [vmem:[#allocation4 + $0x108] ss:$16 sps:$4 sm:$0xff]   ;;  %v6124_v19 = vld [vmem:[#allocation4 + $0x124] ss:$16 sps:$4 sm:$0xff]   ;;  %v6126_v20 = vld [vmem:[#allocation4 + $0x12c] ss:$16 sps:$4 sm:$0xff]  }
 0x28f   : > { %v6128_v21 = vld [vmem:[#allocation4 + $0x120] ss:$16 sps:$4 sm:$0xff]   ;;  %v6129_v22 = vld [vmem:[#allocation4 + $0x128] ss:$16 sps:$4 sm:$0xff]   ;;  %v6130_v23 = vld [vmem:[#allocation4 + $0x144] ss:$16 sps:$4 sm:$0xff]  }
 0x290   : > { %v6140_v7 = vld [vmem:[#allocation4 + $0x160] ss:$16 sps:$4 sm:$0xff]   ;;  %v6142_v31 = vld [vmem:[#allocation4 + $0x184] ss:$16 sps:$4 sm:$0xff]  }
 0x291   : > { %3445 = vmatpush1.bf16.msra.mxu0 %v6050_v24  ;;  %3734 = vmatpush1.bf16.msra.mxu1 %v6051_v25  ;;  %v6132_v24 = vld [vmem:[#allocation4 + $0x14c] ss:$16 sps:$4 sm:$0xff]   ;;  %v6229_v25 = vld [vmem:[#allocation9 + $0x20] sm:$0xff]  }
 0x292   : > { %3446 = vmatprep.subr.bf16.mxu0 %v6491_v12  ;;  %3735 = vmatprep.subr.bf16.mxu1 %v6491_v12 }
 0x295   : > { %3447 = vmatpush1.bf16.msra.mxu0 %v6052_v26  ;;  %3736 = vmatpush1.bf16.msra.mxu1 %v6053_v27  ;;  %v6134_v26 = vld [vmem:[#allocation4 + $0x140] ss:$16 sps:$4 sm:$0xff]   ;;  %v6135_v27 = vld [vmem:[#allocation4 + $0x148] ss:$16 sps:$4 sm:$0xff]  }
 0x296   : > { %3448 = vmatprep.subr.bf16.mxu0 %v6491_v12  ;;  %3737 = vmatprep.subr.bf16.mxu1 %v6491_v12 }
 0x299   : > { %3449 = vmatpush2.bf16.msra.mxu0 %v6054_v28  ;;  %3738 = vmatpush2.bf16.msra.mxu1 %v6055_v29  ;;  %v6136_v28 = vld [vmem:[#allocation4 + $0x164] ss:$16 sps:$4 sm:$0xff]   ;;  %v6138_v29 = vld [vmem:[#allocation4 + $0x16c] ss:$16 sps:$4 sm:$0xff]  }
 0x29a   : > { %3450 = vmatprep.subr.bf16.mxu0 %v6491_v12  ;;  %3739 = vmatprep.subr.bf16.mxu1 %v6491_v12 }
 0x29d   : > { %3451 = vmatpush2.bf16.msra.mxu0 %v6056_v30  ;;  %3740 = vmatpush2.bf16.msra.mxu1 %v6057_v32  ;;  %v6141_v30 = vld [vmem:[#allocation4 + $0x168] ss:$16 sps:$4 sm:$0xff]   ;;  %v6144_v32 = vld [vmem:[#allocation4 + $0x18c] ss:$16 sps:$4 sm:$0xff]  }
 0x29e   : > { %3452 = vmatprep.subr.bf16.mxu0 %v6491_v12  ;;  %3741 = vmatprep.subr.bf16.mxu1 %v6491_v12 }
 0x2a1   : > { %3453 = vmatpush2.bf16.msra.mxu0 %v6058_v33  ;;  %3742 = vmatpush2.bf16.msra.mxu1 %v6059_v34  ;;  %v6146_v33 = vld [vmem:[#allocation4 + $0x180] ss:$16 sps:$4 sm:$0xff]   ;;  %v6147_v34 = vld [vmem:[#allocation4 + $0x188] ss:$16 sps:$4 sm:$0xff]  }
 0x2a2   : > { %3454 = vmatprep.subr.bf16.mxu0 %v6491_v12  ;;  %3743 = vmatprep.subr.bf16.mxu1 %v6491_v12 }
 0x2a5   : > { %3455 = vmatpush2.bf16.msra.mxu0 %v6060_v35  ;;  %3744 = vmatpush2.bf16.msra.mxu1 %v6061_v36  ;;  %v6148_v35 = vld [vmem:[#allocation4 + $0x1a4] ss:$16 sps:$4 sm:$0xff]   ;;  %v6150_v36 = vld [vmem:[#allocation4 + $0x1ac] ss:$16 sps:$4 sm:$0xff]  }
 0x2a6   : > { %3456 = vmatprep.subr.bf16.mxu0 %v6491_v12  ;;  %3745 = vmatprep.subr.bf16.mxu1 %v6491_v12 }
 0x2a9   : > { %3457 = vmatpush2.bf16.msra.mxu0 %v6062_v37  ;;  %3746 = vmatpush2.bf16.msra.mxu1 %v6063_v38  ;;  %v6152_v37 = vld [vmem:[#allocation4 + $0x1a0] ss:$16 sps:$4 sm:$0xff]   ;;  %v6153_v38 = vld [vmem:[#allocation4 + $0x1a8] ss:$16 sps:$4 sm:$0xff]  }
 0x2aa   : > { %3458 = vmatprep.subr.bf16.mxu0 %v6491_v12  ;;  %3747 = vmatprep.subr.bf16.mxu1 %v6491_v12 }
 0x2ad   : > { %3459 = vmatpush2.bf16.msra.mxu0 %v6064_v39  ;;  %3748 = vmatpush2.bf16.msra.mxu1 %v6065_v40  ;;  %v6155_v39 = vld [vmem:[#allocation4 + $0x1c4] ss:$16 sps:$4 sm:$0xff]   ;;  %v6157_v40 = vld [vmem:[#allocation4 + $0x1cc] ss:$16 sps:$4 sm:$0xff]  }
 0x2ae   : > { %3460 = vmatprep.subr.bf16.mxu0 %v6491_v12  ;;  %3749 = vmatprep.subr.bf16.mxu1 %v6491_v12 }
 0x2b1   : > { %3461 = vmatpush2.bf16.msra.mxu0 %v6066_v41  ;;  %3750 = vmatpush2.bf16.msra.mxu1 %v6067_v42  ;;  %v6254_v41 = vld [vmem:[#allocation9 + $0x18] sm:$0xff]   ;;  %v6159_v42 = vld [vmem:[#allocation4 + $0x1c0] ss:$16 sps:$4 sm:$0xff]  }
 0x2b2   : > { %3462 = vmatprep.subr.bf16.mxu0 %v6491_v12  ;;  %3751 = vmatprep.subr.bf16.mxu1 %v6491_v12  ;;  %v6114_v12 = vld [vmem:[#allocation4 + $0xec] ss:$16 sps:$4 sm:$0xff]  }
 0x2b5   : > { %3463 = vmatpush2.bf16.msra.mxu0 %v6068_v43  ;;  %3752 = vmatpush2.bf16.msra.mxu1 %v6069_v44  ;;  %v6160_v43 = vld [vmem:[#allocation4 + $0x1c8] ss:$16 sps:$4 sm:$0xff]   ;;  %v6161_v44 = vld [vmem:[#allocation4 + $0x1e4] ss:$16 sps:$4 sm:$0xff]  }
 0x2b6   : > { %5604 = vmatprep.subr.bf16.mxu0 %v6154_v52  ;;  %5704 = vmatprep.subr.bf16.mxu1 %v6154_v52 }
 0x2b8   : > { %3465 = vmatmul.mubr.bf16.vlgmr.msra.gmra.mxu0 %v6070_v45  ;;  %3754 = vmatmul.mubr.bf16.vlgmr.msra.gmra.mxu1 %v6073_v46  ;;  %v6163_v45 = vld [vmem:[#allocation4 + $0x1ec] ss:$16 sps:$4 sm:$0xff]   ;;  %v6261_v46 = vld [vmem:[#allocation9 + $0x10] sm:$0xff]  }
 0x2b9   : > { %3472 = vmatprep.mubr.bf16.mxu0 %v6076_v47  ;;  %3761 = vmatprep.mubr.bf16.mxu1 %v6078_v48  ;;  %v6165_v47 = vld [vmem:[#allocation4 + $0x1e0] ss:$16 sps:$4 sm:$0xff]   ;;  %v6166_v48 = vld [vmem:[#allocation4 + $0x1e8] ss:$16 sps:$4 sm:$0xff]  }
 0x2ba   : > { %5712 = vmatpush3.bf16.msra.mxu1 %v6154_v52  ;;  %5605 = vmatpush3.bf16.msra.mxu0 %v6154_v52  ;;  %v6269_v52 = vld [vmem:[#allocation9] sm:$0xff]  }
 0x2bb   : > { %5606 = vmatprep.subr.bf16.mxu0 %v6179_v58  ;;  %5705 = vmatprep.subr.bf16.mxu1 %v6179_v58 }
 0x2be   : > { %5607 = vmatpush3.bf16.msra.mxu0 %v6179_v58  ;;  %5713 = vmatpush3.bf16.msra.mxu1 %v6179_v58  ;;  %v6178_v58 = vld [vmem:[#allocation4 + $0x228] ss:$16 sps:$4 sm:$0xff]  }
 0x2bf   : > { %5608 = vmatprep.subr.bf16.mxu0 %v6204_v8  ;;  %5706 = vmatprep.subr.bf16.mxu1 %v6204_v8 }
 0x2c0   : > { %3473 = vmatmul.mubr.bf16.gmra.mxu0 %v6080_v49  ;;  %3762 = vmatmul.mubr.bf16.gmra.mxu1 %v6081_v50  ;;  %v6167_v49 = vld [vmem:[#allocation4 + $0x204] ss:$16 sps:$4 sm:$0xff]   ;;  %v6169_v50 = vld [vmem:[#allocation4 + $0x20c] ss:$16 sps:$4 sm:$0xff]  }
 0x2c1   : > { %3480 = vmatprep.mubr.bf16.mxu0 %v6082_v51  ;;  %3769 = vmatprep.mubr.bf16.mxu1 %v6084_v53  ;;  %v6268_v51 = vld [vmem:[#allocation9 + $0x8] sm:$0xff]   ;;  %v6171_v53 = vld [vmem:[#allocation4 + $0x200] ss:$16 sps:$4 sm:$0xff]  }
 0x2c2   : > { %5609 = vmatpush3.bf16.msra.mxu0 %v6204_v8  ;;  %5714 = vmatpush3.bf16.msra.mxu1 %v6204_v8  ;;  %v6198_v8 = vld [vmem:[#allocation4 + $0x2a4] ss:$16 sps:$4 sm:$0xff]  }
 0x2c3   : > { %5610 = vmatprep.subr.bf16.mxu0 %v6229_v25  ;;  %5707 = vmatprep.subr.bf16.mxu1 %v6229_v25 }
 0x2c6   : > { %5611 = vmatpush3.bf16.msra.mxu0 %v6229_v25  ;;  %5715 = vmatpush3.bf16.msra.mxu1 %v6229_v25  ;;  %v6225_v25 = vld [vmem:[#allocation4 + $0x32c] ss:$16 sps:$4 sm:$0xff]  }
 0x2c7   : > { %5612 = vmatprep.subr.bf16.mxu0 %v6254_v41  ;;  %5708 = vmatprep.subr.bf16.mxu1 %v6254_v41 }
 0x2c8   : > { %3481 = vmatmul.mubr.bf16.gmra.mxu0 %v6086_v54  ;;  %3770 = vmatmul.mubr.bf16.gmra.mxu1 %v6087_v55  ;;  %v6172_v54 = vld [vmem:[#allocation4 + $0x208] ss:$16 sps:$4 sm:$0xff]   ;;  %v6173_v55 = vld [vmem:[#allocation4 + $0x224] ss:$16 sps:$4 sm:$0xff]  }
 0x2c9   : > { %3488 = vmatprep.mubr.bf16.mxu0 %v6088_v56  ;;  %3777 = vmatprep.mubr.bf16.mxu1 %v6090_v57  ;;  %v6175_v56 = vld [vmem:[#allocation4 + $0x22c] ss:$16 sps:$4 sm:$0xff]   ;;  %v6177_v57 = vld [vmem:[#allocation4 + $0x220] ss:$16 sps:$4 sm:$0xff]  }
 0x2ca   : > { %5613 = vmatpush3.bf16.msra.mxu0 %v6254_v41  ;;  %5716 = vmatpush3.bf16.msra.mxu1 %v6254_v41 }
 0x2cb   : > { %5614 = vmatprep.subr.bf16.mxu0 %v6261_v46  ;;  %5709 = vmatprep.subr.bf16.mxu1 %v6261_v46 }
 0x2ce   : > { %5615 = vmatpush3.bf16.msra.mxu0 %v6261_v46  ;;  %5717 = vmatpush3.bf16.msra.mxu1 %v6261_v46 }
 0x2cf   : > { %5616 = vmatprep.subr.bf16.mxu0 %v6268_v51  ;;  %5710 = vmatprep.subr.bf16.mxu1 %v6268_v51 }
 0x2d0   : > { %3489 = vmatmul.mubr.bf16.gmra.mxu0 %v6092_v59  ;;  %3778 = vmatmul.mubr.bf16.gmra.mxu1 %v6093_v60  ;;  %v6180_v59 = vld [vmem:[#allocation4 + $0x244] ss:$16 sps:$4 sm:$0xff]   ;;  %v6182_v60 = vld [vmem:[#allocation4 + $0x24c] ss:$16 sps:$4 sm:$0xff]  }
 0x2d1   : > { %3496 = vmatprep.mubr.bf16.mxu0 %v6094_v61  ;;  %3785 = vmatprep.mubr.bf16.mxu1 %v6096_v62  ;;  %v6184_v61 = vld [vmem:[#allocation4 + $0x240] ss:$16 sps:$4 sm:$0xff]   ;;  %v6185_v62 = vld [vmem:[#allocation4 + $0x248] ss:$16 sps:$4 sm:$0xff]  }
 0x2d2   : > { %5617 = vmatpush3.bf16.msra.mxu0 %v6268_v51  ;;  %5718 = vmatpush3.bf16.msra.mxu1 %v6268_v51 }
 0x2d3   : > { %5618 = vmatprep.subr.bf16.mxu0 %v6269_v52  ;;  %5711 = vmatprep.subr.bf16.mxu1 %v6269_v52 }
 0x2d6   : > { %5619 = vmatpush3.bf16.msra.mxu0 %v6269_v52  ;;  %5719 = vmatpush3.bf16.msra.mxu1 %v6269_v52 }
 0x2d8   : > { %3497 = vmatmul.mubr.bf16.gmra.mxu0 %v6098_v63  ;;  %3786 = vmatmul.mubr.bf16.gmra.mxu1 %v6099_v0  ;;  %v6186_v63 = vld [vmem:[#allocation4 + $0x264] ss:$16 sps:$4 sm:$0xff]   ;;  %v6188_v0 = vld [vmem:[#allocation4 + $0x26c] ss:$16 sps:$4 sm:$0xff]  }
 0x2d9   : > { %3504 = vmatprep.mubr.bf16.mxu0 %v6100_v1  ;;  %3793 = vmatprep.mubr.bf16.mxu1 %v6102_v2  ;;  %v6190_v1 = vld [vmem:[#allocation4 + $0x260] ss:$16 sps:$4 sm:$0xff]   ;;  %v6191_v2 = vld [vmem:[#allocation4 + $0x268] ss:$16 sps:$4 sm:$0xff]  }
 0x2e0   : > { %3505 = vmatmul.mubr.bf16.gmra.mxu0 %v6104_v3  ;;  %3794 = vmatmul.mubr.bf16.gmra.mxu1 %v6105_v4  ;;  %v6192_v3 = vld [vmem:[#allocation4 + $0x284] ss:$16 sps:$4 sm:$0xff]   ;;  %v6194_v4 = vld [vmem:[#allocation4 + $0x28c] ss:$16 sps:$4 sm:$0xff]  }
 0x2e1   : > { %3512 = vmatprep.mubr.bf16.mxu0 %v6106_v5  ;;  %3801 = vmatprep.mubr.bf16.mxu1 %v6108_v6  ;;  %v6196_v5 = vld [vmem:[#allocation4 + $0x280] ss:$16 sps:$4 sm:$0xff]   ;;  %v6197_v6 = vld [vmem:[#allocation4 + $0x288] ss:$16 sps:$4 sm:$0xff]  }
 0x2e8   : > { %3513 = vmatmul.mubr.bf16.gmra.mxu0 %v6110_v9  ;;  %3802 = vmatmul.mubr.bf16.gmra.mxu1 %v6111_v10  ;;  %v6200_v9 = vld [vmem:[#allocation4 + $0x2ac] ss:$16 sps:$4 sm:$0xff]   ;;  %v6202_v10 = vld [vmem:[#allocation4 + $0x2a0] ss:$16 sps:$4 sm:$0xff]  }
 0x2e9   : > { %3520 = vmatprep.mubr.bf16.mxu0 %v6112_v11  ;;  %3809 = vmatprep.mubr.bf16.mxu1 %v6114_v12  ;;  %v6203_v11 = vld [vmem:[#allocation4 + $0x2a8] ss:$16 sps:$4 sm:$0xff]   ;;  %v6205_v12 = vld [vmem:[#allocation4 + $0x2c4] ss:$16 sps:$4 sm:$0xff]  }
 0x2f0   : > { %3521 = vmatmul.mubr.bf16.gmra.mxu0 %v6116_v13  ;;  %3810 = vmatmul.mubr.bf16.gmra.mxu1 %v6117_v14  ;;  %v6207_v13 = vld [vmem:[#allocation4 + $0x2cc] ss:$16 sps:$4 sm:$0xff]   ;;  %v6209_v14 = vld [vmem:[#allocation4 + $0x2c0] ss:$16 sps:$4 sm:$0xff]  }
 0x2f1   : > { %3528 = vmatprep.mubr.bf16.mxu0 %v6118_v15  ;;  %3817 = vmatprep.mubr.bf16.mxu1 %v6120_v16  ;;  %v6210_v15 = vld [vmem:[#allocation4 + $0x2c8] ss:$16 sps:$4 sm:$0xff]   ;;  %v6211_v16 = vld [vmem:[#allocation4 + $0x2e4] ss:$16 sps:$4 sm:$0xff]  }
 0x2f8   : > { %3529 = vmatmul.mubr.bf16.gmra.mxu0 %v6122_v17  ;;  %3818 = vmatmul.mubr.bf16.gmra.mxu1 %v6123_v18  ;;  %v6213_v17 = vld [vmem:[#allocation4 + $0x2ec] ss:$16 sps:$4 sm:$0xff]   ;;  %v6215_v18 = vld [vmem:[#allocation4 + $0x2e0] ss:$16 sps:$4 sm:$0xff]  }
 0x2f9   : > { %3536 = vmatprep.mubr.bf16.mxu0 %v6124_v19  ;;  %3825 = vmatprep.mubr.bf16.mxu1 %v6126_v20  ;;  %v6216_v19 = vld [vmem:[#allocation4 + $0x2e8] ss:$16 sps:$4 sm:$0xff]   ;;  %v6217_v20 = vld [vmem:[#allocation4 + $0x304] ss:$16 sps:$4 sm:$0xff]  }
 0x300   : > { %3537 = vmatmul.mubr.bf16.gmra.mxu0 %v6128_v21  ;;  %3826 = vmatmul.mubr.bf16.gmra.mxu1 %v6129_v22  ;;  %v6219_v21 = vld [vmem:[#allocation4 + $0x30c] ss:$16 sps:$4 sm:$0xff]   ;;  %v6221_v22 = vld [vmem:[#allocation4 + $0x300] ss:$16 sps:$4 sm:$0xff]  }
 0x301   : > { %3544 = vmatprep.mubr.bf16.mxu0 %v6130_v23  ;;  %3833 = vmatprep.mubr.bf16.mxu1 %v6132_v24  ;;  %v6222_v23 = vld [vmem:[#allocation4 + $0x308] ss:$16 sps:$4 sm:$0xff]   ;;  %v6223_v24 = vld [vmem:[#allocation4 + $0x324] ss:$16 sps:$4 sm:$0xff]  }
 0x308   : > { %3545 = vmatmul.mubr.bf16.gmra.mxu0 %v6134_v26  ;;  %3834 = vmatmul.mubr.bf16.gmra.mxu1 %v6135_v27 }
 0x309   : > { %3552 = vmatprep.mubr.bf16.mxu0 %v6136_v28  ;;  %3841 = vmatprep.mubr.bf16.mxu1 %v6138_v29 }
 0x310   : > { %3553 = vmatmul.mubr.bf16.gmra.mxu0 %v6140_v7  ;;  %3842 = vmatmul.mubr.bf16.gmra.mxu1 %v6141_v30  ;;  %v6227_v30 = vld [vmem:[#allocation4 + $0x320] ss:$16 sps:$4 sm:$0xff]  }
 0x311   : > { %3560 = vmatprep.mubr.bf16.mxu0 %v6142_v31  ;;  %3849 = vmatprep.mubr.bf16.mxu1 %v6144_v32  ;;  %v6228_v32 = vld [vmem:[#allocation4 + $0x328] ss:$16 sps:$4 sm:$0xff]  }
 0x318   : > { %3561 = vmatmul.mubr.bf16.gmra.mxu0 %v6146_v33  ;;  %3850 = vmatmul.mubr.bf16.gmra.mxu1 %v6147_v34  ;;  %v6230_v33 = vld [vmem:[#allocation4 + $0x344] ss:$16 sps:$4 sm:$0xff]  }
 0x319   : > { %3568 = vmatprep.mubr.bf16.mxu0 %v6148_v35  ;;  %3857 = vmatprep.mubr.bf16.mxu1 %v6150_v36  ;;  %v6232_v35 = vld [vmem:[#allocation4 + $0x34c] ss:$16 sps:$4 sm:$0xff]  }
 0x320   : > { %3569 = vmatmul.mubr.bf16.gmra.mxu0 %v6152_v37  ;;  %3858 = vmatmul.mubr.bf16.gmra.mxu1 %v6153_v38 }
 0x321   : > { %3576 = vmatprep.mubr.bf16.mxu0 %v6155_v39  ;;  %3865 = vmatprep.mubr.bf16.mxu1 %v6157_v40 }
 0x328   : > { %3577 = vmatmul.mubr.bf16.gmra.mxu0 %v6159_v42  ;;  %3866 = vmatmul.mubr.bf16.gmra.mxu1 %v6160_v43  ;;  %v6234_v42 = vld [vmem:[#allocation4 + $0x340] ss:$16 sps:$4 sm:$0xff]  }
 0x329   : > { %3584 = vmatprep.mubr.bf16.mxu0 %v6161_v44  ;;  %3873 = vmatprep.mubr.bf16.mxu1 %v6163_v45  ;;  %v6235_v44 = vld [vmem:[#allocation4 + $0x348] ss:$16 sps:$4 sm:$0xff]   ;;  %v6236_v45 = vld [vmem:[#allocation4 + $0x364] ss:$16 sps:$4 sm:$0xff]  }
 0x330   : > { %3585 = vmatmul.mubr.bf16.gmra.mxu0 %v6165_v47  ;;  %3874 = vmatmul.mubr.bf16.gmra.mxu1 %v6166_v48  ;;  %v6238_v47 = vld [vmem:[#allocation4 + $0x36c] ss:$16 sps:$4 sm:$0xff]  }
 0x331   : > { %3592 = vmatprep.mubr.bf16.mxu0 %v6167_v49  ;;  %3881 = vmatprep.mubr.bf16.mxu1 %v6169_v50 }
 0x338   : > { %3593 = vmatmul.mubr.bf16.gmra.mxu0 %v6171_v53  ;;  %3882 = vmatmul.mubr.bf16.gmra.mxu1 %v6172_v54  ;;  %v6240_v54 = vld [vmem:[#allocation4 + $0x360] ss:$16 sps:$4 sm:$0xff]  }
 0x339   : > { %3600 = vmatprep.mubr.bf16.mxu0 %v6173_v55  ;;  %3889 = vmatprep.mubr.bf16.mxu1 %v6175_v56  ;;  %v6241_v56 = vld [vmem:[#allocation4 + $0x368] ss:$16 sps:$4 sm:$0xff]  }
 0x340   : > { %3601 = vmatmul.mubr.bf16.gmra.mxu0 %v6177_v57  ;;  %3890 = vmatmul.mubr.bf16.gmra.mxu1 %v6178_v58  ;;  %v6244_v57 = vld [vmem:[#allocation4 + $0x384] ss:$16 sps:$4 sm:$0xff]  }
 0x341   : > { %3608 = vmatprep.mubr.bf16.mxu0 %v6180_v59  ;;  %3897 = vmatprep.mubr.bf16.mxu1 %v6182_v60  ;;  %v6247_v59 = vld [vmem:[#allocation4 + $0x38c] ss:$16 sps:$4 sm:$0xff]  }
 0x348   : > { %3609 = vmatmul.mubr.bf16.gmra.mxu0 %v6184_v61  ;;  %3898 = vmatmul.mubr.bf16.gmra.mxu1 %v6185_v62 }
 0x349   : > { %3616 = vmatprep.mubr.bf16.mxu0 %v6186_v63  ;;  %3905 = vmatprep.mubr.bf16.mxu1 %v6188_v0 }
 0x350   : > { %3617 = vmatmul.mubr.bf16.gmra.mxu0 %v6190_v1  ;;  %3906 = vmatmul.mubr.bf16.gmra.mxu1 %v6191_v2  ;;  %v6242_v2 = vld [vmem:[#allocation4 + $0x380] ss:$16 sps:$4 sm:$0xff]  }
 0x351   : > { %3624 = vmatprep.mubr.bf16.mxu0 %v6192_v3  ;;  %3913 = vmatprep.mubr.bf16.mxu1 %v6194_v4  ;;  %v6245_v4 = vld [vmem:[#allocation4 + $0x388] ss:$16 sps:$4 sm:$0xff]  }
 0x358   : > { %3625 = vmatmul.mubr.bf16.gmra.mxu0 %v6196_v5  ;;  %3914 = vmatmul.mubr.bf16.gmra.mxu1 %v6197_v6  ;;  %v6250_v5 = vld [vmem:[#allocation4 + $0x3a4] ss:$16 sps:$4 sm:$0xff]  }
 0x359   : > { %3632 = vmatprep.mubr.bf16.mxu0 %v6198_v8  ;;  %3921 = vmatprep.mubr.bf16.mxu1 %v6200_v9  ;;  %v6253_v8 = vld [vmem:[#allocation4 + $0x3ac] ss:$16 sps:$4 sm:$0xff]  }
 0x360   : > { %3633 = vmatmul.mubr.bf16.gmra.mxu0 %v6202_v10  ;;  %3922 = vmatmul.mubr.bf16.gmra.mxu1 %v6203_v11 }
 0x361   : > { %3640 = vmatprep.mubr.bf16.mxu0 %v6205_v12  ;;  %3929 = vmatprep.mubr.bf16.mxu1 %v6207_v13 }
 0x368   : > { %3641 = vmatmul.mubr.bf16.gmra.mxu0 %v6209_v14  ;;  %3930 = vmatmul.mubr.bf16.gmra.mxu1 %v6210_v15  ;;  %v6248_v15 = vld [vmem:[#allocation4 + $0x3a0] ss:$16 sps:$4 sm:$0xff]  }
 0x369   : > { %3648 = vmatprep.mubr.bf16.mxu0 %v6211_v16  ;;  %3937 = vmatprep.mubr.bf16.mxu1 %v6213_v17  ;;  %v6251_v17 = vld [vmem:[#allocation4 + $0x3a8] ss:$16 sps:$4 sm:$0xff]  }
 0x370   : > { %3649 = vmatmul.mubr.bf16.gmra.mxu0 %v6215_v18  ;;  %3938 = vmatmul.mubr.bf16.gmra.mxu1 %v6216_v19  ;;  %v6257_v18 = vld [vmem:[#allocation4 + $0x3c4] ss:$16 sps:$4 sm:$0xff]  }
 0x371   : > { %3656 = vmatprep.mubr.bf16.mxu0 %v6217_v20  ;;  %3945 = vmatprep.mubr.bf16.mxu1 %v6219_v21  ;;  %v6260_v20 = vld [vmem:[#allocation4 + $0x3cc] ss:$16 sps:$4 sm:$0xff]  }
 0x378   : > { %v6789_v26 = vpop.f32.mrf.mxu0  ;;  %3657 = vmatmul.mubr.bf16.gmra.mxu0 %v6221_v22  ;;  %v6791_v27 = vpop.f32.mrf.mxu1  ;;  %3946 = vmatmul.mubr.bf16.gmra.mxu1 %v6222_v23 }
 0x379   : > { %3664 = vmatprep.mubr.bf16.mxu0 %v6223_v24  ;;  %3953 = vmatprep.mubr.bf16.mxu1 %v6225_v25 }
 0x37a   : > { %v3468_v28 = vpop.f32.mrf.mxu0  ;;  %v3757_v29 = vpop.f32.mrf.mxu1 }
 0x37b   : > { %v6255_v29 = vld [vmem:[#allocation4 + $0x3c0] ss:$16 sps:$4 sm:$0xff]  }
 0x37c   : > { %v6793_v7 = vpop.f32.mrf.mxu0  ;;  %v6795_v31 = vpop.f32.mrf.mxu1 }
 0x37e   : > { %v3471_v34 = vpop.f32.mrf.mxu0  ;;  %v3760_v36 = vpop.f32.mrf.mxu1 }
 0x380   : > { %v6797_v37 = vpop.f32.mrf.mxu0  ;;  %3665 = vmatmul.mubr.bf16.gmra.mxu0 %v6227_v30  ;;  %v6799_v38 = vpop.f32.mrf.mxu1  ;;  %3954 = vmatmul.mubr.bf16.gmra.mxu1 %v6228_v32  ;;  %v6258_v32 = vld [vmem:[#allocation4 + $0x3c8] ss:$16 sps:$4 sm:$0xff]  }
 0x381   : > { %3672 = vmatprep.mubr.bf16.mxu0 %v6230_v33  ;;  %3961 = vmatprep.mubr.bf16.mxu1 %v6232_v35  ;;  %v6264_v33 = vld [vmem:[#allocation4 + $0x3e4] ss:$16 sps:$4 sm:$0xff]   ;;  %v6267_v35 = vld [vmem:[#allocation4 + $0x3ec] ss:$16 sps:$4 sm:$0xff]  }
 0x382   : > { %v3476_v39 = vpop.f32.mrf.mxu0  ;;  %v3765_v40 = vpop.f32.mrf.mxu1 }
 0x384   : > { %v6801_v41 = vpop.f32.mrf.mxu0  ;;  %v6803_v43 = vpop.f32.mrf.mxu1 }
 0x386   : > { %v3479_v46 = vpop.f32.mrf.mxu0  ;;  %v3768_v48 = vpop.f32.mrf.mxu1 }
 0x387   : > { %v3756_v48 = vadd.f32 %v6791_v27, %v6789_v26  ;;  %v3764_v26 = vadd.f32 %v6799_v38, %v6797_v37 }
 0x388   : > { %v6805_v49 = vpop.f32.mrf.mxu0  ;;  %3673 = vmatmul.mubr.bf16.gmra.mxu0 %v6234_v42  ;;  %v6807_v50 = vpop.f32.mrf.mxu1  ;;  %3962 = vmatmul.mubr.bf16.gmra.mxu1 %v6235_v44  ;;  %v3759_v44 = vadd.f32 %v6795_v31, %v6793_v7 }
 0x389   : > { %3680 = vmatprep.mubr.bf16.mxu0 %v6236_v45  ;;  %3969 = vmatprep.mubr.bf16.mxu1 %v6238_v47  ;;  %v6262_v47 = vld [vmem:[#allocation4 + $0x3e0] ss:$16 sps:$4 sm:$0xff]  }
 0x38a   : > { %v3484_v51 = vpop.f32.mrf.mxu0  ;;  %v3773_v52 = vpop.f32.mrf.mxu1 }
 0x38b   : > { %v6265_v52 = vld [vmem:[#allocation4 + $0x3e8] ss:$16 sps:$4 sm:$0xff]  }
 0x38c   : > { %v6809_v53 = vpop.f32.mrf.mxu0  ;;  %v6811_v55 = vpop.f32.mrf.mxu1 }
 0x38d   : > { %v3775_v31 = vadd.f32 %v6811_v55, %v6809_v53 }
 0x38e   : > { %v3487_v58 = vpop.f32.mrf.mxu0  ;;  %v3776_v60 = vpop.f32.mrf.mxu1 }
 0x38f   : > { %v3767_v60 = vadd.f32 %v6803_v43, %v6801_v41 }
 0x390   : > { %v6813_v61 = vpop.f32.mrf.mxu0  ;;  %3681 = vmatmul.mubr.bf16.gmra.mxu0 %v6240_v54  ;;  %v6815_v62 = vpop.f32.mrf.mxu1  ;;  %3970 = vmatmul.mubr.bf16.gmra.mxu1 %v6241_v56  ;;  %v4010_v56 = vpack.c.bf16 %v3759_v44, %v3756_v48 }
 0x391   : > { %3688 = vmatprep.mubr.bf16.mxu0 %v6244_v57  ;;  %3977 = vmatprep.mubr.bf16.mxu1 %v6247_v59  ;;  %v3780_v38 = vadd.f32 %v6815_v62, %v6813_v61 }
 0x392   : > { %v3492_v63 = vpop.f32.mrf.mxu0  ;;  %v3781_v0 = vpop.f32.mrf.mxu1 }
 0x393   : > { %v3772_v0 = vadd.f32 %v6807_v50, %v6805_v49 }
 0x394   : > { %v6817_v1 = vpop.f32.mrf.mxu0  ;;  %v6819_v3 = vpop.f32.mrf.mxu1 }
 0x395   : > { %v3783_v43 = vadd.f32 %v6819_v3, %v6817_v1 }
 0x396   : > { %v3495_v6 = vpop.f32.mrf.mxu0  ;;  %v3784_v9 = vpop.f32.mrf.mxu1 }
 0x397   : > { %v4012_v6 = vpack.c.bf16 %v3775_v31, %v3772_v0 }
 0x398   : > { %v6821_v10 = vpop.f32.mrf.mxu0  ;;  %3689 = vmatmul.mubr.bf16.gmra.mxu0 %v6242_v2  ;;  %v6823_v11 = vpop.f32.mrf.mxu1  ;;  %3978 = vmatmul.mubr.bf16.gmra.mxu1 %v6245_v4  ;;  %v4011_v4 = vpack.c.bf16 %v3767_v60, %v3764_v26 }
 0x399   : > { %3696 = vmatprep.mubr.bf16.mxu0 %v6250_v5  ;;  %3985 = vmatprep.mubr.bf16.mxu1 %v6253_v8  ;;  %v3788_v50 = vadd.f32 %v6823_v11, %v6821_v10 }
 0x39a   : > { %v3500_v12 = vpop.f32.mrf.mxu0  ;;  %v3789_v13 = vpop.f32.mrf.mxu1 }
 0x39b   : > { %v4013_v13 = vpack.c.bf16 %v3783_v43, %v3780_v38 }
 0x39c   : > { %v6825_v14 = vpop.f32.mrf.mxu0  ;;  %v3790_v16 = vpop.f32.mrf.mxu1 }
 0x39d   : > { %v3791_v55 = vadd.f32 %v3790_v16, %v6825_v14 }
 0x39e   : > { %v3503_v19 = vpop.f32.mrf.mxu0  ;;  %v3792_v21 = vpop.f32.mrf.mxu1 }
 0x3a0   : > { %v6827_v22 = vpop.f32.mrf.mxu0  ;;  %3697 = vmatmul.mubr.bf16.gmra.mxu0 %v6248_v15  ;;  %v6829_v23 = vpop.f32.mrf.mxu1  ;;  %3986 = vmatmul.mubr.bf16.gmra.mxu1 %v6251_v17  ;;  %v4014_v17 = vpack.c.bf16 %v3791_v55, %v3788_v50 }
 0x3a1   : > { %3704 = vmatprep.mubr.bf16.mxu0 %v6257_v18  ;;  %3993 = vmatprep.mubr.bf16.mxu1 %v6260_v20  ;;  %v3796_v61 = vadd.f32 %v6829_v23, %v6827_v22 }
 0x3a2   : > { %v3508_v24 = vpop.f32.mrf.mxu0  ;;  %v3797_v25 = vpop.f32.mrf.mxu1 }
 0x3a4   : > { %v3509_v28 = vpop.f32.mrf.mxu0  ;;  %v3798_v30 = vpop.f32.mrf.mxu1 }
 0x3a5   : > { %v3799_v1 = vadd.f32 %v3798_v30, %v3509_v28 }
 0x3a6   : > { %v3511_v34 = vpop.f32.mrf.mxu0  ;;  %v3800_v36 = vpop.f32.mrf.mxu1 }
 0x3a7   : > { %v4015_v10 = vpack.c.bf16 %v3799_v1, %v3796_v61 }
 0x3a8   : > { %v3514_v39 = vpop.f32.mrf.mxu0  ;;  %3705 = vmatmul.mubr.bf16.gmra.mxu0 %v6255_v29  ;;  %v3803_v40 = vpop.f32.mrf.mxu1  ;;  %3994 = vmatmul.mubr.bf16.gmra.mxu1 %v6258_v32 }
 0x3a9   : > { %3712 = vmatprep.mubr.bf16.mxu0 %v6264_v33  ;;  %4001 = vmatprep.mubr.bf16.mxu1 %v6267_v35  ;;  %v3804_v21 = vadd.f32 %v3803_v40, %v3514_v39 }
 0x3aa   : > { %v3516_v42 = vpop.f32.mrf.mxu0  ;;  %v3805_v45 = vpop.f32.mrf.mxu1 }
 0x3ac   : > { %v3517_v46 = vpop.f32.mrf.mxu0  ;;  %v3806_v51 = vpop.f32.mrf.mxu1 }
 0x3ad   : > { %v3807_v14 = vadd.f32 %v3806_v51, %v3517_v46 }
 0x3ae   : > { %v3519_v54 = vpop.f32.mrf.mxu0  ;;  %v3808_v57 = vpop.f32.mrf.mxu1 }
 0x3af   : > { %v4016_v25 = vpack.c.bf16 %v3807_v14, %v3804_v21 }
 0x3b0   : > { %v3522_v58 = vpop.f32.mrf.mxu0  ;;  %3713 = vmatmul.mubr.bf16.gmra.mxu0 %v6262_v47  ;;  %v3811_v59 = vpop.f32.mrf.mxu1  ;;  %4002 = vmatmul.mubr.bf16.gmra.mxu1 %v6265_v52 }
 0x3b1   : > { %5620 = vmatprep.mubr.bf16.mxu0 %v4010_v56  ;;  %v3812_v36 = vadd.f32 %v3811_v59, %v3522_v58 }
 0x3b2   : > { %v3524_v7 = vpop.f32.mrf.mxu0  ;;  %v3813_v63 = vpop.f32.mrf.mxu1 }
 0x3b4   : > { %v3525_v27 = vpop.f32.mrf.mxu0  ;;  %v3814_v2 = vpop.f32.mrf.mxu1 }
 0x3b5   : > { %v3815_v34 = vadd.f32 %v3814_v2, %v3525_v27 }
 0x3b6   : > { %v3527_v5 = vpop.f32.mrf.mxu0  ;;  %v3816_v8 = vpop.f32.mrf.mxu1 }
 0x3b7   : > { %v4017_v22 = vpack.c.bf16 %v3815_v34, %v3812_v36 }
 0x3b8   : > { %v3530_v9 = vpop.f32.mrf.mxu0  ;;  %5621 = vmatmul.mubr.bf16.vlgmr.msra.gmra.mxu0 %v4011_v4  ;;  %v3819_v41 = vpop.f32.mrf.mxu1 }
 0x3b9   : > { %5624 = vmatprep.mubr.bf16.mxu0 %v4012_v6  ;;  %v3820_v44 = vadd.f32 %v3819_v41, %v3530_v9 }
 0x3ba   : > { %v3532_v53 = vpop.f32.mrf.mxu0  ;;  %v3821_v37 = vpop.f32.mrf.mxu1 }
 0x3bc   : > { %v3533_v49 = vpop.f32.mrf.mxu0  ;;  %v3822_v12 = vpop.f32.mrf.mxu1 }
 0x3bd   : > { %v3823_v28 = vadd.f32 %v3822_v12, %v3533_v49 }
 0x3be   : > { %v3535_v15 = vpop.f32.mrf.mxu0  ;;  %v3824_v18 = vpop.f32.mrf.mxu1 }
 0x3bf   : > { %v4018_v39 = vpack.c.bf16 %v3823_v28, %v3820_v44 }
 0x3c0   : > { %v3538_v19 = vpop.f32.mrf.mxu0  ;;  %5625 = vmatmul.mubr.bf16.gmra.mxu0 %v4013_v13  ;;  %v3827_v20 = vpop.f32.mrf.mxu1 }
 0x3c1   : > { %5628 = vmatprep.mubr.bf16.mxu0 %v4014_v17  ;;  %v3828_v56 = vadd.f32 %v3827_v20, %v3538_v19 }
 0x3c2   : > { %v3540_v3 = vpop.f32.mrf.mxu0  ;;  %v3829_v16 = vpop.f32.mrf.mxu1 }
 0x3c4   : > { %v3541_v62 = vpop.f32.mrf.mxu0  ;;  %v3830_v24 = vpop.f32.mrf.mxu1 }
 0x3c5   : > { %v3831_v48 = vadd.f32 %v3830_v24, %v3541_v62 }
 0x3c6   : > { %v3543_v11 = vpop.f32.mrf.mxu0  ;;  %v3832_v29 = vpop.f32.mrf.mxu1 }
 0x3c7   : > { %v4019_v58 = vpack.c.bf16 %v3831_v48, %v3828_v56 }
 0x3c8   : > { %v3546_v32 = vpop.f32.mrf.mxu0  ;;  %5629 = vmatmul.mubr.bf16.gmra.mxu0 %v4015_v10  ;;  %v3835_v33 = vpop.f32.mrf.mxu1 }
 0x3c9   : > { %5632 = vmatprep.mubr.bf16.mxu0 %v4016_v25  ;;  %v3836_v60 = vadd.f32 %v3835_v33, %v3546_v32 }
 0x3ca   : > { %v3548_v35 = vpop.f32.mrf.mxu0  ;;  %v3837_v30 = vpop.f32.mrf.mxu1 }
 0x3cc   : > { %v3549_v42 = vpop.f32.mrf.mxu0  ;;  %v3838_v45 = vpop.f32.mrf.mxu1 }
 0x3cd   : > { %v3839_v52 = vadd.f32 %v3838_v45, %v3549_v42 }
 0x3ce   : > { %v3551_v23 = vpop.f32.mrf.mxu0  ;;  %v3840_v40 = vpop.f32.mrf.mxu1 }
 0x3cf   : > { %v4020_v31 = vpack.c.bf16 %v3839_v52, %v3836_v60 }
 0x3d0   : > { %v3554_v46 = vpop.f32.mrf.mxu0  ;;  %5633 = vmatmul.mubr.bf16.gmra.mxu0 %v4017_v22  ;;  %v3843_v47 = vpop.f32.mrf.mxu1 }
 0x3d1   : > { %5636 = vmatprep.mubr.bf16.mxu0 %v4018_v39  ;;  %v3844_v5 = vadd.f32 %v3843_v47, %v3554_v46 }
 0x3d2   : > { %v3556_v51 = vpop.f32.mrf.mxu0  ;;  %v3845_v54 = vpop.f32.mrf.mxu1 }
 0x3d4   : > { %v3557_v57 = vpop.f32.mrf.mxu0  ;;  %v3846_v7 = vpop.f32.mrf.mxu1 }
 0x3d5   : > { %v3847_v0 = vadd.f32 %v3846_v7, %v3557_v57 }
 0x3d6   : > { %v3559_v59 = vpop.f32.mrf.mxu0  ;;  %v3848_v63 = vpop.f32.mrf.mxu1 }
 0x3d7   : > { %v4021_v9 = vpack.c.bf16 %v3847_v0, %v3844_v5 }
 0x3d8   : > { %v3562_v26 = vpop.f32.mrf.mxu0  ;;  %5637 = vmatmul.mubr.bf16.gmra.mxu0 %v4019_v58  ;;  %v3851_v27 = vpop.f32.mrf.mxu1 }
 0x3d9   : > { %5640 = vmatprep.mubr.bf16.mxu0 %v4020_v31  ;;  %v3852_v41 = vadd.f32 %v3851_v27, %v3562_v26 }
 0x3da   : > { %v3564_v2 = vpop.f32.mrf.mxu0  ;;  %v3853_v4 = vpop.f32.mrf.mxu1 }
 0x3dc   : > { %v3565_v6 = vpop.f32.mrf.mxu0  ;;  %v3854_v8 = vpop.f32.mrf.mxu1 }
 0x3dd   : > { %v3855_v43 = vadd.f32 %v3854_v8, %v3565_v6 }
 0x3de   : > { %v3567_v53 = vpop.f32.mrf.mxu0  ;;  %v3856_v55 = vpop.f32.mrf.mxu1 }
 0x3df   : > { %v4022_v37 = vpack.c.bf16 %v3855_v43, %v3852_v41 }
 0x3e0   : > { %v3570_v38 = vpop.f32.mrf.mxu0  ;;  %5641 = vmatmul.mubr.bf16.gmra.mxu0 %v4021_v9  ;;  %v3859_v49 = vpop.f32.mrf.mxu1 }
 0x3e1   : > { %5644 = vmatprep.mubr.bf16.mxu0 %v4022_v37  ;;  %v3860_v17 = vadd.f32 %v3859_v49, %v3570_v38 }
 0x3e2   : > { %v3572_v50 = vpop.f32.mrf.mxu0  ;;  %v3861_v12 = vpop.f32.mrf.mxu1 }
 0x3e4   : > { %v3573_v13 = vpop.f32.mrf.mxu0  ;;  %v3862_v15 = vpop.f32.mrf.mxu1 }
 0x3e5   : > { %v3863_v18 = vadd.f32 %v3862_v15, %v3573_v13 }
 0x3e6   : > { %v3575_v19 = vpop.f32.mrf.mxu0  ;;  %v3864_v20 = vpop.f32.mrf.mxu1 }
 0x3e7   : > { %v4023_v1 = vpack.c.bf16 %v3863_v18, %v3860_v17 }
 0x3e8   : > { %v3578_v3 = vpop.f32.mrf.mxu0  ;;  %v3867_v14 = vpop.f32.mrf.mxu1 }
 0x3e9   : > { %5645 = vmatmul.mubr.bf16.gmra.mxu0 %v4023_v1  ;;  %v3868_v24 = vadd.f32 %v3867_v14, %v3578_v3 }
 0x3ea   : > { %v3580_v16 = vpop.f32.mrf.mxu0  ;;  %v3869_v61 = vpop.f32.mrf.mxu1 }
 0x3ec   : > { %v3581_v62 = vpop.f32.mrf.mxu0  ;;  %v3870_v21 = vpop.f32.mrf.mxu1 }
 0x3ed   : > { %v3871_v10 = vadd.f32 %v3870_v21, %v3581_v62 }
 0x3ee   : > { %v3583_v11 = vpop.f32.mrf.mxu0  ;;  %v3872_v25 = vpop.f32.mrf.mxu1 }
 0x3ef   : > { %v4024_v29 = vpack.c.bf16 %v3871_v10, %v3868_v24 }
 0x3f0   : > { %v3586_v32 = vpop.f32.mrf.mxu0  ;;  %v3875_v33 = vpop.f32.mrf.mxu1 }
 0x3f1   : > { %5648 = vmatprep.mubr.bf16.mxu0 %v4024_v29  ;;  %v3876_v36 = vadd.f32 %v3875_v33, %v3586_v32 }
 0x3f2   : > { %v3588_v34 = vpop.f32.mrf.mxu0  ;;  %v3877_v35 = vpop.f32.mrf.mxu1 }
 0x3f4   : > { %v3589_v28 = vpop.f32.mrf.mxu0  ;;  %v3878_v30 = vpop.f32.mrf.mxu1 }
 0x3f5   : > { %v3879_v42 = vadd.f32 %v3878_v30, %v3589_v28 }
 0x3f6   : > { %v3591_v44 = vpop.f32.mrf.mxu0  ;;  %v3880_v45 = vpop.f32.mrf.mxu1 }
 0x3f7   : > { %v4025_v22 = vpack.c.bf16 %v3879_v42, %v3876_v36 }
 0x3f8   : > { %v3594_v23 = vpop.f32.mrf.mxu0  ;;  %v3883_v39 = vpop.f32.mrf.mxu1 }
 0x3f9   : > { %5649 = vmatmul.mubr.bf16.gmra.mxu0 %v4025_v22  ;;  %v3884_v51 = vadd.f32 %v3883_v39, %v3594_v23 }
 0x3fa   : > { %v3596_v40 = vpop.f32.mrf.mxu0  ;;  %v3885_v46 = vpop.f32.mrf.mxu1 }
 0x3fc   : > { %v3597_v47 = vpop.f32.mrf.mxu0  ;;  %v3886_v48 = vpop.f32.mrf.mxu1 }
 0x3fd   : > { %v3887_v52 = vadd.f32 %v3886_v48, %v3597_v47 }
 0x3fe   : > { %v3599_v54 = vpop.f32.mrf.mxu0  ;;  %v3888_v56 = vpop.f32.mrf.mxu1 }
 0x3ff   : > { %v4026_v57 = vpack.c.bf16 %v3887_v52, %v3884_v51 }
 0x400   : > { %v3602_v60 = vpop.f32.mrf.mxu0  ;;  %v3891_v7 = vpop.f32.mrf.mxu1 }
 0x401   : > { %5652 = vmatprep.mubr.bf16.mxu0 %v4026_v57  ;;  %v3892_v26 = vadd.f32 %v3891_v7, %v3602_v60 }
 0x402   : > { %v3604_v58 = vpop.f32.mrf.mxu0  ;;  %v3893_v59 = vpop.f32.mrf.mxu1 }
 0x404   : > { %v3605_v31 = vpop.f32.mrf.mxu0  ;;  %v3894_v63 = vpop.f32.mrf.mxu1 }
 0x405   : > { %v3895_v27 = vadd.f32 %v3894_v63, %v3605_v31 }
 0x406   : > { %v3607_v0 = vpop.f32.mrf.mxu0  ;;  %v3896_v2 = vpop.f32.mrf.mxu1 }
 0x407   : > { %v4027_v4 = vpack.c.bf16 %v3895_v27, %v3892_v26 }
 0x408   : > { %v3610_v5 = vpop.f32.mrf.mxu0  ;;  %v3899_v6 = vpop.f32.mrf.mxu1 }
 0x409   : > { %5653 = vmatmul.mubr.bf16.gmra.mxu0 %v4027_v4  ;;  %v3900_v53 = vadd.f32 %v3899_v6, %v3610_v5 }
 0x40a   : > { %v3612_v8 = vpop.f32.mrf.mxu0  ;;  %v3901_v9 = vpop.f32.mrf.mxu1 }
 0x40c   : > { %v3613_v41 = vpop.f32.mrf.mxu0  ;;  %v3902_v43 = vpop.f32.mrf.mxu1 }
 0x40d   : > { %v3903_v55 = vadd.f32 %v3902_v43, %v3613_v41 }
 0x40e   : > { %v3615_v37 = vpop.f32.mrf.mxu0  ;;  %v3904_v38 = vpop.f32.mrf.mxu1 }
 0x40f   : > { %v4028_v49 = vpack.c.bf16 %v3903_v55, %v3900_v53 }
 0x410   : > { %v3618_v50 = vpop.f32.mrf.mxu0  ;;  %v3907_v12 = vpop.f32.mrf.mxu1 }
 0x411   : > { %5656 = vmatprep.mubr.bf16.mxu0 %v4028_v49  ;;  %v3908_v19 = vadd.f32 %v3907_v12, %v3618_v50 }
 0x412   : > { %v3620_v13 = vpop.f32.mrf.mxu0  ;;  %v3909_v15 = vpop.f32.mrf.mxu1 }
 0x414   : > { %v3621_v17 = vpop.f32.mrf.mxu0  ;;  %v3910_v18 = vpop.f32.mrf.mxu1 }
 0x415   : > { %v3911_v20 = vadd.f32 %v3910_v18, %v3621_v17 }
 0x416   : > { %v3623_v1 = vpop.f32.mrf.mxu0  ;;  %v3912_v3 = vpop.f32.mrf.mxu1 }
 0x417   : > { %v4029_v14 = vpack.c.bf16 %v3911_v20, %v3908_v19 }
 0x418   : > { %v3626_v16 = vpop.f32.mrf.mxu0  ;;  %v3915_v61 = vpop.f32.mrf.mxu1 }
 0x419   : > { %5657 = vmatmul.mubr.bf16.gmra.mxu0 %v4029_v14  ;;  %v3916_v11 = vadd.f32 %v3915_v61, %v3626_v16 }
 0x41a   : > { %v3628_v62 = vpop.f32.mrf.mxu0  ;;  %v3917_v21 = vpop.f32.mrf.mxu1 }
 0x41c   : > { %v3629_v24 = vpop.f32.mrf.mxu0  ;;  %v3918_v10 = vpop.f32.mrf.mxu1 }
 0x41d   : > { %v3919_v25 = vadd.f32 %v3918_v10, %v3629_v24 }
 0x41e   : > { %v3631_v29 = vpop.f32.mrf.mxu0  ;;  %v3920_v32 = vpop.f32.mrf.mxu1 }
 0x41f   : > { %v4030_v33 = vpack.c.bf16 %v3919_v25, %v3916_v11 }
 0x420   : > { %v3634_v34 = vpop.f32.mrf.mxu0  ;;  %v3923_v35 = vpop.f32.mrf.mxu1 }
 0x421   : > { %5660 = vmatprep.mubr.bf16.mxu0 %v4030_v33  ;;  %v3924_v44 = vadd.f32 %v3923_v35, %v3634_v34 }
 0x422   : > { %v3636_v28 = vpop.f32.mrf.mxu0  ;;  %v3925_v30 = vpop.f32.mrf.mxu1 }
 0x424   : > { %v3637_v36 = vpop.f32.mrf.mxu0  ;;  %v3926_v42 = vpop.f32.mrf.mxu1 }
 0x425   : > { %v3927_v45 = vadd.f32 %v3926_v42, %v3637_v36 }
 0x426   : > { %v3639_v22 = vpop.f32.mrf.mxu0  ;;  %v3928_v23 = vpop.f32.mrf.mxu1 }
 0x427   : > { %v4031_v39 = vpack.c.bf16 %v3927_v45, %v3924_v44 }
 0x428   : > { %v3642_v40 = vpop.f32.mrf.mxu0  ;;  %v3931_v46 = vpop.f32.mrf.mxu1 }
 0x429   : > { %5661 = vmatmul.mubr.bf16.gmra.mxu0 %v4031_v39  ;;  %v3932_v54 = vadd.f32 %v3931_v46, %v3642_v40 }
 0x42a   : > { %v3644_v47 = vpop.f32.mrf.mxu0  ;;  %v3933_v48 = vpop.f32.mrf.mxu1 }
 0x42c   : > { %v3645_v51 = vpop.f32.mrf.mxu0  ;;  %v3934_v52 = vpop.f32.mrf.mxu1 }
 0x42d   : > { %v3935_v56 = vadd.f32 %v3934_v52, %v3645_v51 }
 0x42e   : > { %v3647_v57 = vpop.f32.mrf.mxu0  ;;  %v3936_v60 = vpop.f32.mrf.mxu1 }
 0x42f   : > { %v4032_v7 = vpack.c.bf16 %v3935_v56, %v3932_v54 }
 0x430   : > { %v3650_v58 = vpop.f32.mrf.mxu0  ;;  %v3939_v59 = vpop.f32.mrf.mxu1 }
 0x431   : > { %5664 = vmatprep.mubr.bf16.mxu1 %v4032_v7  ;;  %v3940_v0 = vadd.f32 %v3939_v59, %v3650_v58 }
 0x432   : > { %v3652_v31 = vpop.f32.mrf.mxu0  ;;  %v3941_v63 = vpop.f32.mrf.mxu1 }
 0x434   : > { %v3653_v26 = vpop.f32.mrf.mxu0  ;;  %v3942_v27 = vpop.f32.mrf.mxu1 }
 0x435   : > { %v3943_v2 = vadd.f32 %v3942_v27, %v3653_v26 }
 0x436   : > { %v3655_v4 = vpop.f32.mrf.mxu0  ;;  %v3944_v5 = vpop.f32.mrf.mxu1 }
 0x437   : > { %v4033_v6 = vpack.c.bf16 %v3943_v2, %v3940_v0 }
 0x438   : > { %v3658_v8 = vpop.f32.mrf.mxu0  ;;  %v3947_v9 = vpop.f32.mrf.mxu1 }
 0x439   : > { %5665 = vmatmul.mubr.bf16.vlgmr.msra.gmra.mxu1 %v4033_v6  ;;  %v3948_v37 = vadd.f32 %v3947_v9, %v3658_v8 }
 0x43a   : > { %v3660_v41 = vpop.f32.mrf.mxu0  ;;  %v3949_v43 = vpop.f32.mrf.mxu1 }
 0x43c   : > { %v3661_v53 = vpop.f32.mrf.mxu0  ;;  %v3950_v55 = vpop.f32.mrf.mxu1 }
 0x43d   : > { %v3951_v38 = vadd.f32 %v3950_v55, %v3661_v53 }
 0x43e   : > { %v3663_v49 = vpop.f32.mrf.mxu0  ;;  %v3952_v50 = vpop.f32.mrf.mxu1 }
 0x43f   : > { %v4034_v12 = vpack.c.bf16 %v3951_v38, %v3948_v37 }
 0x440   : > { %v3666_v13 = vpop.f32.mrf.mxu0  ;;  %v3955_v15 = vpop.f32.mrf.mxu1 }
 0x441   : > { %5668 = vmatprep.mubr.bf16.mxu1 %v4034_v12  ;;  %v3956_v1 = vadd.f32 %v3955_v15, %v3666_v13 }
 0x442   : > { %v3668_v17 = vpop.f32.mrf.mxu0  ;;  %v3957_v18 = vpop.f32.mrf.mxu1 }
 0x444   : > { %v3669_v19 = vpop.f32.mrf.mxu0  ;;  %v3958_v20 = vpop.f32.mrf.mxu1 }
 0x445   : > { %v3959_v3 = vadd.f32 %v3958_v20, %v3669_v19 }
 0x446   : > { %v3671_v14 = vpop.f32.mrf.mxu0  ;;  %v3960_v16 = vpop.f32.mrf.mxu1 }
 0x447   : > { %v4035_v61 = vpack.c.bf16 %v3959_v3, %v3956_v1 }
 0x448   : > { %v3674_v62 = vpop.f32.mrf.mxu0  ;;  %v3963_v21 = vpop.f32.mrf.mxu1 }
 0x449   : > { %5669 = vmatmul.mubr.bf16.gmra.mxu1 %v4035_v61  ;;  %v3964_v29 = vadd.f32 %v3963_v21, %v3674_v62 }
 0x44a   : > { %v3676_v24 = vpop.f32.mrf.mxu0  ;;  %v3965_v10 = vpop.f32.mrf.mxu1 }
 0x44b   : > { %v6855_v10 = vld [vmem:[%s7032_s4] ss:$0 sm:$0xff] }
 0x44c   : > { %v3677_v11 = vpop.f32.mrf.mxu0  ;;  %v3966_v25 = vpop.f32.mrf.mxu1 }
 0x44d   : > { %v3967_v32 = vadd.f32 %v3966_v25, %v3677_v11 }
 0x44e   : > { %v3679_v33 = vpop.f32.mrf.mxu0  ;;  %v3968_v34 = vpop.f32.mrf.mxu1 }
 0x44f   : > { %v4036_v35 = vpack.c.bf16 %v3967_v32, %v3964_v29 }
 0x450   : > { %v3682_v28 = vpop.f32.mrf.mxu0  ;;  %v3971_v30 = vpop.f32.mrf.mxu1 }
 0x451   : > { %5672 = vmatprep.mubr.bf16.mxu1 %v4036_v35  ;;  %v3972_v22 = vadd.f32 %v3971_v30, %v3682_v28 }
 0x452   : > { %v3684_v36 = vpop.f32.mrf.mxu0  ;;  %v3973_v42 = vpop.f32.mrf.mxu1 }
 0x454   : > { %v3685_v44 = vpop.f32.mrf.mxu0  ;;  %v3974_v45 = vpop.f32.mrf.mxu1 }
 0x455   : > { %v3975_v23 = vadd.f32 %v3974_v45, %v3685_v44 }
 0x456   : > { %v3687_v39 = vpop.f32.mrf.mxu0  ;;  %v3976_v40 = vpop.f32.mrf.mxu1 }
 0x457   : > { %v4037_v46 = vpack.c.bf16 %v3975_v23, %v3972_v22 }
 0x458   : > { %v3690_v47 = vpop.f32.mrf.mxu0  ;;  %v3979_v48 = vpop.f32.mrf.mxu1 }
 0x459   : > { %5673 = vmatmul.mubr.bf16.gmra.mxu1 %v4037_v46  ;;  %v3980_v57 = vadd.f32 %v3979_v48, %v3690_v47 }
 0x45a   : > { %v3692_v51 = vpop.f32.mrf.mxu0  ;;  %v3981_v52 = vpop.f32.mrf.mxu1 }
 0x45c   : > { %v3693_v54 = vpop.f32.mrf.mxu0  ;;  %v3982_v56 = vpop.f32.mrf.mxu1 }
 0x45d   : > { %v3983_v60 = vadd.f32 %v3982_v56, %v3693_v54 }
 0x45e   : > { %v3695_v7 = vpop.f32.mrf.mxu0  ;;  %v3984_v58 = vpop.f32.mrf.mxu1 }
 0x45f   : > { %v4038_v59 = vpack.c.bf16 %v3983_v60, %v3980_v57 }
 0x460   : > { %v3698_v31 = vpop.f32.mrf.mxu0  ;;  %v3987_v63 = vpop.f32.mrf.mxu1 }
 0x461   : > { %5676 = vmatprep.mubr.bf16.mxu1 %v4038_v59  ;;  %v3988_v4 = vadd.f32 %v3987_v63, %v3698_v31 }
 0x462   : > { %v3700_v26 = vpop.f32.mrf.mxu0  ;;  %v3989_v27 = vpop.f32.mrf.mxu1 }
 0x464   : > { %v3701_v0 = vpop.f32.mrf.mxu0  ;;  %v3990_v2 = vpop.f32.mrf.mxu1 }
 0x465   : > { %v3991_v5 = vadd.f32 %v3990_v2, %v3701_v0 }
 0x466   : > { %v3703_v6 = vpop.f32.mrf.mxu0  ;;  %v3992_v8 = vpop.f32.mrf.mxu1 }
 0x467   : > { %v4039_v9 = vpack.c.bf16 %v3991_v5, %v3988_v4 }
 0x468   : > { %v3706_v41 = vpop.f32.mrf.mxu0  ;;  %v3995_v43 = vpop.f32.mrf.mxu1 }
 0x469   : > { %5677 = vmatmul.mubr.bf16.gmra.mxu1 %v4039_v9  ;;  %v3996_v49 = vadd.f32 %v3995_v43, %v3706_v41 }
 0x46a   : > { %v3708_v53 = vpop.f32.mrf.mxu0  ;;  %v3997_v55 = vpop.f32.mrf.mxu1 }
 0x46c   : > { %v3709_v37 = vpop.f32.mrf.mxu0  ;;  %v3998_v38 = vpop.f32.mrf.mxu1 }
 0x46d   : > { %v3999_v50 = vadd.f32 %v3998_v38, %v3709_v37 }
 0x46e   : > { %v3711_v12 = vpop.f32.mrf.mxu0  ;;  %v4000_v13 = vpop.f32.mrf.mxu1 }
 0x46f   : > { %v4040_v15 = vpack.c.bf16 %v3999_v50, %v3996_v49 }
 0x470   : > { %v3714_v17 = vpop.f32.mrf.mxu0  ;;  %v4003_v18 = vpop.f32.mrf.mxu1 }
 0x471   : > { %5680 = vmatprep.mubr.bf16.mxu1 %v4040_v15  ;;  %v4004_v14 = vadd.f32 %v4003_v18, %v3714_v17  ;;  %v6886_v15 = vld [vmem:[#allocation10] sm:$0xff] }
 0x472   : > { %v3716_v19 = vpop.f32.mrf.mxu0  ;;  %v4005_v20 = vpop.f32.mrf.mxu1  ;;  %v5237_v18 = vcombine.high %v6886_v15, %v6886_v15 }
 0x474   : > { %v3717_v1 = vpop.f32.mrf.mxu0  ;;  %v4006_v3 = vpop.f32.mrf.mxu1 }
 0x475   : > { %v4007_v16 = vadd.f32 %v4006_v3, %v3717_v1 }
 0x476   : > { %v3719_v61 = vpop.f32.mrf.mxu0  ;;  %v4008_v62 = vpop.f32.mrf.mxu1 }
 0x477   : > { %v4041_v21 = vpack.c.bf16 %v4007_v16, %v4004_v14 }
 0x478   : > { %v5622_v24 = vpop.f32.mrf.mxu0 }
 0x479   : > { %5681 = vmatmul.mubr.bf16.gmra.mxu1 %v4041_v21  ;;  %v4156_v25 = vadd.f32 %v5622_v24, %v6855_v10 }
 0x47a   : > { %v4147_v11 = vpop.f32.mrf.mxu0  ;;  %4547 = vmatprep.mubr.bf16.mxu1 %v5237_v18 }
 0x47b   : > { %v4148_v32 = vadd.f32 %v6855_v10, %v4147_v11  ;;  %v4404_v35 = vmax.f32 %v4156_v25, 0.0 }
 0x47c   : > { %v5623_v29 = vpop.f32.mrf.mxu0 }
 0x47d   : > { %v4159_v33 = vadd.f32 %v5623_v29, %v6855_v10  ;;  %v4402_v42 = vmax.f32 %v4148_v32, 0.0 }
 0x47e   : > { %v4150_v34 = vpop.f32.mrf.mxu0 }
 0x47f   : > { %v4405_v28 = vmax.f32 %v4159_v33, 0.0  ;;  %v4151_v30 = vadd.f32 %v6855_v10, %v4150_v34 }
 0x480   : > { %v5626_v36 = vpop.f32.mrf.mxu0 }
 0x481   : > { %v6861_v44 = vpack.c.bf16 %v4405_v28, %v4404_v35  ;;  %v4403_v45 = vmax.f32 %v4151_v30, 0.0  ;;  %v4172_v39 = vadd.f32 %v5626_v36, %v6855_v10 }
 0x482   : > { %v4163_v22 = vpop.f32.mrf.mxu0 }
 0x483   : > { %v6863_v23 = vpack.c.bf16 %v4403_v45, %v4402_v42  ;;  %v4164_v46 = vadd.f32 %v6855_v10, %v4163_v22  ;;  %v4408_v51 = vmax.f32 %v4172_v39, 0.0 }
 0x484   : > { %v5627_v40 = vpop.f32.mrf.mxu0 }
 0x485   : > { %v4175_v47 = vadd.f32 %v5627_v40, %v6855_v10  ;;  %v4406_v57 = vmax.f32 %v4164_v46, 0.0 }
 0x486   : > { %v4166_v48 = vpop.f32.mrf.mxu0 }
 0x487   : > { %v4409_v52 = vmax.f32 %v4175_v47, 0.0  ;;  %v4167_v54 = vadd.f32 %v6855_v10, %v4166_v48 }
 0x488   : > { %v5630_v56 = vpop.f32.mrf.mxu0 }
 0x489   : > { %v6869_v60 = vpack.c.bf16 %v4409_v52, %v4408_v51  ;;  %v4407_v7 = vmax.f32 %v4167_v54, 0.0  ;;  %v4188_v39 = vadd.f32 %v5630_v56, %v6855_v10 }
 0x48a   : > { %v6871_v58 = vpop.f32.mrf.mxu0 }
 0x48b   : > { %v6873_v59 = vpack.c.bf16 %v4407_v7, %v4406_v57 }
 0x48c   : > { %v5631_v31 = vpop.f32.mrf.mxu0 }
 0x48d   : > { %v4191_v28 = vadd.f32 %v5631_v31, %v6855_v10  ;;  %v4412_v31 = vmax.f32 %v4188_v39, 0.0 }
 0x48e   : > { %v4182_v63 = vpop.f32.mrf.mxu0 }
 0x48f   : > { %v4413_v48 = vmax.f32 %v4191_v28, 0.0  ;;  %v4183_v51 = vadd.f32 %v6855_v10, %v4182_v63 }
 0x490   : > { %v5634_v26 = vpop.f32.mrf.mxu0 }
 0x491   : > { %v4204_v19 = vadd.f32 %v5634_v26, %v6855_v10  ;;  %v4180_v26 = vadd.f32 %v6855_v10, %v6871_v58 }
 0x492   : > { %v4195_v27 = vpop.f32.mrf.mxu0 }
 0x493   : > { %v4416_v25 = vmax.f32 %v4204_v19, 0.0  ;;  %v4196_v29 = vadd.f32 %v6855_v10, %v4195_v27 }
 0x494   : > { %v5635_v0 = vpop.f32.mrf.mxu0 }
 0x495   : > { %v4207_v12 = vadd.f32 %v5635_v0, %v6855_v10  ;;  %v4414_v40 = vmax.f32 %v4196_v29, 0.0  ;;  %v4474_v0 = vpack.c.bf16 %v4413_v48, %v4412_v31 }
 0x496   : > { %v4198_v2 = vpop.f32.mrf.mxu0 }
 0x497   : > { %v4417_v14 = vmax.f32 %v4207_v12, 0.0  ;;  %v4199_v16 = vadd.f32 %v6855_v10, %v4198_v2  ;;  %v4411_v2 = vmax.f32 %v4183_v51, 0.0 }
 0x498   : > { %v6875_v4 = vpop.f32.mrf.mxu0 }
 0x499   : > { %v4476_v30 = vpack.c.bf16 %v4417_v14, %v4416_v25  ;;  %v4415_v36 = vmax.f32 %v4199_v16, 0.0  ;;  %v6924_v14 = vld [vmem:[#allocation10 + $0x8] sm:$0xff] }
 0x49a   : > { %v6877_v5 = vpop.f32.mrf.mxu0 }
 0x49b   : > { %v4475_v52 = vpack.c.bf16 %v4415_v36, %v4414_v40 }
 0x49c   : > { %v6879_v6 = vpop.f32.mrf.mxu0 }
 0x49d   : > { %v4223_v58 = vadd.f32 %v6879_v6, %v6855_v10 }
 0x49e   : > { %v6881_v8 = vpop.f32.mrf.mxu0 }
 0x49f   : > { %v4215_v18 = vadd.f32 %v6855_v10, %v6881_v8  ;;  %v5236_v8 = vcombine.low %v6886_v15, %v6886_v15 }
 0x4a0   : > { %v5642_v9 = vpop.f32.mrf.mxu0 }
 0x4a1   : > { %v4236_v56 = vadd.f32 %v5642_v9, %v6855_v10 }
 0x4a2   : > { %v6883_v41 = vpop.f32.mrf.mxu0 }
 0x4a4   : > { %v5643_v43 = vpop.f32.mrf.mxu0 }
 0x4a5   : > { %v4239_v54 = vadd.f32 %v5643_v43, %v6855_v10  ;;  %v4424_v43 = vmax.f32 %v4236_v56, 0.0 }
 0x4a6   : > { %v4230_v53 = vpop.f32.mrf.mxu0 }
 0x4a9   : > { %v5646_v55 = vpop.f32.mrf.mxu0 }
 0x4aa   : > { %v4252_v32 = vadd.f32 %v5646_v55, %v6855_v10  ;;  %v4425_v55 = vmax.f32 %v4239_v54, 0.0 }
 0x4ab   : > { %v4243_v37 = vpop.f32.mrf.mxu0 }
 0x4ac   : > { %v4428_v46 = vmax.f32 %v4252_v32, 0.0  ;;  %v4244_v47 = vadd.f32 %v6855_v10, %v4243_v37  ;;  %v4231_v37 = vadd.f32 %v6855_v10, %v4230_v53  ;;  %v4480_v9 = vpack.c.bf16 %v4425_v55, %v4424_v43 }
 0x4ad   : > { %v5647_v38 = vpop.f32.mrf.mxu0  ;;  %v4421_v53 = vmax.f32 %v4223_v58, 0.0 }
 0x4ae   : > { %v4255_v62 = vadd.f32 %v5647_v38, %v6855_v10  ;;  %v4426_v27 = vmax.f32 %v4244_v47, 0.0  ;;  %v4410_v38 = vmax.f32 %v4180_v26, 0.0  ;;  %v4423_v12 = vmax.f32 %v4231_v37, 0.0 }
 0x4af   : > { %v4246_v49 = vpop.f32.mrf.mxu0 }
 0x4b0   : > { %v4429_v42 = vmax.f32 %v4255_v62, 0.0  ;;  %v4247_v45 = vadd.f32 %v6855_v10, %v4246_v49  ;;  %v4228_v49 = vadd.f32 %v6855_v10, %v6883_v41 }
 0x4b2   : > { %v4482_v57 = vpack.c.bf16 %v4429_v42, %v4428_v46  ;;  %v4427_v7 = vmax.f32 %v4247_v45, 0.0 }
 0x4b4   : > { %v4481_v63 = vpack.c.bf16 %v4427_v7, %v4426_v27 }
 0x4b9   : > { %v5650_v50 = vpop.f32.mrf.mxu0 }
 0x4ba   : > { %v4268_v17 = vadd.f32 %v5650_v50, %v6855_v10  ;;  %v4473_v50 = vpack.c.bf16 %v4411_v2, %v4410_v38 }
 0x4bb   : > { %v4259_v13 = vpop.f32.mrf.mxu0 }
 0x4bc   : > { %v4260_v1 = vadd.f32 %v6855_v10, %v4259_v13  ;;  %v4432_v21 = vmax.f32 %v4268_v17, 0.0  ;;  %v4220_v13 = vadd.f32 %v6875_v4, %v6855_v10  ;;  %v4422_v17 = vmax.f32 %v4228_v49, 0.0 }
 0x4bd   : > { %v5651_v20 = vpop.f32.mrf.mxu0 }
 0x4be   : > { %v4271_v3 = vadd.f32 %v5651_v20, %v6855_v10  ;;  %v4430_v33 = vmax.f32 %v4260_v1, 0.0  ;;  %v4479_v19 = vpack.c.bf16 %v4423_v12, %v4422_v17  ;;  %v4420_v41 = vmax.f32 %v4220_v13, 0.0 }
 0x4bf   : > { %v4262_v61 = vpop.f32.mrf.mxu0  ;;  %v4212_v20 = vadd.f32 %v6855_v10, %v6877_v5  ;;  %v4419_v1 = vmax.f32 %v4215_v18, 0.0 }
 0x4c0   : > { %v4433_v24 = vmax.f32 %v4271_v3, 0.0  ;;  %v4263_v11 = vadd.f32 %v6855_v10, %v4262_v61  ;;  %v4478_v6 = vpack.c.bf16 %v4421_v53, %v4420_v41 }
 0x4c1   : > { %v4418_v3 = vmax.f32 %v4212_v20, 0.0 }
 0x4c2   : > { %v4484_v34 = vpack.c.bf16 %v4433_v24, %v4432_v21  ;;  %v4431_v35 = vmax.f32 %v4263_v11, 0.0 }
 0x4c3   : > { %v4477_v4 = vpack.c.bf16 %v4419_v1, %v4418_v3 }
 0x4c4   : > { %v4483_v22 = vpack.c.bf16 %v4431_v35, %v4430_v33  ;;  %5551 = vmatprep.subr.bf16.mxu1 %v4484_v34 }
 0x4c5   : > { %5552 = vmatpush3.bf16.msra.mxu1 %v4476_v30 }
 0x4c6   : > { %5553 = vmatprep.subr.bf16.mxu1 %v4483_v22 }
 0x4c9   : > { %5554 = vmatpush3.bf16.msra.mxu1 %v4475_v52  ;;  %v6937_v24 = vpop.f32.mrf.mxu0 }
 0x4ca   : > { %5555 = vmatprep.subr.bf16.mxu1 %v4482_v57 }
 0x4cb   : > { %v6939_v11 = vpop.f32.mrf.mxu0 }
 0x4cd   : > { %5556 = vmatpush3.bf16.msra.mxu1 %v4474_v0  ;;  %v6943_v29 = vpop.f32.mrf.mxu0 }
 0x4ce   : > { %5557 = vmatprep.subr.bf16.mxu1 %v4481_v63 }
 0x4cf   : > { %v6945_v33 = vpop.f32.mrf.mxu0 }
 0x4d1   : > { %5558 = vmatpush3.bf16.msra.mxu1 %v4473_v50 }
 0x4d2   : > { %5559 = vmatprep.subr.bf16.mxu1 %v4480_v9 }
 0x4d5   : > { %5560 = vmatpush3.bf16.msra.mxu1 %v6869_v60  ;;  %v5239_v60 = vcombine.high %v6924_v14, %v6924_v14 }
 0x4d6   : > { %5561 = vmatprep.subr.bf16.mxu1 %v4479_v19 }
 0x4d9   : > { %5562 = vmatpush3.bf16.msra.mxu1 %v6873_v59  ;;  %v6949_v35 = vpop.f32.mrf.mxu0 }
 0x4da   : > { %5563 = vmatprep.subr.bf16.mxu1 %v4478_v6 }
 0x4db   : > { %v6951_v30 = vpop.f32.mrf.mxu0 }
 0x4dd   : > { %5564 = vmatpush3.bf16.msra.mxu1 %v6861_v44  ;;  %v5659_v42 = vpop.f32.mrf.mxu0 }
 0x4de   : > { %5565 = vmatprep.subr.bf16.mxu1 %v4477_v4 }
 0x4df   : > { %v6953_v22 = vpop.f32.mrf.mxu0 }
 0x4e1   : > { %5566 = vmatpush3.bf16.msra.mxu1 %v6863_v23 }
 0x4e4   : > { %4548 = vmatmul.mubr.bf16.vlgmr.msra.gmra.mxu1 %v5236_v8 }
 0x4e5   : > { %4587 = vmatprep.mubr.bf16.mxu1 %v5239_v60 }
 0x4e9   : > { %v5662_v40 = vpop.f32.mrf.mxu0 }
 0x4ea   : > { %v4316_v20 = vadd.f32 %v5662_v40, %v6855_v10  ;;  %v4303_v40 = vadd.f32 %v5659_v42, %v6855_v10  ;;  %v4295_v42 = vadd.f32 %v6855_v10, %v6953_v22 }
 0x4eb   : > { %v4307_v51 = vpop.f32.mrf.mxu0 }
 0x4ed   : > { %v5663_v0 = vpop.f32.mrf.mxu0 }
 0x4ee   : > { %v4319_v12 = vadd.f32 %v5663_v0, %v6855_v10  ;;  %v4287_v0 = vadd.f32 %v6943_v29, %v6855_v10  ;;  %v4279_v29 = vadd.f32 %v6855_v10, %v6945_v33  ;;  %v5238_v33 = vcombine.low %v6924_v14, %v6924_v14 }
 0x4ef   : > { %v4310_v53 = vpop.f32.mrf.mxu0 }
 0x4f0   : > { %v4445_v4 = vmax.f32 %v4319_v12, 0.0  ;;  %v4311_v8 = vadd.f32 %v6855_v10, %v4310_v53 }
 0x4f9   : > { %v5666_v5 = vpop.f32.mrf.mxu1 }
 0x4fa   : > { %v4332_v54 = vadd.f32 %v5666_v5, %v6855_v10 }
 0x4fb   : > { %v4323_v59 = vpop.f32.mrf.mxu1 }
 0x4fc   : > { %v4448_v38 = vmax.f32 %v4332_v54, 0.0  ;;  %v4324_v43 = vadd.f32 %v6855_v10, %v4323_v59 }
 0x4fd   : > { %v5667_v16 = vpop.f32.mrf.mxu1 }
 0x4fe   : > { %v4335_v47 = vadd.f32 %v5667_v16, %v6855_v10  ;;  %v4446_v6 = vmax.f32 %v4324_v43, 0.0  ;;  %v4437_v43 = vmax.f32 %v4287_v0, 0.0 }
 0x4ff   : > { %v4326_v61 = vpop.f32.mrf.mxu1 }
 0x500   : > { %v4449_v26 = vmax.f32 %v4335_v47, 0.0  ;;  %v4327_v56 = vadd.f32 %v6855_v10, %v4326_v61  ;;  %v4444_v61 = vmax.f32 %v4316_v20, 0.0 }
 0x502   : > { %v4492_v13 = vpack.c.bf16 %v4449_v26, %v4448_v38  ;;  %v4447_v17 = vmax.f32 %v4327_v56, 0.0 }
 0x504   : > { %v4491_v60 = vpack.c.bf16 %v4447_v17, %v4446_v6 }
 0x509   : > { %v6929_v62 = vpop.f32.mrf.mxu1 }
 0x50b   : > { %v6931_v44 = vpop.f32.mrf.mxu1 }
 0x50d   : > { %v6933_v21 = vpop.f32.mrf.mxu1 }
 0x50f   : > { %v6935_v15 = vpop.f32.mrf.mxu1 }
 0x519   : > { %v5674_v23 = vpop.f32.mrf.mxu1 }
 0x51b   : > { %v6941_v25 = vpop.f32.mrf.mxu1 }
 0x51d   : > { %v5675_v32 = vpop.f32.mrf.mxu1 }
 0x51e   : > { %v4367_v5 = vadd.f32 %v5675_v32, %v6855_v10  ;;  %v4300_v32 = vadd.f32 %v6949_v35, %v6855_v10  ;;  %v4292_v35 = vadd.f32 %v6855_v10, %v6951_v30 }
 0x51f   : > { %v6947_v34 = vpop.f32.mrf.mxu1 }
 0x520   : > { %v4457_v47 = vmax.f32 %v4367_v5, 0.0  ;;  %v4440_v56 = vmax.f32 %v4300_v32, 0.0  ;;  %v4438_v30 = vmax.f32 %v4292_v35, 0.0 }
 0x529   : > { %v5678_v28 = vpop.f32.mrf.mxu1 }
 0x52a   : > { %v4380_v49 = vadd.f32 %v5678_v28, %v6855_v10  ;;  %v4308_v28 = vadd.f32 %v6855_v10, %v4307_v51 }
 0x52b   : > { %v4371_v36 = vpop.f32.mrf.mxu1 }
 0x52c   : > { %v4460_v1 = vmax.f32 %v4380_v49, 0.0  ;;  %v4372_v3 = vadd.f32 %v6855_v10, %v4371_v36  ;;  %v4490_v36 = vpack.c.bf16 %v4445_v4, %v4444_v61  ;;  %v4442_v54 = vmax.f32 %v4308_v28, 0.0 }
 0x52d   : > { %v5679_v45 = vpop.f32.mrf.mxu1 }
 0x52e   : > { %v4383_v2 = vadd.f32 %v5679_v45, %v6855_v10  ;;  %v4364_v45 = vadd.f32 %v5674_v23, %v6855_v10  ;;  %v4356_v23 = vadd.f32 %v6855_v10, %v6941_v25 }
 0x52f   : > { %v4374_v39 = vpop.f32.mrf.mxu1 }
 0x530   : > { %v4461_v18 = vmax.f32 %v4383_v2, 0.0  ;;  %v4375_v19 = vadd.f32 %v6855_v10, %v4374_v39  ;;  %v4458_v39 = vmax.f32 %v4372_v3, 0.0  ;;  %v4456_v51 = vmax.f32 %v4364_v45, 0.0  ;;  %v4466_v3 = vld [vmem:[#allocation3] sm:$0xff] }
 0x531   : > { %v4454_v25 = vmax.f32 %v4356_v23, 0.0  ;;  %v4439_v2 = vmax.f32 %v4295_v42, 0.0 }
 0x532   : > { %v4498_v59 = vpack.c.bf16 %v4461_v18, %v4460_v1  ;;  %v4459_v16 = vmax.f32 %v4375_v19, 0.0 }
 0x533   : > { %v4487_v49 = vpack.c.bf16 %v4439_v2, %v4438_v30 }
 0x539   : > { %v5682_v46 = vpop.f32.mrf.mxu1 }
 0x53a   : > { %v4396_v52 = vadd.f32 %v5682_v46, %v6855_v10  ;;  %v4443_v46 = vmax.f32 %v4311_v8, 0.0 }
 0x53b   : > { %v4387_v48 = vpop.f32.mrf.mxu1 }
 0x53c   : > { %v4388_v7 = vadd.f32 %v6855_v10, %v4387_v48  ;;  %v4464_v55 = vmax.f32 %v4396_v52, 0.0  ;;  %v4359_v48 = vadd.f32 %v6855_v10, %v6947_v34  ;;  %v4497_v52 = vpack.c.bf16 %v4459_v16, %v4458_v39 }
 0x53d   : > { %v5683_v57 = vpop.f32.mrf.mxu1  ;;  %v4496_v34 = vpack.c.bf16 %v4457_v47, %v4456_v51 }
 0x53e   : > { %v4399_v31 = vadd.f32 %v5683_v57, %v6855_v10  ;;  %v4462_v50 = vmax.f32 %v4388_v7, 0.0  ;;  %v4441_v57 = vmax.f32 %v4303_v40, 0.0  ;;  %v4489_v7 = vpack.c.bf16 %v4443_v46, %v4442_v54 }
 0x53f   : > { %v4390_v27 = vpop.f32.mrf.mxu1  ;;  %v4455_v26 = vmax.f32 %v4359_v48, 0.0 }
 0x540   : > { %v4465_v37 = vmax.f32 %v4399_v31, 0.0  ;;  %v4391_v63 = vadd.f32 %v6855_v10, %v4390_v27  ;;  %v4351_v31 = vadd.f32 %v6933_v21, %v6855_v10  ;;  %v4348_v27 = vadd.f32 %v6929_v62, %v6855_v10 }
 0x541   : > { %v4488_v22 = vpack.c.bf16 %v4441_v57, %v4440_v56  ;;  %v4343_v21 = vadd.f32 %v6855_v10, %v6935_v15  ;;  %v4340_v62 = vadd.f32 %v6855_v10, %v6931_v44  ;;  %v4276_v15 = vadd.f32 %v6855_v10, %v6939_v11 }
 0x542   : > { %v4500_v58 = vpack.c.bf16 %v4465_v37, %v4464_v55  ;;  %v4463_v9 = vmax.f32 %v4391_v63, 0.0  ;;  %v4453_v55 = vmax.f32 %v4351_v31, 0.0  ;;  %v4495_v37 = vpack.c.bf16 %v4455_v26, %v4454_v25 }
 0x543   : > { %v4284_v63 = vadd.f32 %v6937_v24, %v6855_v10  ;;  %v4452_v38 = vmax.f32 %v4348_v27, 0.0  ;;  %v4450_v24 = vmax.f32 %v4340_v62, 0.0  ;;  %v4434_v53 = vmax.f32 %v4276_v15, 0.0 }
 0x544   : > { %v4499_v41 = vpack.c.bf16 %v4463_v9, %v4462_v50  ;;  %5573 = vmatprep.subr.bf16.mxu1 %v4500_v58  ;;  %v4451_v58 = vmax.f32 %v4343_v21, 0.0 }
 0x545   : > { %5574 = vmatpush3.bf16.msra.mxu1 %v4492_v13  ;;  %v4494_v50 = vpack.c.bf16 %v4453_v55, %v4452_v38  ;;  %v4436_v9 = vmax.f32 %v4284_v63, 0.0  ;;  %v4435_v13 = vmax.f32 %v4279_v29, 0.0 }
 0x546   : > { %5575 = vmatprep.subr.bf16.mxu1 %v4499_v41  ;;  %v4493_v17 = vpack.c.bf16 %v4451_v58, %v4450_v24 }
 0x547   : > { %v4486_v12 = vpack.c.bf16 %v4437_v43, %v4436_v9  ;;  %v4485_v44 = vpack.c.bf16 %v4435_v13, %v4434_v53 }
 0x549   : > { %5576 = vmatpush3.bf16.msra.mxu1 %v4491_v60 }
 0x54a   : > { %5577 = vmatprep.subr.bf16.mxu1 %v4498_v59 }
 0x54d   : > { %5578 = vmatpush3.bf16.msra.mxu1 %v4490_v36 }
 0x54e   : > { %5579 = vmatprep.subr.bf16.mxu1 %v4497_v52 }
 0x551   : > { %5580 = vmatpush3.bf16.msra.mxu1 %v4489_v7 }
 0x552   : > { %5581 = vmatprep.subr.bf16.mxu1 %v4496_v34 }
 0x555   : > { %5582 = vmatpush3.bf16.msra.mxu1 %v4488_v22 }
 0x556   : > { %5583 = vmatprep.subr.bf16.mxu1 %v4495_v37 }
 0x559   : > { %5584 = vmatpush3.bf16.msra.mxu1 %v4487_v49 }
 0x55a   : > { %5585 = vmatprep.subr.bf16.mxu1 %v4494_v50 }
 0x55d   : > { %5586 = vmatpush3.bf16.msra.mxu1 %v4486_v12 }
 0x55e   : > { %5587 = vmatprep.subr.bf16.mxu1 %v4493_v17 }
 0x561   : > { %5588 = vmatpush3.bf16.msra.mxu1 %v4485_v44 }
 0x564   : > { %4588 = vmatmul.mubr.bf16.vlgmr.msra.gmra.mxu1 %v5238_v33 }
 0x5a4   : > { %v5567_v18 = vpop.f32.mrf.mxu1 }
 0x5a6   : > { %v5568_v19 = vpop.f32.mrf.mxu1 }
 0x5a7   : > { %v5569_v41 = vadd.f32 %v5568_v19, %v5567_v18 }
 0x5a8   : > { %v5570_v20 = vpop.f32.mrf.mxu1 }
 0x5aa   : > { %v5571_v10 = vpop.f32.mrf.mxu1 }
 0x624   : > { %v5589_v11 = vpop.f32.mrf.mxu1 }
 0x626   : > { %v5590_v6 = vpop.f32.mrf.mxu1 }
 0x627   : > { %v5591_v1 = vadd.f32 %v5590_v6, %v5589_v11 }
 0x628   : > { %v5592_v4 = vpop.f32.mrf.mxu1 }
 0x629   : > { %v4590_v8 = vadd.f32 %v5591_v1, %v5569_v41 }
 0x62a   : > { %v5593_v60 = vpop.f32.mrf.mxu1 }
 0x62b   : > { %v4595_v5 = vadd.f32 %v4590_v8, %v4466_v3 }
 0x62d   : > { %4596 = vst [vmem:[#allocation3] sm:$0xff] %v4595_v5 }
 0x62e PF: > { %4600 = sbr.rel (!%p2404_p2) target bundleno = 1814 (0x716), region = 88  ;;  %v6274_v14 = vld [vmem:[#allocation12 + $0x38] sm:$0xff] (%p2404_p2)   ;;  %v6492_v59 = vmov (%p2404_p2), 0.0   ;;  %v6275_v16 = vld [vmem:[#allocation12 + $0x30] sm:$0xff] (%p2404_p2)   ;;  %vm6493_vm0 = vmmov (%p2404_p2), 0   ;;  %v6276_v61 = vld [vmem:[#allocation12 + $0x28] sm:$0xff] (%p2404_p2)  }
 0x62f   : > { %5684 = vmatprep.subr.bf16.mxu0 (%p2404_p2), %v6492_v59  ;;  %5700 = vmatprep.mubr.msk.bf16.mxu0 (%p2404_p2), %vm6493_vm0, %v6492_v59  ;;  %v6277_v28 = vld [vmem:[#allocation12 + $0x20] sm:$0xff] (%p2404_p2)   ;;  %v6278_v45 = vld [vmem:[#allocation12 + $0x18] sm:$0xff] (%p2404_p2)   ;;  %v6279_v39 = vld [vmem:[#allocation12 + $0x10] sm:$0xff] (%p2404_p2)  }
 0x630   : > { %5685 = vmatpush3.bf16.msra.mxu0 (%p2404_p2), %v6274_v14  ;;  %v6280_v40 = vld [vmem:[#allocation12 + $0x8] sm:$0xff] (%p2404_p2)   ;;  %v6281_v36 = vld [vmem:[#allocation12] sm:$0xff] (%p2404_p2)   ;;  %v5241_v48 = vld [vmem:[%s7035_s7] ss:$0 sm:$0xff] (%p2404_p2) }
 0x631   : > { %5686 = vmatprep.subr.bf16.mxu0 (%p2404_p2), %v6492_v59 }
 0x634   : > { %5687 = vmatpush3.bf16.msra.mxu0 %v6275_v16  ;;  %v4601_v46 = vld [vmem:[#allocation3] sm:$0xff] }
 0x635   : > { %5688 = vmatprep.subr.bf16.mxu0 %v6492_v59  ;;  %v4602_v47 = vpack.c.bf16 %v4601_v46, %v4601_v46 }
 0x638   : > { %5689 = vmatpush3.bf16.msra.mxu0 %v6276_v61 }
 0x639   : > { %5690 = vmatprep.subr.bf16.mxu0 %v6492_v59 }
 0x63c   : > { %5691 = vmatpush3.bf16.msra.mxu0 %v6277_v28 }
 0x63d   : > { %5692 = vmatprep.subr.bf16.mxu0 %v6492_v59 }
 0x640   : > { %5693 = vmatpush3.bf16.msra.mxu0 %v6278_v45 }
 0x641   : > { %5694 = vmatprep.subr.bf16.mxu0 %v6492_v59 }
 0x644   : > { %5695 = vmatpush3.bf16.msra.mxu0 %v6279_v39 }
 0x645   : > { %5696 = vmatprep.subr.bf16.mxu0 %v6492_v59 }
 0x648   : > { %5697 = vmatpush3.bf16.msra.mxu0 %v6280_v40 }
 0x649   : > { %5698 = vmatprep.subr.bf16.mxu0 %v6492_v59 }
 0x64c   : > { %5699 = vmatpush3.bf16.msra.mxu0 %v6281_v36 }
 0x64f   : > { %5701 = vmatmul.mubr.bf16.vlgmr.msra.gmra.mxu0 %v4602_v47 }
 0x70f   : > { %v4708_v52 = vpop.f32.mrf.mxu0 }
 0x710   : > { %v4709_v32 = vadd.f32 %v5241_v48, %v4708_v52 }
 0x711   : > { %v5702_v54 = vpop.f32.mrf.mxu0 }
 0x712   : > { %4714 = vst [vmem:[#allocation13] sm:$0xff] %v4709_v32 }
 0x713   : > { %v4711_v51 = vpop.f32.mrf.mxu0 }
 0x715   : > { %v5703_v23 = vpop.f32.mrf.mxu0 }
 0x716 PF: > { %p5772_p7 = scmp.eq.s32.totalorder %s6556_s10, 1  ;;  %s6494_s24 = smov [#allocation13]  }
 0x717   : > { %s4722_s25 = sshll.u32 %s6494_s24, 4  ;;  %s4723_s25 = int_to_ptr.vmem [resolvable:$true] %s4722_s25 }
 0x718   : > { %s6412_s26 = scalar_lea.vmem %s4723_s25, 128  ;;  %p6419_p12 = scmp.lt.s32.totalorder %s4723_s25, %s4723_s25 }
 0x719   : > { %p6413_p6 = scmp.ne.s32.totalorder %s4723_s25, %s6412_s26  ;;  %p6420_p13 = scmp.lt.s32.totalorder %s6412_s26, %s6412_s26 }
 0x71b   : > { %p6414_p8 = pnand %p6413_p6, %p5772_p7  ;;  %p6421_p0 = por %p6420_p13, %p6419_p12 }
 0x71d   : > { %p6415_p11 = pneg %p6414_p8 }
 0x71f   : > { %p6422_p5 = pnand %p6421_p0, %p6415_p11 }
 0x721   : > { %6425 = shalt.err (!%p6422_p5)
}
 0x722   : > { %5741 = dma.vmem_to_hbm [thread:$0]  (%p5772_p7), %s4723_s25, 128, %s7036_s8, [#allocation6]  }
 0x723   : > { %6465 = dma.done.wait (%p5772_p7), [#allocation6], 128  }
 0x724   : > { %6467 = vsyncadd (%p5772_p7), [#allocation6], 4294967168 }
 0x725 PF: > { %s24_s29 = sadd.s32 1, %s6478_s29   ;;  %s7040_s27 = smov %s6474_s28 }
 0x726   : > { %p21_p1 = scmp.ge.s32.totalorder %s24_s29, 4   ;;  %s7041_s28 = smov %s7043_s23 }
 0x728   :  { %23 = sbr.rel (!%p21_p1) target bundleno = 6 (0x6), region = 124 }
 0x72d   :  { %4735 = vsyncpa [#allocation5], 1 }
 0x72e   :  { %4737 = vsyncpa [#allocation5 + $0x1], 1 }
 0x72f   :  { %4738 = vsyncpa [#allocation8], 1 }
 0x730   :  { %4739 = vsyncpa [#allocation11], 1 }
 0x731   :  { %4741 = vsyncpa [#allocation11 + $0x1], 1 }
 0x732   :  { %4742 = vsyncpa [#allocation6], 1 }
 0x733   :  { %4744 = vsyncpa [#allocation6 + $0x1], 1 }

</bundles_post_ra>
